<compile_context>
chip_gen: v5e
topology: v5e:2x2
jax: 0.10.0
libtpu: 0.0.40
codegen_flags: <defaults>
</compile_context>

<pallas_src>
import functools

import jax
import jax.numpy as jnp
from jax.experimental import pallas as pl
from jax.experimental.pallas import tpu as pltpu

GRAM_MATRIX_CLAMP_MAX = 500000.0

_C0, _C1, _C2 = 8, 16, 16       # output channels at the three taps
_CIN0_PAD = 8                   # RGB input zero-padded to 8 channels so every
                                # im2col concat is sublane-aligned


# ----------------------- host-side precomputed constants -----------------------

def _conv_masks(N, H, W):
    """Nine 'same'-padding validity masks (one per 3x3 tap), stacked (9, L).

    Lane f = n*H*W + y*W + x is valid for tap (dy, dx) iff (y+dy, x+dx) lies
    inside the image; this also kills cross-image bleed from the lane roll
    (any wrap lands on an invalid (y, x))."""
    L = N * H * W
    f = jnp.arange(L)
    y = (f // W) % H
    x = f % W
    rows = []
    for dy in (-1, 0, 1):
        for dx in (-1, 0, 1):
            valid = (y + dy >= 0) & (y + dy < H) & (x + dx >= 0) & (x + dx < W)
            rows.append(valid.astype(jnp.float32))
    return jnp.stack(rows, axis=0)


def _pool_selector(N, H, W):
    """(L, Lo) 0/1 matrix gathering the top-left lane of every 2x2 window."""
    Ho, Wo = H // 2, W // 2
    L, Lo = N * H * W, N * Ho * Wo
    f = jnp.arange(L)[:, None]
    g = jnp.arange(Lo)[None, :]
    n = g // (Ho * Wo)
    r = g % (Ho * Wo)
    anchor = n * (H * W) + (r // Wo) * (2 * W) + (r % Wo) * 2
    return (f == anchor).astype(jnp.float32)


def _to_cf(x_nchw, c_pad):
    """NCHW -> channels-first (C_pad, N*H*W): lane axis carries (n, y, x)."""
    n, c, h, w = x_nchw.shape
    x = jnp.transpose(x_nchw, (1, 0, 2, 3)).reshape(c, n * h * w).astype(jnp.float32)
    if c_pad > c:
        x = jnp.pad(x, ((0, c_pad - c), (0, 0)))
    return x


# ------------------------- in-kernel building blocks -------------------------

def _conv3x3(act, w_ref, b_ref, mask_ref, W):
    """3x3 'same' conv on a channels-first (Cin, L=N*H*W) activation.

    Rolled+masked activation copies (XLU rolls + VPU masks) are stacked into a
    (9*Cin, L) im2col operand; one (Cout, 9*Cin) @ (9*Cin, L) bf16 MXU matmul
    with f32 accumulation produces the lane-dense (Cout, L) output."""
    Cin, L = act.shape
    pieces = []
    t = 0
    for dy in (-1, 0, 1):
        for dx in (-1, 0, 1):
            shift = dy * W + dx                       # neighbour flat offset
            rolled = act if shift == 0 else pltpu.roll(act, shift=(-shift) % L, axis=1)
            pieces.append(rolled * mask_ref[pl.ds(t, 1), :])     # zero pad / no bleed
            t += 1
    col = jnp.concatenate(pieces, axis=0).astype(jnp.bfloat16)   # (9*Cin, L)
    out = jnp.dot(w_ref[...], col, preferred_element_type=jnp.float32)
    return out + b_ref[...]                                      # lane-broadcast f32 bias


def _maxpool2x2(act, psel_ref, W):
    """2x2 / stride-2 max pool on (C, L): lane rolls + elementwise max reduce
    each window onto its top-left lane; one small exact 0/1 matmul gathers the
    N*Ho*Wo anchor lanes."""
    L = act.shape[1]
    m = jnp.maximum(act, pltpu.roll(act, shift=L - 1, axis=1))   # max over (x, x+1)
    m = jnp.maximum(m, pltpu.roll(m, shift=L - W, axis=1))       # max over (y, y+1)
    # TODO(synk): a strided-lane gather would remove this last selection matmul;
    # kept as a single small f32 matmul for portability across v5e/v6e/v7x.
    return jnp.dot(m, psel_ref[...], preferred_element_type=jnp.float32)


def _gram(feat, N, HW, clamp_max):
    """torch `gram_matrix`: rebuild the (N*C, HW) feature matrix (row order
    n*C + c) from per-image lane blocks, then G = clamp(F F^T, max) / (N*C*HW).
    Clamp (upper only) is applied BEFORE normalization, matching torch."""
    C = feat.shape[0]
    blocks = [feat[:, n * HW:(n + 1) * HW] for n in range(N)]
    F = blocks[0] if N == 1 else jnp.concatenate(blocks, axis=0)
    g = jax.lax.dot_general(F, F, (((1,), (1,)), ((), ())),
                            preferred_element_type=jnp.float32)
    return jnp.minimum(g, clamp_max) * (1.0 / float(N * C * HW))


def _features(x, w0, b0, w2, b2, w5, b5, w7, b7, mhi, mlo, psel, W, want_content=True):
    """Whole synthetic-VGG block stack on VMEM-resident values; returns the
    activations at the three taps (style 0, style 1, content)."""
    Wo = W // 2
    a0 = _conv3x3(x, w0, b0, mhi, W)             # conv0            (tap 0)
    h = jnp.maximum(a0, 0.0)                     # relu1
    h = _conv3x3(h, w2, b2, mhi, W)              # conv2
    h = jnp.maximum(h, 0.0)                      # relu3
    h = _maxpool2x2(h, psel, W)                  # pool4
    a1 = _conv3x3(h, w5, b5, mlo, Wo)            # conv5            (tap 1)
    if not want_content:
        return a0, a1, None
    h = jnp.maximum(a1, 0.0)                     # relu6
    a2 = _conv3x3(h, w7, b7, mlo, Wo)            # conv7            (tap 2)
    return a0, a1, a2


# --------------------------------- kernels -----------------------------------

def _targets_kernel(style_ref, content_ref, w0, b0, w2, b2, w5, b5, w7, b7,
                    mhi, mlo, psel, g0_ref, g1_ref, a2_ref, *, N, H, W, clamp_max):
    """One launch produces both precomputed targets: style-image Gram matrices
    and content-image features; unused taps are simply not computed."""
    s0, s1, _ = _features(style_ref[...], w0, b0, w2, b2, w5, b5, w7, b7,
                          mhi, mlo, psel, W, want_content=False)
    g0_ref[...] = _gram(s0, N, H * W, clamp_max)
    g1_ref[...] = _gram(s1, N, (H // 2) * (W // 2), clamp_max)
    _, _, c2 = _features(content_ref[...], w0, b0, w2, b2, w5, b5, w7, b7,
                         mhi, mlo, psel, W, want_content=True)
    a2_ref[...] = c2


def _losses_kernel(x_ref, w0, b0, w2, b2, w5, b5, w7, b7, mhi, mlo, psel,
                   g0t_ref, g1t_ref, a2t_ref, loss_ref, *, N, H, W, clamp_max):
    """Fused features + Gram + MSE; losses packed into one lane-dense (1, 128)
    output (lane 0 = style tap 0, lane 1 = style tap 1, lane 2 = content)."""
    a0, a1, a2 = _features(x_ref[...], w0, b0, w2, b2, w5, b5, w7, b7,
                           mhi, mlo, psel, W, want_content=True)
    d0 = _gram(a0, N, H * W, clamp_max) - g0t_ref[...]
    d1 = _gram(a1, N, (H // 2) * (W // 2), clamp_max) - g1t_ref[...]
    dc = a2 - a2t_ref[...]
    s0 = jnp.sum(d0 * d0, keepdims=True) * (1.0 / float(d0.size))   # (1, 1)
    s1 = jnp.sum(d1 * d1, keepdims=True) * (1.0 / float(d1.size))
    c = jnp.sum(dc * dc, keepdims=True) * (1.0 / float(dc.size))
    lane = jax.lax.broadcasted_iota(jnp.int32, (1, 128), 1)
    loss_ref[...] = (jnp.where(lane == 0, s0, 0.0)
                     + jnp.where(lane == 1, s1, 0.0)
                     + jnp.where(lane == 2, c, 0.0))


# ----------------------------- pallas_call wiring -----------------------------

def _build_calls(N, H, W):
    Lo = N * (H // 2) * (W // 2)
    vmem = pl.BlockSpec(memory_space=pltpu.MemorySpace.VMEM)
    # Post-rewrite working set is O(L) (< 2 MiB here): 32 MiB leaves headroom on
    # v5e/v6e (128 MiB physical) and is only half of v7x's 64 MiB physical VMEM.
    cparams = pltpu.CompilerParams(vmem_limit_bytes=32 * 1024 * 1024)

    targets_call = pl.pallas_call(
        functools.partial(_targets_kernel, N=N, H=H, W=W,
                          clamp_max=GRAM_MATRIX_CLAMP_MAX),
        out_shape=(
            jax.ShapeDtypeStruct((N * _C0, N * _C0), jnp.float32),   # style Gram @ tap 0
            jax.ShapeDtypeStruct((N * _C1, N * _C1), jnp.float32),   # style Gram @ tap 1
            jax.ShapeDtypeStruct((_C2, Lo), jnp.float32),            # content feats @ tap 2
        ),
        in_specs=[vmem] * 13,
        out_specs=(vmem, vmem, vmem),
        compiler_params=cparams,
    )
    losses_call = pl.pallas_call(
        functools.partial(_losses_kernel, N=N, H=H, W=W,
                          clamp_max=GRAM_MATRIX_CLAMP_MAX),
        out_shape=jax.ShapeDtypeStruct((1, 128), jnp.float32),       # packed losses
        in_specs=[vmem] * 15,
        out_specs=vmem,
        compiler_params=cparams,
    )
    # TODO(synk): at real VGG19 feature-map sizes add a spatial-tile grid
    # (128-multiple lane tiles, dimension_semantics=("parallel", ...)) to use
    # v7x's second TensorCore; at 16x16 one grid point is overhead-optimal.

    @jax.jit
    def targets_fn(style_nchw, content_nchw, params, consts):
        return targets_call(_to_cf(style_nchw, _CIN0_PAD),
                            _to_cf(content_nchw, _CIN0_PAD), *params, *consts)

    @jax.jit
    def losses_fn(x_nchw, params, consts, g0t, g1t, a2t):
        return losses_call(_to_cf(x_nchw, _CIN0_PAD), *params, *consts,
                           g0t, g1t, a2t)

    return targets_fn, losses_fn


# --------------------------------- the model ---------------------------------

class StyleContentModelPallas:
    """Pallas re-implementation of StyleContentModel (synthetic backbone).

    # TODO(synk): the pretrained torchvision VGG19 IMAGENET1K_V1 weights cannot
    # be loaded here; a deterministic random VGG-like stack with identical
    # block slicing, gram_matrix and MSE-loss semantics is used instead.
    """

    def __init__(self, key, *, N=2, H=16, W=16):
        assert H % 2 == 0 and W % 2 == 0, "2x2 maxpool expects even spatial dims"
        self.N, self.H, self.W = N, H, W
        k = jax.random.split(key, 8)

        def conv_params(kw, kb, cin, cout, cin_pad):
            w = jax.random.normal(kw, (3, 3, cin, cout), jnp.float32) * 0.1
            b = jax.random.normal(kb, (cout,), jnp.float32) * 0.05
            if cin_pad > cin:
                w = jnp.pad(w, ((0, 0), (0, 0), (0, cin_pad - cin), (0, 0)))
            # HWIO (3,3,cin_pad,cout) -> (cout, 9*cin_pad), row-major over
            # (tap, cin) to match the in-kernel im2col stacking; bf16 MXU
            # operand (accumulation stays f32 via preferred_element_type).
            w2d = jnp.transpose(w, (3, 0, 1, 2)).reshape(cout, 9 * cin_pad)
            return w2d.astype(jnp.bfloat16), b.reshape(cout, 1)

        self.params = (
            *conv_params(k[0], k[1], 3, _C0, _CIN0_PAD),   # layer 0
            *conv_params(k[2], k[3], _C0, _C0, _C0),       # layer 2
            *conv_params(k[4], k[5], _C0, _C1, _C0),       # layer 5
            *conv_params(k[6], k[7], _C1, _C2, _C1),       # layer 7
        )
        self.consts = (_conv_masks(N, H, W),               # (9, N*H*W)
                       _conv_masks(N, H // 2, W // 2),     # (9, N*Ho*Wo)
                       _pool_selector(N, H, W))            # (N*H*W, N*Ho*Wo)
        self._targets_fn, self._losses_fn = _build_calls(N, H, W)
        self.style_targets = None
        self.content_targets = None

    def set_targets(self, style_img, content_img):
        g0, g1, a2 = self._targets_fn(style_img, content_img, self.params, self.consts)
        self.style_targets = [g0, g1]
        self.content_targets = [a2]

    def forward(self, x):
        losses = self._losses_fn(x, self.params, self.consts,
                                 self.style_targets[0], self.style_targets[1],
                                 self.content_targets[0])
        return [losses[0, 0], losses[0, 1]], [losses[0, 2]]


# ----------------------------------- main -------------------------------------

if __name__ == "__main__":
    key = jax.random.PRNGKey(0)
    k_param, k_style, k_content, k_x = jax.random.split(key, 4)

    model = StyleContentModelPallas(k_param)

    # PyTorch-style NCHW inputs (batch=2, channels=3 RGB, spatial 16x16).
    style_img = jax.random.normal(k_style, (2, 3, 16, 16), jnp.float32)
    content_img = jax.random.normal(k_content, (2, 3, 16, 16), jnp.float32)
    x = jax.random.normal(k_x, (2, 3, 16, 16), jnp.float32)

    model.set_targets(style_img, content_img)
    style_losses, content_losses = model.forward(x)

    for t in style_losses + content_losses:
        jax.block_until_ready(t)

    print("KERNEL_OK")
</pallas_src>

<mosaic_0001>
module attributes {stable_mosaic.version = 11 : i64} {
  func.func @_targets_kernel(%arg0: memref<8x512xf32, #tpu.memory_space<vmem>>, %arg1: memref<8x512xf32, #tpu.memory_space<vmem>>, %arg2: memref<8x72xbf16, #tpu.memory_space<vmem>>, %arg3: memref<8x1xf32, #tpu.memory_space<vmem>>, %arg4: memref<8x72xbf16, #tpu.memory_space<vmem>>, %arg5: memref<8x1xf32, #tpu.memory_space<vmem>>, %arg6: memref<16x72xbf16, #tpu.memory_space<vmem>>, %arg7: memref<16x1xf32, #tpu.memory_space<vmem>>, %arg8: memref<16x144xbf16, #tpu.memory_space<vmem>>, %arg9: memref<16x1xf32, #tpu.memory_space<vmem>>, %arg10: memref<9x512xf32, #tpu.memory_space<vmem>>, %arg11: memref<9x128xf32, #tpu.memory_space<vmem>>, %arg12: memref<512x128xf32, #tpu.memory_space<vmem>>, %arg13: memref<16x16xf32, #tpu.memory_space<vmem>>, %arg14: memref<32x32xf32, #tpu.memory_space<vmem>>, %arg15: memref<16x128xf32, #tpu.memory_space<vmem>>) attributes {dimension_semantics = [], scalar_prefetch = 0 : i64, scratch_operands = 0 : i64, tpu.core_type = #tpu.core_type<tc>} {
    %c0 = arith.constant 0 : index
    %c0_0 = arith.constant 0 : index
    %0 = vector.load %arg0[%c0, %c0_0] : memref<8x512xf32, #tpu.memory_space<vmem>>, vector<8x512xf32>
    %c17_i32 = arith.constant 17 : i32
    %1 = tpu.dynamic_rotate %0 by %c17_i32 dim 1 : vector<8x512xf32>, i32 -> vector<8x512xf32>
    %c0_1 = arith.constant 0 : index
    %c0_2 = arith.constant 0 : index
    %2 = vector.load %arg10[%c0_1, %c0_2] : memref<9x512xf32, #tpu.memory_space<vmem>>, vector<1x512xf32>
    %3 = vector.broadcast %2 : vector<1x512xf32> to vector<8x512xf32>
    %4 = arith.mulf %1, %3 : vector<8x512xf32>
    %c16_i32 = arith.constant 16 : i32
    %5 = tpu.dynamic_rotate %0 by %c16_i32 dim 1 : vector<8x512xf32>, i32 -> vector<8x512xf32>
    %c1 = arith.constant 1 : index
    %c0_3 = arith.constant 0 : index
    %6 = vector.load %arg10[%c1, %c0_3] : memref<9x512xf32, #tpu.memory_space<vmem>>, vector<1x512xf32>
    %7 = vector.broadcast %6 : vector<1x512xf32> to vector<8x512xf32>
    %8 = arith.mulf %5, %7 : vector<8x512xf32>
    %c15_i32 = arith.constant 15 : i32
    %9 = tpu.dynamic_rotate %0 by %c15_i32 dim 1 : vector<8x512xf32>, i32 -> vector<8x512xf32>
    %c2 = arith.constant 2 : index
    %c0_4 = arith.constant 0 : index
    %10 = vector.load %arg10[%c2, %c0_4] : memref<9x512xf32, #tpu.memory_space<vmem>>, vector<1x512xf32>
    %11 = vector.broadcast %10 : vector<1x512xf32> to vector<8x512xf32>
    %12 = arith.mulf %9, %11 : vector<8x512xf32>
    %c1_i32 = arith.constant 1 : i32
    %13 = tpu.dynamic_rotate %0 by %c1_i32 dim 1 : vector<8x512xf32>, i32 -> vector<8x512xf32>
    %c3 = arith.constant 3 : index
    %c0_5 = arith.constant 0 : index
    %14 = vector.load %arg10[%c3, %c0_5] : memref<9x512xf32, #tpu.memory_space<vmem>>, vector<1x512xf32>
    %15 = vector.broadcast %14 : vector<1x512xf32> to vector<8x512xf32>
    %16 = arith.mulf %13, %15 : vector<8x512xf32>
    %c4 = arith.constant 4 : index
    %c0_6 = arith.constant 0 : index
    %17 = vector.load %arg10[%c4, %c0_6] : memref<9x512xf32, #tpu.memory_space<vmem>>, vector<1x512xf32>
    %18 = vector.broadcast %17 : vector<1x512xf32> to vector<8x512xf32>
    %19 = arith.mulf %0, %18 : vector<8x512xf32>
    %c511_i32 = arith.constant 511 : i32
    %20 = tpu.dynamic_rotate %0 by %c511_i32 dim 1 : vector<8x512xf32>, i32 -> vector<8x512xf32>
    %c5 = arith.constant 5 : index
    %c0_7 = arith.constant 0 : index
    %21 = vector.load %arg10[%c5, %c0_7] : memref<9x512xf32, #tpu.memory_space<vmem>>, vector<1x512xf32>
    %22 = vector.broadcast %21 : vector<1x512xf32> to vector<8x512xf32>
    %23 = arith.mulf %20, %22 : vector<8x512xf32>
    %c497_i32 = arith.constant 497 : i32
    %24 = tpu.dynamic_rotate %0 by %c497_i32 dim 1 : vector<8x512xf32>, i32 -> vector<8x512xf32>
    %c6 = arith.constant 6 : index
    %c0_8 = arith.constant 0 : index
    %25 = vector.load %arg10[%c6, %c0_8] : memref<9x512xf32, #tpu.memory_space<vmem>>, vector<1x512xf32>
    %26 = vector.broadcast %25 : vector<1x512xf32> to vector<8x512xf32>
    %27 = arith.mulf %24, %26 : vector<8x512xf32>
    %c496_i32 = arith.constant 496 : i32
    %28 = tpu.dynamic_rotate %0 by %c496_i32 dim 1 : vector<8x512xf32>, i32 -> vector<8x512xf32>
    %c7 = arith.constant 7 : index
    %c0_9 = arith.constant 0 : index
    %29 = vector.load %arg10[%c7, %c0_9] : memref<9x512xf32, #tpu.memory_space<vmem>>, vector<1x512xf32>
    %30 = vector.broadcast %29 : vector<1x512xf32> to vector<8x512xf32>
    %31 = arith.mulf %28, %30 : vector<8x512xf32>
    %c495_i32 = arith.constant 495 : i32
    %32 = tpu.dynamic_rotate %0 by %c495_i32 dim 1 : vector<8x512xf32>, i32 -> vector<8x512xf32>
    %c8 = arith.constant 8 : index
    %c0_10 = arith.constant 0 : index
    %33 = vector.load %arg10[%c8, %c0_10] : memref<9x512xf32, #tpu.memory_space<vmem>>, vector<1x512xf32>
    %34 = vector.broadcast %33 : vector<1x512xf32> to vector<8x512xf32>
    %35 = arith.mulf %32, %34 : vector<8x512xf32>
    %36 = tpu.concatenate %4, %8, %12, %16, %19, %23, %27, %31, %35 in 0 : vector<8x512xf32>, vector<8x512xf32>, vector<8x512xf32>, vector<8x512xf32>, vector<8x512xf32>, vector<8x512xf32>, vector<8x512xf32>, vector<8x512xf32>, vector<8x512xf32> -> vector<72x512xf32>
    %37 = arith.truncf %36 : vector<72x512xf32> to vector<72x512xbf16>
    %c0_11 = arith.constant 0 : index
    %c0_12 = arith.constant 0 : index
    %38 = vector.load %arg2[%c0_11, %c0_12] : memref<8x72xbf16, #tpu.memory_space<vmem>>, vector<8x72xbf16>
    %cst = arith.constant dense<0.000000e+00> : vector<8x512xf32>
    %39 = tpu.matmul %38, %37, %cst {dimension_numbers = #tpu.dot_dimension_numbers<[1], [0], [0], [1], [0, 0, 1, 1], [], []>} : vector<8x72xbf16>, vector<72x512xbf16>, vector<8x512xf32> -> vector<8x512xf32>
    %c0_13 = arith.constant 0 : index
    %c0_14 = arith.constant 0 : index
    %40 = vector.load %arg3[%c0_13, %c0_14] : memref<8x1xf32, #tpu.memory_space<vmem>>, vector<8x1xf32>
    %41 = vector.broadcast %40 : vector<8x1xf32> to vector<8x512xf32>
    %42 = arith.addf %39, %41 : vector<8x512xf32>
    %cst_15 = arith.constant 0.000000e+00 : f32
    %43 = vector.broadcast %cst_15 : f32 to vector<8x512xf32>
    %44 = arith.maximumf %42, %43 : vector<8x512xf32>
    %c17_i32_16 = arith.constant 17 : i32
    %45 = tpu.dynamic_rotate %44 by %c17_i32_16 dim 1 : vector<8x512xf32>, i32 -> vector<8x512xf32>
    %c0_17 = arith.constant 0 : index
    %c0_18 = arith.constant 0 : index
    %46 = vector.load %arg10[%c0_17, %c0_18] : memref<9x512xf32, #tpu.memory_space<vmem>>, vector<1x512xf32>
    %47 = vector.broadcast %46 : vector<1x512xf32> to vector<8x512xf32>
    %48 = arith.mulf %45, %47 : vector<8x512xf32>
    %c16_i32_19 = arith.constant 16 : i32
    %49 = tpu.dynamic_rotate %44 by %c16_i32_19 dim 1 : vector<8x512xf32>, i32 -> vector<8x512xf32>
    %c1_20 = arith.constant 1 : index
    %c0_21 = arith.constant 0 : index
    %50 = vector.load %arg10[%c1_20, %c0_21] : memref<9x512xf32, #tpu.memory_space<vmem>>, vector<1x512xf32>
    %51 = vector.broadcast %50 : vector<1x512xf32> to vector<8x512xf32>
    %52 = arith.mulf %49, %51 : vector<8x512xf32>
    %c15_i32_22 = arith.constant 15 : i32
    %53 = tpu.dynamic_rotate %44 by %c15_i32_22 dim 1 : vector<8x512xf32>, i32 -> vector<8x512xf32>
    %c2_23 = arith.constant 2 : index
    %c0_24 = arith.constant 0 : index
    %54 = vector.load %arg10[%c2_23, %c0_24] : memref<9x512xf32, #tpu.memory_space<vmem>>, vector<1x512xf32>
    %55 = vector.broadcast %54 : vector<1x512xf32> to vector<8x512xf32>
    %56 = arith.mulf %53, %55 : vector<8x512xf32>
    %c1_i32_25 = arith.constant 1 : i32
    %57 = tpu.dynamic_rotate %44 by %c1_i32_25 dim 1 : vector<8x512xf32>, i32 -> vector<8x512xf32>
    %c3_26 = arith.constant 3 : index
    %c0_27 = arith.constant 0 : index
    %58 = vector.load %arg10[%c3_26, %c0_27] : memref<9x512xf32, #tpu.memory_space<vmem>>, vector<1x512xf32>
    %59 = vector.broadcast %58 : vector<1x512xf32> to vector<8x512xf32>
    %60 = arith.mulf %57, %59 : vector<8x512xf32>
    %c4_28 = arith.constant 4 : index
    %c0_29 = arith.constant 0 : index
    %61 = vector.load %arg10[%c4_28, %c0_29] : memref<9x512xf32, #tpu.memory_space<vmem>>, vector<1x512xf32>
    %62 = vector.broadcast %61 : vector<1x512xf32> to vector<8x512xf32>
    %63 = arith.mulf %44, %62 : vector<8x512xf32>
    %c511_i32_30 = arith.constant 511 : i32
    %64 = tpu.dynamic_rotate %44 by %c511_i32_30 dim 1 : vector<8x512xf32>, i32 -> vector<8x512xf32>
    %c5_31 = arith.constant 5 : index
    %c0_32 = arith.constant 0 : index
    %65 = vector.load %arg10[%c5_31, %c0_32] : memref<9x512xf32, #tpu.memory_space<vmem>>, vector<1x512xf32>
    %66 = vector.broadcast %65 : vector<1x512xf32> to vector<8x512xf32>
    %67 = arith.mulf %64, %66 : vector<8x512xf32>
    %c497_i32_33 = arith.constant 497 : i32
    %68 = tpu.dynamic_rotate %44 by %c497_i32_33 dim 1 : vector<8x512xf32>, i32 -> vector<8x512xf32>
    %c6_34 = arith.constant 6 : index
    %c0_35 = arith.constant 0 : index
    %69 = vector.load %arg10[%c6_34, %c0_35] : memref<9x512xf32, #tpu.memory_space<vmem>>, vector<1x512xf32>
    %70 = vector.broadcast %69 : vector<1x512xf32> to vector<8x512xf32>
    %71 = arith.mulf %68, %70 : vector<8x512xf32>
    %c496_i32_36 = arith.constant 496 : i32
    %72 = tpu.dynamic_rotate %44 by %c496_i32_36 dim 1 : vector<8x512xf32>, i32 -> vector<8x512xf32>
    %c7_37 = arith.constant 7 : index
    %c0_38 = arith.constant 0 : index
    %73 = vector.load %arg10[%c7_37, %c0_38] : memref<9x512xf32, #tpu.memory_space<vmem>>, vector<1x512xf32>
    %74 = vector.broadcast %73 : vector<1x512xf32> to vector<8x512xf32>
    %75 = arith.mulf %72, %74 : vector<8x512xf32>
    %c495_i32_39 = arith.constant 495 : i32
    %76 = tpu.dynamic_rotate %44 by %c495_i32_39 dim 1 : vector<8x512xf32>, i32 -> vector<8x512xf32>
    %c8_40 = arith.constant 8 : index
    %c0_41 = arith.constant 0 : index
    %77 = vector.load %arg10[%c8_40, %c0_41] : memref<9x512xf32, #tpu.memory_space<vmem>>, vector<1x512xf32>
    %78 = vector.broadcast %77 : vector<1x512xf32> to vector<8x512xf32>
    %79 = arith.mulf %76, %78 : vector<8x512xf32>
    %80 = tpu.concatenate %48, %52, %56, %60, %63, %67, %71, %75, %79 in 0 : vector<8x512xf32>, vector<8x512xf32>, vector<8x512xf32>, vector<8x512xf32>, vector<8x512xf32>, vector<8x512xf32>, vector<8x512xf32>, vector<8x512xf32>, vector<8x512xf32> -> vector<72x512xf32>
    %81 = arith.truncf %80 : vector<72x512xf32> to vector<72x512xbf16>
    %c0_42 = arith.constant 0 : index
    %c0_43 = arith.constant 0 : index
    %82 = vector.load %arg4[%c0_42, %c0_43] : memref<8x72xbf16, #tpu.memory_space<vmem>>, vector<8x72xbf16>
    %cst_44 = arith.constant dense<0.000000e+00> : vector<8x512xf32>
    %83 = tpu.matmul %82, %81, %cst_44 {dimension_numbers = #tpu.dot_dimension_numbers<[1], [0], [0], [1], [0, 0, 1, 1], [], []>} : vector<8x72xbf16>, vector<72x512xbf16>, vector<8x512xf32> -> vector<8x512xf32>
    %c0_45 = arith.constant 0 : index
    %c0_46 = arith.constant 0 : index
    %84 = vector.load %arg5[%c0_45, %c0_46] : memref<8x1xf32, #tpu.memory_space<vmem>>, vector<8x1xf32>
    %85 = vector.broadcast %84 : vector<8x1xf32> to vector<8x512xf32>
    %86 = arith.addf %83, %85 : vector<8x512xf32>
    %cst_47 = arith.constant 0.000000e+00 : f32
    %87 = vector.broadcast %cst_47 : f32 to vector<8x512xf32>
    %88 = arith.maximumf %86, %87 : vector<8x512xf32>
    %c511_i32_48 = arith.constant 511 : i32
    %89 = tpu.dynamic_rotate %88 by %c511_i32_48 dim 1 : vector<8x512xf32>, i32 -> vector<8x512xf32>
    %90 = arith.maximumf %88, %89 : vector<8x512xf32>
    %c496_i32_49 = arith.constant 496 : i32
    %91 = tpu.dynamic_rotate %90 by %c496_i32_49 dim 1 : vector<8x512xf32>, i32 -> vector<8x512xf32>
    %92 = arith.maximumf %90, %91 : vector<8x512xf32>
    %c0_50 = arith.constant 0 : index
    %c0_51 = arith.constant 0 : index
    %93 = vector.load %arg12[%c0_50, %c0_51] : memref<512x128xf32, #tpu.memory_space<vmem>>, vector<512x128xf32>
    %cst_52 = arith.constant dense<0.000000e+00> : vector<8x128xf32>
    %94 = tpu.matmul %92, %93, %cst_52 {dimension_numbers = #tpu.dot_dimension_numbers<[1], [0], [0], [1], [0, 0, 1, 1], [], []>} : vector<8x512xf32>, vector<512x128xf32>, vector<8x128xf32> -> vector<8x128xf32>
    %c9_i32 = arith.constant 9 : i32
    %95 = tpu.dynamic_rotate %94 by %c9_i32 dim 1 : vector<8x128xf32>, i32 -> vector<8x128xf32>
    %c0_53 = arith.constant 0 : index
    %c0_54 = arith.constant 0 : index
    %96 = vector.load %arg11[%c0_53, %c0_54] : memref<9x128xf32, #tpu.memory_space<vmem>>, vector<1x128xf32>
    %97 = vector.broadcast %96 : vector<1x128xf32> to vector<8x128xf32>
    %98 = arith.mulf %95, %97 : vector<8x128xf32>
    %c8_i32 = arith.constant 8 : i32
    %99 = tpu.dynamic_rotate %94 by %c8_i32 dim 1 : vector<8x128xf32>, i32 -> vector<8x128xf32>
    %c1_55 = arith.constant 1 : index
    %c0_56 = arith.constant 0 : index
    %100 = vector.load %arg11[%c1_55, %c0_56] : memref<9x128xf32, #tpu.memory_space<vmem>>, vector<1x128xf32>
    %101 = vector.broadcast %100 : vector<1x128xf32> to vector<8x128xf32>
    %102 = arith.mulf %99, %101 : vector<8x128xf32>
    %c7_i32 = arith.constant 7 : i32
    %103 = tpu.dynamic_rotate %94 by %c7_i32 dim 1 : vector<8x128xf32>, i32 -> vector<8x128xf32>
    %c2_57 = arith.constant 2 : index
    %c0_58 = arith.constant 0 : index
    %104 = vector.load %arg11[%c2_57, %c0_58] : memref<9x128xf32, #tpu.memory_space<vmem>>, vector<1x128xf32>
    %105 = vector.broadcast %104 : vector<1x128xf32> to vector<8x128xf32>
    %106 = arith.mulf %103, %105 : vector<8x128xf32>
    %c1_i32_59 = arith.constant 1 : i32
    %107 = tpu.dynamic_rotate %94 by %c1_i32_59 dim 1 : vector<8x128xf32>, i32 -> vector<8x128xf32>
    %c3_60 = arith.constant 3 : index
    %c0_61 = arith.constant 0 : index
    %108 = vector.load %arg11[%c3_60, %c0_61] : memref<9x128xf32, #tpu.memory_space<vmem>>, vector<1x128xf32>
    %109 = vector.broadcast %108 : vector<1x128xf32> to vector<8x128xf32>
    %110 = arith.mulf %107, %109 : vector<8x128xf32>
    %c4_62 = arith.constant 4 : index
    %c0_63 = arith.constant 0 : index
    %111 = vector.load %arg11[%c4_62, %c0_63] : memref<9x128xf32, #tpu.memory_space<vmem>>, vector<1x128xf32>
    %112 = vector.broadcast %111 : vector<1x128xf32> to vector<8x128xf32>
    %113 = arith.mulf %94, %112 : vector<8x128xf32>
    %c127_i32 = arith.constant 127 : i32
    %114 = tpu.dynamic_rotate %94 by %c127_i32 dim 1 : vector<8x128xf32>, i32 -> vector<8x128xf32>
    %c5_64 = arith.constant 5 : index
    %c0_65 = arith.constant 0 : index
    %115 = vector.load %arg11[%c5_64, %c0_65] : memref<9x128xf32, #tpu.memory_space<vmem>>, vector<1x128xf32>
    %116 = vector.broadcast %115 : vector<1x128xf32> to vector<8x128xf32>
    %117 = arith.mulf %114, %116 : vector<8x128xf32>
    %c121_i32 = arith.constant 121 : i32
    %118 = tpu.dynamic_rotate %94 by %c121_i32 dim 1 : vector<8x128xf32>, i32 -> vector<8x128xf32>
    %c6_66 = arith.constant 6 : index
    %c0_67 = arith.constant 0 : index
    %119 = vector.load %arg11[%c6_66, %c0_67] : memref<9x128xf32, #tpu.memory_space<vmem>>, vector<1x128xf32>
    %120 = vector.broadcast %119 : vector<1x128xf32> to vector<8x128xf32>
    %121 = arith.mulf %118, %120 : vector<8x128xf32>
    %c120_i32 = arith.constant 120 : i32
    %122 = tpu.dynamic_rotate %94 by %c120_i32 dim 1 : vector<8x128xf32>, i32 -> vector<8x128xf32>
    %c7_68 = arith.constant 7 : index
    %c0_69 = arith.constant 0 : index
    %123 = vector.load %arg11[%c7_68, %c0_69] : memref<9x128xf32, #tpu.memory_space<vmem>>, vector<1x128xf32>
    %124 = vector.broadcast %123 : vector<1x128xf32> to vector<8x128xf32>
    %125 = arith.mulf %122, %124 : vector<8x128xf32>
    %c119_i32 = arith.constant 119 : i32
    %126 = tpu.dynamic_rotate %94 by %c119_i32 dim 1 : vector<8x128xf32>, i32 -> vector<8x128xf32>
    %c8_70 = arith.constant 8 : index
    %c0_71 = arith.constant 0 : index
    %127 = vector.load %arg11[%c8_70, %c0_71] : memref<9x128xf32, #tpu.memory_space<vmem>>, vector<1x128xf32>
    %128 = vector.broadcast %127 : vector<1x128xf32> to vector<8x128xf32>
    %129 = arith.mulf %126, %128 : vector<8x128xf32>
    %130 = tpu.concatenate %98, %102, %106, %110, %113, %117, %121, %125, %129 in 0 : vector<8x128xf32>, vector<8x128xf32>, vector<8x128xf32>, vector<8x128xf32>, vector<8x128xf32>, vector<8x128xf32>, vector<8x128xf32>, vector<8x128xf32>, vector<8x128xf32> -> vector<72x128xf32>
    %131 = arith.truncf %130 : vector<72x128xf32> to vector<72x128xbf16>
    %c0_72 = arith.constant 0 : index
    %c0_73 = arith.constant 0 : index
    %132 = vector.load %arg6[%c0_72, %c0_73] : memref<16x72xbf16, #tpu.memory_space<vmem>>, vector<16x72xbf16>
    %cst_74 = arith.constant dense<0.000000e+00> : vector<16x128xf32>
    %133 = tpu.matmul %132, %131, %cst_74 {dimension_numbers = #tpu.dot_dimension_numbers<[1], [0], [0], [1], [0, 0, 1, 1], [], []>} : vector<16x72xbf16>, vector<72x128xbf16>, vector<16x128xf32> -> vector<16x128xf32>
    %c0_75 = arith.constant 0 : index
    %c0_76 = arith.constant 0 : index
    %134 = vector.load %arg7[%c0_75, %c0_76] : memref<16x1xf32, #tpu.memory_space<vmem>>, vector<16x1xf32>
    %135 = vector.broadcast %134 : vector<16x1xf32> to vector<16x128xf32>
    %136 = arith.addf %133, %135 : vector<16x128xf32>
    %137 = vector.extract_strided_slice %42 {offsets = [0, 0], sizes = [8, 256], strides = [1, 1]} : vector<8x512xf32> to vector<8x256xf32>
    %138 = vector.extract_strided_slice %42 {offsets = [0, 256], sizes = [8, 256], strides = [1, 1]} : vector<8x512xf32> to vector<8x256xf32>
    %139 = tpu.concatenate %137, %138 in 0 : vector<8x256xf32>, vector<8x256xf32> -> vector<16x256xf32>
    %cst_77 = arith.constant dense<0.000000e+00> : vector<16x16xf32>
    %140 = tpu.matmul %139, %139, %cst_77 {dimension_numbers = #tpu.dot_dimension_numbers<[1], [1], [0], [0], [0, 0, 1, 0], [], []>} : vector<16x256xf32>, vector<16x256xf32>, vector<16x16xf32> -> vector<16x16xf32>
    %cst_78 = arith.constant 5.000000e+05 : f32
    %141 = vector.broadcast %cst_78 : f32 to vector<16x16xf32>
    %142 = arith.minimumf %140, %141 : vector<16x16xf32>
    %cst_79 = arith.constant 2.44140625E-4 : f32
    %143 = vector.broadcast %cst_79 : f32 to vector<16x16xf32>
    %144 = arith.mulf %142, %143 : vector<16x16xf32>
    %c0_80 = arith.constant 0 : index
    %c0_81 = arith.constant 0 : index
    %145 = vector.load %arg13[%c0_80, %c0_81] : memref<16x16xf32, #tpu.memory_space<vmem>>, vector<16x16xf32>
    tpu.vector_store %arg13[%c0_80, %c0_81], %144 {strides = array<i32>} : memref<16x16xf32, #tpu.memory_space<vmem>>, vector<16x16xf32>,
    %146 = vector.extract_strided_slice %136 {offsets = [0, 0], sizes = [16, 64], strides = [1, 1]} : vector<16x128xf32> to vector<16x64xf32>
    %147 = vector.extract_strided_slice %136 {offsets = [0, 64], sizes = [16, 64], strides = [1, 1]} : vector<16x128xf32> to vector<16x64xf32>
    %148 = tpu.concatenate %146, %147 in 0 : vector<16x64xf32>, vector<16x64xf32> -> vector<32x64xf32>
    %cst_82 = arith.constant dense<0.000000e+00> : vector<32x32xf32>
    %149 = tpu.matmul %148, %148, %cst_82 {dimension_numbers = #tpu.dot_dimension_numbers<[1], [1], [0], [0], [0, 0, 1, 0], [], []>} : vector<32x64xf32>, vector<32x64xf32>, vector<32x32xf32> -> vector<32x32xf32>
    %cst_83 = arith.constant 5.000000e+05 : f32
    %150 = vector.broadcast %cst_83 : f32 to vector<32x32xf32>
    %151 = arith.minimumf %149, %150 : vector<32x32xf32>
    %cst_84 = arith.constant 4.8828125E-4 : f32
    %152 = vector.broadcast %cst_84 : f32 to vector<32x32xf32>
    %153 = arith.mulf %151, %152 : vector<32x32xf32>
    %c0_85 = arith.constant 0 : index
    %c0_86 = arith.constant 0 : index
    %154 = vector.load %arg14[%c0_85, %c0_86] : memref<32x32xf32, #tpu.memory_space<vmem>>, vector<32x32xf32>
    tpu.vector_store %arg14[%c0_85, %c0_86], %153 {strides = array<i32>} : memref<32x32xf32, #tpu.memory_space<vmem>>, vector<32x32xf32>,
    %c0_87 = arith.constant 0 : index
    %c0_88 = arith.constant 0 : index
    %155 = vector.load %arg1[%c0_87, %c0_88] : memref<8x512xf32, #tpu.memory_space<vmem>>, vector<8x512xf32>
    %c17_i32_89 = arith.constant 17 : i32
    %156 = tpu.dynamic_rotate %155 by %c17_i32_89 dim 1 : vector<8x512xf32>, i32 -> vector<8x512xf32>
    %c0_90 = arith.constant 0 : index
    %c0_91 = arith.constant 0 : index
    %157 = vector.load %arg10[%c0_90, %c0_91] : memref<9x512xf32, #tpu.memory_space<vmem>>, vector<1x512xf32>
    %158 = vector.broadcast %157 : vector<1x512xf32> to vector<8x512xf32>
    %159 = arith.mulf %156, %158 : vector<8x512xf32>
    %c16_i32_92 = arith.constant 16 : i32
    %160 = tpu.dynamic_rotate %155 by %c16_i32_92 dim 1 : vector<8x512xf32>, i32 -> vector<8x512xf32>
    %c1_93 = arith.constant 1 : index
    %c0_94 = arith.constant 0 : index
    %161 = vector.load %arg10[%c1_93, %c0_94] : memref<9x512xf32, #tpu.memory_space<vmem>>, vector<1x512xf32>
    %162 = vector.broadcast %161 : vector<1x512xf32> to vector<8x512xf32>
    %163 = arith.mulf %160, %162 : vector<8x512xf32>
    %c15_i32_95 = arith.constant 15 : i32
    %164 = tpu.dynamic_rotate %155 by %c15_i32_95 dim 1 : vector<8x512xf32>, i32 -> vector<8x512xf32>
    %c2_96 = arith.constant 2 : index
    %c0_97 = arith.constant 0 : index
    %165 = vector.load %arg10[%c2_96, %c0_97] : memref<9x512xf32, #tpu.memory_space<vmem>>, vector<1x512xf32>
    %166 = vector.broadcast %165 : vector<1x512xf32> to vector<8x512xf32>
    %167 = arith.mulf %164, %166 : vector<8x512xf32>
    %c1_i32_98 = arith.constant 1 : i32
    %168 = tpu.dynamic_rotate %155 by %c1_i32_98 dim 1 : vector<8x512xf32>, i32 -> vector<8x512xf32>
    %c3_99 = arith.constant 3 : index
    %c0_100 = arith.constant 0 : index
    %169 = vector.load %arg10[%c3_99, %c0_100] : memref<9x512xf32, #tpu.memory_space<vmem>>, vector<1x512xf32>
    %170 = vector.broadcast %169 : vector<1x512xf32> to vector<8x512xf32>
    %171 = arith.mulf %168, %170 : vector<8x512xf32>
    %c4_101 = arith.constant 4 : index
    %c0_102 = arith.constant 0 : index
    %172 = vector.load %arg10[%c4_101, %c0_102] : memref<9x512xf32, #tpu.memory_space<vmem>>, vector<1x512xf32>
    %173 = vector.broadcast %172 : vector<1x512xf32> to vector<8x512xf32>
    %174 = arith.mulf %155, %173 : vector<8x512xf32>
    %c511_i32_103 = arith.constant 511 : i32
    %175 = tpu.dynamic_rotate %155 by %c511_i32_103 dim 1 : vector<8x512xf32>, i32 -> vector<8x512xf32>
    %c5_104 = arith.constant 5 : index
    %c0_105 = arith.constant 0 : index
    %176 = vector.load %arg10[%c5_104, %c0_105] : memref<9x512xf32, #tpu.memory_space<vmem>>, vector<1x512xf32>
    %177 = vector.broadcast %176 : vector<1x512xf32> to vector<8x512xf32>
    %178 = arith.mulf %175, %177 : vector<8x512xf32>
    %c497_i32_106 = arith.constant 497 : i32
    %179 = tpu.dynamic_rotate %155 by %c497_i32_106 dim 1 : vector<8x512xf32>, i32 -> vector<8x512xf32>
    %c6_107 = arith.constant 6 : index
    %c0_108 = arith.constant 0 : index
    %180 = vector.load %arg10[%c6_107, %c0_108] : memref<9x512xf32, #tpu.memory_space<vmem>>, vector<1x512xf32>
    %181 = vector.broadcast %180 : vector<1x512xf32> to vector<8x512xf32>
    %182 = arith.mulf %179, %181 : vector<8x512xf32>
    %c496_i32_109 = arith.constant 496 : i32
    %183 = tpu.dynamic_rotate %155 by %c496_i32_109 dim 1 : vector<8x512xf32>, i32 -> vector<8x512xf32>
    %c7_110 = arith.constant 7 : index
    %c0_111 = arith.constant 0 : index
    %184 = vector.load %arg10[%c7_110, %c0_111] : memref<9x512xf32, #tpu.memory_space<vmem>>, vector<1x512xf32>
    %185 = vector.broadcast %184 : vector<1x512xf32> to vector<8x512xf32>
    %186 = arith.mulf %183, %185 : vector<8x512xf32>
    %c495_i32_112 = arith.constant 495 : i32
    %187 = tpu.dynamic_rotate %155 by %c495_i32_112 dim 1 : vector<8x512xf32>, i32 -> vector<8x512xf32>
    %c8_113 = arith.constant 8 : index
    %c0_114 = arith.constant 0 : index
    %188 = vector.load %arg10[%c8_113, %c0_114] : memref<9x512xf32, #tpu.memory_space<vmem>>, vector<1x512xf32>
    %189 = vector.broadcast %188 : vector<1x512xf32> to vector<8x512xf32>
    %190 = arith.mulf %187, %189 : vector<8x512xf32>
    %191 = tpu.concatenate %159, %163, %167, %171, %174, %178, %182, %186, %190 in 0 : vector<8x512xf32>, vector<8x512xf32>, vector<8x512xf32>, vector<8x512xf32>, vector<8x512xf32>, vector<8x512xf32>, vector<8x512xf32>, vector<8x512xf32>, vector<8x512xf32> -> vector<72x512xf32>
    %192 = arith.truncf %191 : vector<72x512xf32> to vector<72x512xbf16>
    %c0_115 = arith.constant 0 : index
    %c0_116 = arith.constant 0 : index
    %193 = vector.load %arg2[%c0_115, %c0_116] : memref<8x72xbf16, #tpu.memory_space<vmem>>, vector<8x72xbf16>
    %cst_117 = arith.constant dense<0.000000e+00> : vector<8x512xf32>
    %194 = tpu.matmul %193, %192, %cst_117 {dimension_numbers = #tpu.dot_dimension_numbers<[1], [0], [0], [1], [0, 0, 1, 1], [], []>} : vector<8x72xbf16>, vector<72x512xbf16>, vector<8x512xf32> -> vector<8x512xf32>
    %c0_118 = arith.constant 0 : index
    %c0_119 = arith.constant 0 : index
    %195 = vector.load %arg3[%c0_118, %c0_119] : memref<8x1xf32, #tpu.memory_space<vmem>>, vector<8x1xf32>
    %196 = vector.broadcast %195 : vector<8x1xf32> to vector<8x512xf32>
    %197 = arith.addf %194, %196 : vector<8x512xf32>
    %cst_120 = arith.constant 0.000000e+00 : f32
    %198 = vector.broadcast %cst_120 : f32 to vector<8x512xf32>
    %199 = arith.maximumf %197, %198 : vector<8x512xf32>
    %c17_i32_121 = arith.constant 17 : i32
    %200 = tpu.dynamic_rotate %199 by %c17_i32_121 dim 1 : vector<8x512xf32>, i32 -> vector<8x512xf32>
    %c0_122 = arith.constant 0 : index
    %c0_123 = arith.constant 0 : index
    %201 = vector.load %arg10[%c0_122, %c0_123] : memref<9x512xf32, #tpu.memory_space<vmem>>, vector<1x512xf32>
    %202 = vector.broadcast %201 : vector<1x512xf32> to vector<8x512xf32>
    %203 = arith.mulf %200, %202 : vector<8x512xf32>
    %c16_i32_124 = arith.constant 16 : i32
    %204 = tpu.dynamic_rotate %199 by %c16_i32_124 dim 1 : vector<8x512xf32>, i32 -> vector<8x512xf32>
    %c1_125 = arith.constant 1 : index
    %c0_126 = arith.constant 0 : index
    %205 = vector.load %arg10[%c1_125, %c0_126] : memref<9x512xf32, #tpu.memory_space<vmem>>, vector<1x512xf32>
    %206 = vector.broadcast %205 : vector<1x512xf32> to vector<8x512xf32>
    %207 = arith.mulf %204, %206 : vector<8x512xf32>
    %c15_i32_127 = arith.constant 15 : i32
    %208 = tpu.dynamic_rotate %199 by %c15_i32_127 dim 1 : vector<8x512xf32>, i32 -> vector<8x512xf32>
    %c2_128 = arith.constant 2 : index
    %c0_129 = arith.constant 0 : index
    %209 = vector.load %arg10[%c2_128, %c0_129] : memref<9x512xf32, #tpu.memory_space<vmem>>, vector<1x512xf32>
    %210 = vector.broadcast %209 : vector<1x512xf32> to vector<8x512xf32>
    %211 = arith.mulf %208, %210 : vector<8x512xf32>
    %c1_i32_130 = arith.constant 1 : i32
    %212 = tpu.dynamic_rotate %199 by %c1_i32_130 dim 1 : vector<8x512xf32>, i32 -> vector<8x512xf32>
    %c3_131 = arith.constant 3 : index
    %c0_132 = arith.constant 0 : index
    %213 = vector.load %arg10[%c3_131, %c0_132] : memref<9x512xf32, #tpu.memory_space<vmem>>, vector<1x512xf32>
    %214 = vector.broadcast %213 : vector<1x512xf32> to vector<8x512xf32>
    %215 = arith.mulf %212, %214 : vector<8x512xf32>
    %c4_133 = arith.constant 4 : index
    %c0_134 = arith.constant 0 : index
    %216 = vector.load %arg10[%c4_133, %c0_134] : memref<9x512xf32, #tpu.memory_space<vmem>>, vector<1x512xf32>
    %217 = vector.broadcast %216 : vector<1x512xf32> to vector<8x512xf32>
    %218 = arith.mulf %199, %217 : vector<8x512xf32>
    %c511_i32_135 = arith.constant 511 : i32
    %219 = tpu.dynamic_rotate %199 by %c511_i32_135 dim 1 : vector<8x512xf32>, i32 -> vector<8x512xf32>
    %c5_136 = arith.constant 5 : index
    %c0_137 = arith.constant 0 : index
    %220 = vector.load %arg10[%c5_136, %c0_137] : memref<9x512xf32, #tpu.memory_space<vmem>>, vector<1x512xf32>
    %221 = vector.broadcast %220 : vector<1x512xf32> to vector<8x512xf32>
    %222 = arith.mulf %219, %221 : vector<8x512xf32>
    %c497_i32_138 = arith.constant 497 : i32
    %223 = tpu.dynamic_rotate %199 by %c497_i32_138 dim 1 : vector<8x512xf32>, i32 -> vector<8x512xf32>
    %c6_139 = arith.constant 6 : index
    %c0_140 = arith.constant 0 : index
    %224 = vector.load %arg10[%c6_139, %c0_140] : memref<9x512xf32, #tpu.memory_space<vmem>>, vector<1x512xf32>
    %225 = vector.broadcast %224 : vector<1x512xf32> to vector<8x512xf32>
    %226 = arith.mulf %223, %225 : vector<8x512xf32>
    %c496_i32_141 = arith.constant 496 : i32
    %227 = tpu.dynamic_rotate %199 by %c496_i32_141 dim 1 : vector<8x512xf32>, i32 -> vector<8x512xf32>
    %c7_142 = arith.constant 7 : index
    %c0_143 = arith.constant 0 : index
    %228 = vector.load %arg10[%c7_142, %c0_143] : memref<9x512xf32, #tpu.memory_space<vmem>>, vector<1x512xf32>
    %229 = vector.broadcast %228 : vector<1x512xf32> to vector<8x512xf32>
    %230 = arith.mulf %227, %229 : vector<8x512xf32>
    %c495_i32_144 = arith.constant 495 : i32
    %231 = tpu.dynamic_rotate %199 by %c495_i32_144 dim 1 : vector<8x512xf32>, i32 -> vector<8x512xf32>
    %c8_145 = arith.constant 8 : index
    %c0_146 = arith.constant 0 : index
    %232 = vector.load %arg10[%c8_145, %c0_146] : memref<9x512xf32, #tpu.memory_space<vmem>>, vector<1x512xf32>
    %233 = vector.broadcast %232 : vector<1x512xf32> to vector<8x512xf32>
    %234 = arith.mulf %231, %233 : vector<8x512xf32>
    %235 = tpu.concatenate %203, %207, %211, %215, %218, %222, %226, %230, %234 in 0 : vector<8x512xf32>, vector<8x512xf32>, vector<8x512xf32>, vector<8x512xf32>, vector<8x512xf32>, vector<8x512xf32>, vector<8x512xf32>, vector<8x512xf32>, vector<8x512xf32> -> vector<72x512xf32>
    %236 = arith.truncf %235 : vector<72x512xf32> to vector<72x512xbf16>
    %c0_147 = arith.constant 0 : index
    %c0_148 = arith.constant 0 : index
    %237 = vector.load %arg4[%c0_147, %c0_148] : memref<8x72xbf16, #tpu.memory_space<vmem>>, vector<8x72xbf16>
    %cst_149 = arith.constant dense<0.000000e+00> : vector<8x512xf32>
    %238 = tpu.matmul %237, %236, %cst_149 {dimension_numbers = #tpu.dot_dimension_numbers<[1], [0], [0], [1], [0, 0, 1, 1], [], []>} : vector<8x72xbf16>, vector<72x512xbf16>, vector<8x512xf32> -> vector<8x512xf32>
    %c0_150 = arith.constant 0 : index
    %c0_151 = arith.constant 0 : index
    %239 = vector.load %arg5[%c0_150, %c0_151] : memref<8x1xf32, #tpu.memory_space<vmem>>, vector<8x1xf32>
    %240 = vector.broadcast %239 : vector<8x1xf32> to vector<8x512xf32>
    %241 = arith.addf %238, %240 : vector<8x512xf32>
    %cst_152 = arith.constant 0.000000e+00 : f32
    %242 = vector.broadcast %cst_152 : f32 to vector<8x512xf32>
    %243 = arith.maximumf %241, %242 : vector<8x512xf32>
    %c511_i32_153 = arith.constant 511 : i32
    %244 = tpu.dynamic_rotate %243 by %c511_i32_153 dim 1 : vector<8x512xf32>, i32 -> vector<8x512xf32>
    %245 = arith.maximumf %243, %244 : vector<8x512xf32>
    %c496_i32_154 = arith.constant 496 : i32
    %246 = tpu.dynamic_rotate %245 by %c496_i32_154 dim 1 : vector<8x512xf32>, i32 -> vector<8x512xf32>
    %247 = arith.maximumf %245, %246 : vector<8x512xf32>
    %c0_155 = arith.constant 0 : index
    %c0_156 = arith.constant 0 : index
    %248 = vector.load %arg12[%c0_155, %c0_156] : memref<512x128xf32, #tpu.memory_space<vmem>>, vector<512x128xf32>
    %cst_157 = arith.constant dense<0.000000e+00> : vector<8x128xf32>
    %249 = tpu.matmul %247, %248, %cst_157 {dimension_numbers = #tpu.dot_dimension_numbers<[1], [0], [0], [1], [0, 0, 1, 1], [], []>} : vector<8x512xf32>, vector<512x128xf32>, vector<8x128xf32> -> vector<8x128xf32>
    %c9_i32_158 = arith.constant 9 : i32
    %250 = tpu.dynamic_rotate %249 by %c9_i32_158 dim 1 : vector<8x128xf32>, i32 -> vector<8x128xf32>
    %c0_159 = arith.constant 0 : index
    %c0_160 = arith.constant 0 : index
    %251 = vector.load %arg11[%c0_159, %c0_160] : memref<9x128xf32, #tpu.memory_space<vmem>>, vector<1x128xf32>
    %252 = vector.broadcast %251 : vector<1x128xf32> to vector<8x128xf32>
    %253 = arith.mulf %250, %252 : vector<8x128xf32>
    %c8_i32_161 = arith.constant 8 : i32
    %254 = tpu.dynamic_rotate %249 by %c8_i32_161 dim 1 : vector<8x128xf32>, i32 -> vector<8x128xf32>
    %c1_162 = arith.constant 1 : index
    %c0_163 = arith.constant 0 : index
    %255 = vector.load %arg11[%c1_162, %c0_163] : memref<9x128xf32, #tpu.memory_space<vmem>>, vector<1x128xf32>
    %256 = vector.broadcast %255 : vector<1x128xf32> to vector<8x128xf32>
    %257 = arith.mulf %254, %256 : vector<8x128xf32>
    %c7_i32_164 = arith.constant 7 : i32
    %258 = tpu.dynamic_rotate %249 by %c7_i32_164 dim 1 : vector<8x128xf32>, i32 -> vector<8x128xf32>
    %c2_165 = arith.constant 2 : index
    %c0_166 = arith.constant 0 : index
    %259 = vector.load %arg11[%c2_165, %c0_166] : memref<9x128xf32, #tpu.memory_space<vmem>>, vector<1x128xf32>
    %260 = vector.broadcast %259 : vector<1x128xf32> to vector<8x128xf32>
    %261 = arith.mulf %258, %260 : vector<8x128xf32>
    %c1_i32_167 = arith.constant 1 : i32
    %262 = tpu.dynamic_rotate %249 by %c1_i32_167 dim 1 : vector<8x128xf32>, i32 -> vector<8x128xf32>
    %c3_168 = arith.constant 3 : index
    %c0_169 = arith.constant 0 : index
    %263 = vector.load %arg11[%c3_168, %c0_169] : memref<9x128xf32, #tpu.memory_space<vmem>>, vector<1x128xf32>
    %264 = vector.broadcast %263 : vector<1x128xf32> to vector<8x128xf32>
    %265 = arith.mulf %262, %264 : vector<8x128xf32>
    %c4_170 = arith.constant 4 : index
    %c0_171 = arith.constant 0 : index
    %266 = vector.load %arg11[%c4_170, %c0_171] : memref<9x128xf32, #tpu.memory_space<vmem>>, vector<1x128xf32>
    %267 = vector.broadcast %266 : vector<1x128xf32> to vector<8x128xf32>
    %268 = arith.mulf %249, %267 : vector<8x128xf32>
    %c127_i32_172 = arith.constant 127 : i32
    %269 = tpu.dynamic_rotate %249 by %c127_i32_172 dim 1 : vector<8x128xf32>, i32 -> vector<8x128xf32>
    %c5_173 = arith.constant 5 : index
    %c0_174 = arith.constant 0 : index
    %270 = vector.load %arg11[%c5_173, %c0_174] : memref<9x128xf32, #tpu.memory_space<vmem>>, vector<1x128xf32>
    %271 = vector.broadcast %270 : vector<1x128xf32> to vector<8x128xf32>
    %272 = arith.mulf %269, %271 : vector<8x128xf32>
    %c121_i32_175 = arith.constant 121 : i32
    %273 = tpu.dynamic_rotate %249 by %c121_i32_175 dim 1 : vector<8x128xf32>, i32 -> vector<8x128xf32>
    %c6_176 = arith.constant 6 : index
    %c0_177 = arith.constant 0 : index
    %274 = vector.load %arg11[%c6_176, %c0_177] : memref<9x128xf32, #tpu.memory_space<vmem>>, vector<1x128xf32>
    %275 = vector.broadcast %274 : vector<1x128xf32> to vector<8x128xf32>
    %276 = arith.mulf %273, %275 : vector<8x128xf32>
    %c120_i32_178 = arith.constant 120 : i32
    %277 = tpu.dynamic_rotate %249 by %c120_i32_178 dim 1 : vector<8x128xf32>, i32 -> vector<8x128xf32>
    %c7_179 = arith.constant 7 : index
    %c0_180 = arith.constant 0 : index
    %278 = vector.load %arg11[%c7_179, %c0_180] : memref<9x128xf32, #tpu.memory_space<vmem>>, vector<1x128xf32>
    %279 = vector.broadcast %278 : vector<1x128xf32> to vector<8x128xf32>
    %280 = arith.mulf %277, %279 : vector<8x128xf32>
    %c119_i32_181 = arith.constant 119 : i32
    %281 = tpu.dynamic_rotate %249 by %c119_i32_181 dim 1 : vector<8x128xf32>, i32 -> vector<8x128xf32>
    %c8_182 = arith.constant 8 : index
    %c0_183 = arith.constant 0 : index
    %282 = vector.load %arg11[%c8_182, %c0_183] : memref<9x128xf32, #tpu.memory_space<vmem>>, vector<1x128xf32>
    %283 = vector.broadcast %282 : vector<1x128xf32> to vector<8x128xf32>
    %284 = arith.mulf %281, %283 : vector<8x128xf32>
    %285 = tpu.concatenate %253, %257, %261, %265, %268, %272, %276, %280, %284 in 0 : vector<8x128xf32>, vector<8x128xf32>, vector<8x128xf32>, vector<8x128xf32>, vector<8x128xf32>, vector<8x128xf32>, vector<8x128xf32>, vector<8x128xf32>, vector<8x128xf32> -> vector<72x128xf32>
    %286 = arith.truncf %285 : vector<72x128xf32> to vector<72x128xbf16>
    %c0_184 = arith.constant 0 : index
    %c0_185 = arith.constant 0 : index
    %287 = vector.load %arg6[%c0_184, %c0_185] : memref<16x72xbf16, #tpu.memory_space<vmem>>, vector<16x72xbf16>
    %cst_186 = arith.constant dense<0.000000e+00> : vector<16x128xf32>
    %288 = tpu.matmul %287, %286, %cst_186 {dimension_numbers = #tpu.dot_dimension_numbers<[1], [0], [0], [1], [0, 0, 1, 1], [], []>} : vector<16x72xbf16>, vector<72x128xbf16>, vector<16x128xf32> -> vector<16x128xf32>
    %c0_187 = arith.constant 0 : index
    %c0_188 = arith.constant 0 : index
    %289 = vector.load %arg7[%c0_187, %c0_188] : memref<16x1xf32, #tpu.memory_space<vmem>>, vector<16x1xf32>
    %290 = vector.broadcast %289 : vector<16x1xf32> to vector<16x128xf32>
    %291 = arith.addf %288, %290 : vector<16x128xf32>
    %cst_189 = arith.constant 0.000000e+00 : f32
    %292 = vector.broadcast %cst_189 : f32 to vector<16x128xf32>
    %293 = arith.maximumf %291, %292 : vector<16x128xf32>
    %c9_i32_190 = arith.constant 9 : i32
    %294 = tpu.dynamic_rotate %293 by %c9_i32_190 dim 1 : vector<16x128xf32>, i32 -> vector<16x128xf32>
    %c0_191 = arith.constant 0 : index
    %c0_192 = arith.constant 0 : index
    %295 = vector.load %arg11[%c0_191, %c0_192] : memref<9x128xf32, #tpu.memory_space<vmem>>, vector<1x128xf32>
    %296 = vector.broadcast %295 : vector<1x128xf32> to vector<16x128xf32>
    %297 = arith.mulf %294, %296 : vector<16x128xf32>
    %c8_i32_193 = arith.constant 8 : i32
    %298 = tpu.dynamic_rotate %293 by %c8_i32_193 dim 1 : vector<16x128xf32>, i32 -> vector<16x128xf32>
    %c1_194 = arith.constant 1 : index
    %c0_195 = arith.constant 0 : index
    %299 = vector.load %arg11[%c1_194, %c0_195] : memref<9x128xf32, #tpu.memory_space<vmem>>, vector<1x128xf32>
    %300 = vector.broadcast %299 : vector<1x128xf32> to vector<16x128xf32>
    %301 = arith.mulf %298, %300 : vector<16x128xf32>
    %c7_i32_196 = arith.constant 7 : i32
    %302 = tpu.dynamic_rotate %293 by %c7_i32_196 dim 1 : vector<16x128xf32>, i32 -> vector<16x128xf32>
    %c2_197 = arith.constant 2 : index
    %c0_198 = arith.constant 0 : index
    %303 = vector.load %arg11[%c2_197, %c0_198] : memref<9x128xf32, #tpu.memory_space<vmem>>, vector<1x128xf32>
    %304 = vector.broadcast %303 : vector<1x128xf32> to vector<16x128xf32>
    %305 = arith.mulf %302, %304 : vector<16x128xf32>
    %c1_i32_199 = arith.constant 1 : i32
    %306 = tpu.dynamic_rotate %293 by %c1_i32_199 dim 1 : vector<16x128xf32>, i32 -> vector<16x128xf32>
    %c3_200 = arith.constant 3 : index
    %c0_201 = arith.constant 0 : index
    %307 = vector.load %arg11[%c3_200, %c0_201] : memref<9x128xf32, #tpu.memory_space<vmem>>, vector<1x128xf32>
    %308 = vector.broadcast %307 : vector<1x128xf32> to vector<16x128xf32>
    %309 = arith.mulf %306, %308 : vector<16x128xf32>
    %c4_202 = arith.constant 4 : index
    %c0_203 = arith.constant 0 : index
    %310 = vector.load %arg11[%c4_202, %c0_203] : memref<9x128xf32, #tpu.memory_space<vmem>>, vector<1x128xf32>
    %311 = vector.broadcast %310 : vector<1x128xf32> to vector<16x128xf32>
    %312 = arith.mulf %293, %311 : vector<16x128xf32>
    %c127_i32_204 = arith.constant 127 : i32
    %313 = tpu.dynamic_rotate %293 by %c127_i32_204 dim 1 : vector<16x128xf32>, i32 -> vector<16x128xf32>
    %c5_205 = arith.constant 5 : index
    %c0_206 = arith.constant 0 : index
    %314 = vector.load %arg11[%c5_205, %c0_206] : memref<9x128xf32, #tpu.memory_space<vmem>>, vector<1x128xf32>
    %315 = vector.broadcast %314 : vector<1x128xf32> to vector<16x128xf32>
    %316 = arith.mulf %313, %315 : vector<16x128xf32>
    %c121_i32_207 = arith.constant 121 : i32
    %317 = tpu.dynamic_rotate %293 by %c121_i32_207 dim 1 : vector<16x128xf32>, i32 -> vector<16x128xf32>
    %c6_208 = arith.constant 6 : index
    %c0_209 = arith.constant 0 : index
    %318 = vector.load %arg11[%c6_208, %c0_209] : memref<9x128xf32, #tpu.memory_space<vmem>>, vector<1x128xf32>
    %319 = vector.broadcast %318 : vector<1x128xf32> to vector<16x128xf32>
    %320 = arith.mulf %317, %319 : vector<16x128xf32>
    %c120_i32_210 = arith.constant 120 : i32
    %321 = tpu.dynamic_rotate %293 by %c120_i32_210 dim 1 : vector<16x128xf32>, i32 -> vector<16x128xf32>
    %c7_211 = arith.constant 7 : index
    %c0_212 = arith.constant 0 : index
    %322 = vector.load %arg11[%c7_211, %c0_212] : memref<9x128xf32, #tpu.memory_space<vmem>>, vector<1x128xf32>
    %323 = vector.broadcast %322 : vector<1x128xf32> to vector<16x128xf32>
    %324 = arith.mulf %321, %323 : vector<16x128xf32>
    %c119_i32_213 = arith.constant 119 : i32
    %325 = tpu.dynamic_rotate %293 by %c119_i32_213 dim 1 : vector<16x128xf32>, i32 -> vector<16x128xf32>
    %c8_214 = arith.constant 8 : index
    %c0_215 = arith.constant 0 : index
    %326 = vector.load %arg11[%c8_214, %c0_215] : memref<9x128xf32, #tpu.memory_space<vmem>>, vector<1x128xf32>
    %327 = vector.broadcast %326 : vector<1x128xf32> to vector<16x128xf32>
    %328 = arith.mulf %325, %327 : vector<16x128xf32>
    %329 = tpu.concatenate %297, %301, %305, %309, %312, %316, %320, %324, %328 in 0 : vector<16x128xf32>, vector<16x128xf32>, vector<16x128xf32>, vector<16x128xf32>, vector<16x128xf32>, vector<16x128xf32>, vector<16x128xf32>, vector<16x128xf32>, vector<16x128xf32> -> vector<144x128xf32>
    %330 = arith.truncf %329 : vector<144x128xf32> to vector<144x128xbf16>
    %c0_216 = arith.constant 0 : index
    %c0_217 = arith.constant 0 : index
    %331 = vector.load %arg8[%c0_216, %c0_217] : memref<16x144xbf16, #tpu.memory_space<vmem>>, vector<16x144xbf16>
    %cst_218 = arith.constant dense<0.000000e+00> : vector<16x128xf32>
    %332 = tpu.matmul %331, %330, %cst_218 {dimension_numbers = #tpu.dot_dimension_numbers<[1], [0], [0], [1], [0, 0, 1, 1], [], []>} : vector<16x144xbf16>, vector<144x128xbf16>, vector<16x128xf32> -> vector<16x128xf32>
    %c0_219 = arith.constant 0 : index
    %c0_220 = arith.constant 0 : index
    %333 = vector.load %arg9[%c0_219, %c0_220] : memref<16x1xf32, #tpu.memory_space<vmem>>, vector<16x1xf32>
    %334 = vector.broadcast %333 : vector<16x1xf32> to vector<16x128xf32>
    %335 = arith.addf %332, %334 : vector<16x128xf32>
    %c0_221 = arith.constant 0 : index
    %c0_222 = arith.constant 0 : index
    %336 = vector.load %arg15[%c0_221, %c0_222] : memref<16x128xf32, #tpu.memory_space<vmem>>, vector<16x128xf32>
    tpu.vector_store %arg15[%c0_221, %c0_222], %335 {strides = array<i32>} : memref<16x128xf32, #tpu.memory_space<vmem>>, vector<16x128xf32>,
    return
  }
}

</mosaic_0001>

<bundles_post_ra>
// kernel: targets_fn.1
= control target key start
LH: loop header
LB: loop body
LE: loop exit
PB: predicated region body
PF: predicated region fallthrough
CT: control target
= control target key end

     0   :  { %21 = vsyncpa [#allocation3], 0  ;;  %s3985_s0 = inlined_call_operand.vmem [shape: f32[8,512], index: 0, kind: input, shape index: {}]   ;;  %s3986_s1 = inlined_call_operand.vmem [shape: f32[8,512], index: 1, kind: input, shape index: {}]   ;;  %s3987_s2 = inlined_call_operand.vmem [shape: bf16[8,72], index: 2, kind: input, shape index: {}]   ;;  %s3988_s3 = inlined_call_operand.vmem [shape: f32[8,1], index: 3, kind: input, shape index: {}]   ;;  %s3989_s4 = inlined_call_operand.vmem [shape: bf16[8,72], index: 4, kind: input, shape index: {}]   ;;  %s3990_s5 = inlined_call_operand.vmem [shape: f32[8,1], index: 5, kind: input, shape index: {}]   ;;  %s3991_s6 = inlined_call_operand.vmem [shape: bf16[16,72], index: 6, kind: input, shape index: {}]   ;;  %s3992_s7 = inlined_call_operand.vmem [shape: f32[16,1], index: 7, kind: input, shape index: {}]   ;;  %s3993_s8 = inlined_call_operand.vmem [shape: bf16[16,144], index: 8, kind: input, shape index: {}]   ;;  %s3994_s9 = inlined_call_operand.vmem [shape: f32[16,1], index: 9, kind: input, shape index: {}]   ;;  %s3995_s10 = inlined_call_operand.vmem [shape: f32[9,512], index: 10, kind: input, shape index: {}]   ;;  %s3996_s11 = inlined_call_operand.vmem [shape: f32[9,128], index: 11, kind: input, shape index: {}]   ;;  %s3997_s12 = inlined_call_operand.hbm [shape: f32[512,128], index: 12, kind: input, shape index: {}]   ;;  %s3998_s13 = inlined_call_operand.hbm [shape: f32[16,16], index: 13, kind: output, shape index: {0}]   ;;  %s3999_s14 = inlined_call_operand.hbm [shape: f32[32,32], index: 14, kind: output, shape index: {1}]   ;;  %s4000_s15 = inlined_call_operand.hbm [shape: f32[16,128], index: 15, kind: output, shape index: {2}]  }
   0x1   :  { %22 = vsyncpa [#allocation4], 0 }
   0x2   :  { %23 = vsyncpa [#allocation7], 0  ;;  %s52_s20 = sshll.u32 %s3997_s12, 4  ;;  %s2248_s21 = smov [#allocation2]   ;;  %s53_s20 = int_to_ptr.hbm [resolvable:$true] %s52_s20 }
   0x3   :  { %s54_s22 = sshll.u32 %s2248_s21, 4  ;;  %s4012_s23 = smov 128   ;;  %s55_s22 = int_to_ptr.vmem [resolvable:$true] %s54_s22 }
   0x4   :  { %s2250_s24 = smov 8  }
   0x5   :  { %60 = dma.hbm_to_vmem [thread:$0]  %s53_s20, 8192, %s55_s22, [#allocation3], %s4012_s23, %s4012_s23, %s2250_s24  }
   0x6   :  { %2242 = dma.done.wait [#allocation3], 8192  }
   0x7   :  { %2243 = vsyncadd [#allocation3], 4294959104  ;;  %v2358_v0 = vld [vmem:[%s3985_s0 + $0x18] sm:$0xff]  ;;  %v2363_v1 = vld [vmem:[%s3985_s0 + $0x10] sm:$0xff]  ;;  %s2251_s30 = smov 111   ;;  %s2252_s16 = smov 113   ;;  %v78_v6 = vlaneseq }
   0x8   :  { %v2368_v2 = vld [vmem:[%s3985_s0] sm:$0xff]  ;;  %288 = vrot.lane.b32.xlu1 %v2358_v0, %s2251_s30  ;;  %230 = vrot.lane.b32.xlu2 %v2363_v1, %s2252_s16  ;;  %s2253_s17 = smov 112   ;;  %v2391_v3 = vld [vmem:[%s3985_s0 + $0x8] sm:$0xff]  ;;  %s2254_s20 = smov 127   ;;  %vm341_vm1 = vcmask 1043456   ;;  %vm337_vm9 = vcmask 588800  }
   0x9   :  { %282 = vrot.lane.b32.xlu0 %v2368_v2, %s2251_s30  ;;  %s2255_s0 = smov 15   ;;  %s2256_s21 = smov 1   ;;  %v2441_v7 = vand.u32 127, %v78_v6  ;;  %v2446_v8 = vld [vmem:[%s3995_s10 + $0x20] ss:$8 sm:$0xf] }
   0xa   :  { %s2257_s22 = smov 17   ;;  %s2258_s25 = smov 16   ;;  %v301_v10 = vperm.slane %v2446_v8, 3  ;;  %v300_v17 = vperm.slane %v2446_v8, 2  ;;  %v298_v44 = vperm.slane %v2446_v8, 0  ;;  %v299_v45 = vperm.slane %v2446_v8, 1 }
   0xb   :  { %vm290_vm0 = vcmp.lt.s32.totalorder %v2441_v7, 111  ;;  %v2467_v23 = vld [vmem:[%s3995_s10 + $0x6] ss:$8 sm:$0xf]  ;;  %vm234_vm2 = vcmp.lt.s32.totalorder %v2441_v7, 113  ;;  %vm262_vm3 = vcmp.lt.s32.totalorder %v2441_v7, 112 }
   0xc   :  { %v2472_v24 = vld [vmem:[%s3995_s10 + $0x7] ss:$8 sm:$0xf]  ;;  %v244_v26 = vperm.slane %v2467_v23, 2  ;;  %v245_v30 = vperm.slane %v2467_v23, 3  ;;  %vm206_vm4 = vcmp.lt.s32.totalorder %v2441_v7, 127 }
   0xd   :  { %v272_v27 = vperm.slane %v2472_v24, 2  ;;  %v273_v31 = vperm.slane %v2472_v24, 3  ;;  %v2506_v48 = vld [vmem:[%s3995_s10 + $0x4] ss:$8 sm:$0xf]  ;;  %v270_v59 = vperm.slane %v2472_v24, 0 }
   0xe   :  { %v188_v54 = vperm.slane %v2506_v48, 2  ;;  %v2523_v55 = vld [vmem:[%s3995_s10 + $0x5] ss:$8 sm:$0xf]  ;;  %v189_v56 = vperm.slane %v2506_v48, 3  ;;  %v271_v60 = vperm.slane %v2472_v24, 1 }
   0xf   :  { %v242_v63 = vperm.slane %v2467_v23, 0  ;;  %vm135_vm5 = vcmp.lt.s32.totalorder %v2441_v7, 15  ;;  %vm163_vm6 = vcmp.lt.s32.totalorder %v2441_v7, 1  ;;  %vm80_vm7 = vcmp.lt.s32.totalorder %v2441_v7, 17  ;;  %s2260_s18 = smov 120   ;;  %s4018_s19 = smov 121  }
  0x10   :  { %232 = vrot.lane.b32.xlu2 %v2358_v0, %s2252_s16  ;;  %226 = vrot.lane.b32.xlu1 %v2368_v2, %s2252_s16  ;;  %vm107_vm8 = vcmp.lt.s32.totalorder %v2441_v7, 16  ;;  %s4016_s26 = smov 119   ;;  %vm953_vm10 = vcmask 130048   ;;  %s4014_s27 = smov 7   ;;  %vm962_vm11 = vcmask 523264   ;;  %vm1008_vm12 = vcmask 261120  }
  0x11   :  { %286 = vrot.lane.b32.xlu0 %v2363_v1, %s2251_s30  ;;  %s4020_s28 = smov 9   ;;  %v1793_v7 = vld [vmem:[%s3992_s7] sm:$0xff]  ;;  %s4054_s23 = smov 9  }
  0x18   :  { %260 = vrot.lane.b32.xlu2 %v2358_v0, %s2253_s17  ;;  %258 = vrot.lane.b32.xlu1 %v2363_v1, %s2253_s17 }
  0x19   :  { %254 = vrot.lane.b32.xlu0 %v2368_v2, %s2253_s17 }
  0x20   :  { %202 = vrot.lane.b32.xlu2 %v2363_v1, %s2254_s20  ;;  %198 = vrot.lane.b32.xlu1 %v2368_v2, %s2254_s20 }
  0x21   :  { %284 = vrot.lane.b32.xlu0 %v2391_v3, %s2251_s30 }
  0x28   :  { %256 = vrot.lane.b32.xlu2 %v2391_v3, %s2253_s17  ;;  %228 = vrot.lane.b32.xlu1 %v2391_v3, %s2252_s16 }
  0x29   :  { %204 = vrot.lane.b32.xlu0 %v2358_v0, %s2254_s20 }
  0x30   :  { %133 = vrot.lane.b32.xlu2 %v2358_v0, %s2255_s0  ;;  %131 = vrot.lane.b32.xlu1 %v2363_v1, %s2255_s0 }
  0x31   :  { %129 = vrot.lane.b32.xlu0 %v2391_v3, %s2255_s0 }
  0x38   :  { %161 = vrot.lane.b32.xlu2 %v2358_v0, %s2256_s21  ;;  %159 = vrot.lane.b32.xlu1 %v2363_v1, %s2256_s21 }
  0x39   :  { %157 = vrot.lane.b32.xlu0 %v2391_v3, %s2256_s21 }
  0x40   :  { %74 = vrot.lane.b32.xlu2 %v2363_v1, %s2257_s22  ;;  %72 = vrot.lane.b32.xlu1 %v2391_v3, %s2257_s22 }
  0x41   :  { %200 = vrot.lane.b32.xlu0 %v2391_v3, %s2254_s20 }
  0x48   :  { %103 = vrot.lane.b32.xlu2 %v2363_v1, %s2258_s25  ;;  %101 = vrot.lane.b32.xlu1 %v2391_v3, %s2258_s25 }
  0x49   :  { %76 = vrot.lane.b32.xlu0 %v2358_v0, %s2257_s22 }
  0x50   :  { %155 = vrot.lane.b32.xlu2 %v2368_v2, %s2256_s21  ;;  %127 = vrot.lane.b32.xlu1 %v2368_v2, %s2255_s0 }
  0x51   :  { %105 = vrot.lane.b32.xlu0 %v2358_v0, %s2258_s25 }
  0x58   :  { %99 = vrot.lane.b32.xlu1 %v2368_v2, %s2258_s25 }
  0x59   :  { %70 = vrot.lane.b32.xlu0 %v2368_v2, %s2257_s22 }
  0x62   :  { %v2439_v4 = vpop.permute.xlu2 %230 }
  0x6a   :  { %v233_v5 = vpop.permute.xlu2 %232 }
  0x6b   :  { %v235_v28 = vsel %vm234_vm2, %v2439_v4, %v233_v5 }
  0x6c   :  { %v252_v38 = vmul.f32 %v244_v26, %v235_v28 }
  0x72   :  { %v261_v9 = vpop.permute.xlu2 %260 }
  0x7a   :  { %v289_v11 = vpop.permute.xlu1 %288  ;;  %v2456_v18 = vpop.permute.xlu2 %202 }
  0x7b   :  { %v283_v12 = vpop.permute.xlu0 %282 }
  0x7c   :  { %v294_v13 = vsel %vm290_vm0, %v289_v11, %v283_v12 }
  0x7d   :  { %v309_v14 = vmul.f32 %v301_v10, %v294_v13 }
  0x7f   :  { %v329_v15 = vpack.c.bf16 %v309_v14, %v309_v14  ;;  %v196_v14 = vmul.f32 %v188_v54, %v2363_v1 }
  0x81   :  { %v352_v16 = vsel %vm341_vm1, %v329_v15, 0  ;;  %v197_v15 = vmul.f32 %v189_v56, %v2358_v0 }
  0x82   :  { %396 = vmatpush.bf16.msra.mxu3 %v352_v16  ;;  %v2458_v19 = vpop.permute.xlu1 %226  ;;  %v257_v36 = vpop.permute.xlu2 %256 }
  0x83   :  { %v287_v20 = vpop.permute.xlu0 %286  ;;  %v238_v32 = vsel %vm234_vm2, %v233_v5, %v2458_v19  ;;  %v243_v5 = vperm.slane %v2467_v23, 1 }
  0x84   :  { %v291_v21 = vsel %vm290_vm0, %v287_v20, %v289_v11  ;;  %v253_v40 = vmul.f32 %v245_v30, %v238_v32  ;;  %v216_v11 = vperm.slane %v2523_v55, 2 }
  0x85   :  { %v308_v22 = vmul.f32 %v300_v17, %v291_v21 }
  0x87   :  { %v328_v25 = vpack.c.bf16 %v308_v22, %v308_v22 }
  0x89   :  { %v349_v29 = vsel %vm341_vm1, %v328_v25, 0 }
  0x8a   :  { %383 = vmatpush.bf16.msra.mxu2 %v349_v29  ;;  %v259_v33 = vpop.permute.xlu1 %258  ;;  %v2517_v53 = vpop.permute.xlu2 %133 }
  0x8b   :  { %v263_v34 = vsel %vm262_vm3, %v259_v33, %v261_v9  ;;  %v255_v35 = vpop.permute.xlu0 %254  ;;  %v264_v61 = vsel %vm262_vm3, %v257_v36, %v259_v33 }
  0x8c   :  { %v266_v37 = vsel %vm262_vm3, %v261_v9, %v255_v35  ;;  %v280_v39 = vmul.f32 %v272_v27, %v263_v34  ;;  %v265_v62 = vsel %vm262_vm3, %v255_v35, %v257_v36  ;;  %v279_v25 = vmul.f32 %v271_v60, %v264_v61 }
  0x8d   :  { %v281_v41 = vmul.f32 %v273_v31, %v266_v37  ;;  %v278_v22 = vmul.f32 %v270_v59, %v265_v62 }
  0x8e   :  { %v324_v42 = vpack.c.bf16 %v280_v39, %v252_v38  ;;  %v2575_v39 = vld [vmem:[%s3995_s10 + $0x2] ss:$8 sm:$0xf] }
  0x8f   :  { %v325_v43 = vpack.c.bf16 %v281_v41, %v253_v40  ;;  %v2580_v40 = vld [vmem:[%s3995_s10 + $0x3] ss:$8 sm:$0xf]  ;;  %v146_v41 = vperm.slane %v2575_v39, 3 }
  0x90   :  { %384 = vmatpush.bf16.msra.mxu2 %v324_v42  ;;  %v174_v42 = vperm.slane %v2580_v40, 3 }
  0x91   :  { %397 = vmatpush.bf16.msra.mxu3 %v325_v43 }
  0x92   :  { %v2501_v46 = vpop.permute.xlu1 %198  ;;  %v2568_v36 = vpop.permute.xlu2 %161 }
  0x93   :  { %v285_v47 = vpop.permute.xlu0 %284 }
  0x94   :  { %v293_v49 = vsel %vm290_vm0, %v283_v12, %v285_v47  ;;  %v292_v50 = vsel %vm290_vm0, %v285_v47, %v287_v20  ;;  %v217_v12 = vperm.slane %v2523_v55, 3  ;;  %v145_v47 = vperm.slane %v2575_v39, 2 }
  0x95   :  { %v306_v51 = vmul.f32 %v298_v44, %v293_v49  ;;  %v307_v52 = vmul.f32 %v299_v45, %v292_v50  ;;  %v173_v49 = vperm.slane %v2580_v40, 2 }
  0x97   :  { %v326_v57 = vpack.c.bf16 %v306_v51, %v306_v51  ;;  %v327_v58 = vpack.c.bf16 %v307_v52, %v307_v52 }
  0x99   :  { %v343_v6 = vsel %vm341_vm1, %v326_v57, 0  ;;  %v346_v9 = vsel %vm341_vm1, %v327_v58, 0 }
  0x9a   :  { %357 = vmatpush.bf16.msra.mxu0 %v343_v6  ;;  %370 = vmatpush.bf16.msra.mxu1 %v346_v9  ;;  %v229_v13 = vpop.permute.xlu1 %228  ;;  %v2591_v50 = vpop.permute.xlu2 %74 }
  0x9b   :  { %v236_v16 = vsel %vm234_vm2, %v229_v13, %v2439_v4  ;;  %v237_v20 = vsel %vm234_vm2, %v2458_v19, %v229_v13  ;;  %v205_v21 = vpop.permute.xlu0 %204 }
  0x9c   :  { %v207_v1 = vsel %vm206_vm4, %v2456_v18, %v205_v21  ;;  %v210_v0 = vsel %vm206_vm4, %v205_v21, %v2501_v46  ;;  %v250_v4 = vmul.f32 %v242_v63, %v237_v20  ;;  %v251_v19 = vmul.f32 %v243_v5, %v236_v16 }
  0x9d   :  { %v224_v28 = vmul.f32 %v216_v11, %v207_v1  ;;  %v225_v29 = vmul.f32 %v217_v12, %v210_v0  ;;  %v186_v16 = vperm.slane %v2506_v48, 0  ;;  %v187_v20 = vperm.slane %v2506_v48, 1 }
  0x9e   :  { %v322_v32 = vpack.c.bf16 %v278_v22, %v250_v4  ;;  %v323_v33 = vpack.c.bf16 %v279_v25, %v251_v19  ;;  %v214_v21 = vperm.slane %v2523_v55, 0  ;;  %v215_v22 = vperm.slane %v2523_v55, 1 }
  0x9f   :  { %v320_v34 = vpack.c.bf16 %v224_v28, %v196_v14  ;;  %v321_v35 = vpack.c.bf16 %v225_v29, %v197_v15  ;;  %v194_v0 = vmul.f32 %v186_v16, %v2368_v2  ;;  %v195_v4 = vmul.f32 %v187_v20, %v2391_v3  ;;  %v2637_v3 = vld [vmem:[%s3995_s10] ss:$8 sm:$0xf] }
  0xa0   :  { %358 = vmatpush.bf16.msra.mxu0 %v322_v32  ;;  %371 = vmatpush.bf16.msra.mxu1 %v323_v33  ;;  %v331_v32 = vld [vmem:[%s3988_s3] sm:$0xff] }
  0xa1   :  { %385 = vmatpush.bf16.msra.mxu2 %v320_v34  ;;  %398 = vmatpush.bf16.msra.mxu3 %v321_v35 }
  0xa2   :  { %v132_v37 = vpop.permute.xlu1 %131  ;;  %v104_v19 = vpop.permute.xlu2 %103 }
  0xa3   :  { %v2570_v38 = vpop.permute.xlu0 %129  ;;  %v136_v43 = vsel %vm135_vm5, %v132_v37, %v2517_v53 }
  0xa4   :  { %v137_v51 = vsel %vm135_vm5, %v2570_v38, %v132_v37  ;;  %v154_v62 = vmul.f32 %v146_v41, %v136_v43  ;;  %v4011_v37 = vperm.slane %v2637_v3, 2 }
  0xa5   :  { %v153_v9 = vmul.f32 %v145_v47, %v137_v51 }
  0xaa   :  { %v160_v52 = vpop.permute.xlu1 %159 }
  0xab   :  { %v164_v57 = vsel %vm163_vm6, %v160_v52, %v2568_v36  ;;  %v158_v58 = vpop.permute.xlu0 %157 }
  0xac   :  { %v165_v61 = vsel %vm163_vm6, %v158_v58, %v160_v52  ;;  %v182_v6 = vmul.f32 %v174_v42, %v164_v57 }
  0xad   :  { %v181_v13 = vmul.f32 %v173_v49, %v165_v61 }
  0xae   :  { %v317_v14 = vpack.c.bf16 %v182_v6, %v154_v62 }
  0xaf   :  { %v316_v15 = vpack.c.bf16 %v181_v13, %v153_v9  ;;  %v156_v9 = vpop.permute.xlu2 %155 }
  0xb0   :  { %399 = vmatpush.bf16.msra.mxu3 %v317_v14  ;;  %v4010_v14 = vperm.slane %v2580_v40, 0 }
  0xb1   :  { %386 = vmatpush.bf16.msra.mxu2 %v316_v15  ;;  %v4009_v15 = vperm.slane %v2580_v40, 1 }
  0xb2   :  { %v2613_v25 = vpop.permute.xlu1 %72 }
  0xb3   :  { %v201_v1 = vpop.permute.xlu0 %200  ;;  %v82_v51 = vsel %vm80_vm7, %v2613_v25, %v2591_v50 }
  0xb4   :  { %v208_v28 = vsel %vm206_vm4, %v201_v1, %v2456_v18  ;;  %v209_v29 = vsel %vm206_vm4, %v2501_v46, %v201_v1  ;;  %v2642_v18 = vld [vmem:[%s3995_s10 + $0x1] ss:$8 sm:$0xf]  ;;  %v2259_v46 = vmov 0   ;;  %v97_v62 = vmul.f32 %v4011_v37, %v82_v51 }
  0xb5   :  { %v222_v2 = vmul.f32 %v214_v21, %v209_v29  ;;  %v223_v33 = vmul.f32 %v215_v22, %v208_v28  ;;  %2089 = vset.pattern.permute.xlu2 %v2259_v46  ;;  %2111 = vset.pattern.permute.xlu1 %v2259_v46  ;;  %v117_v43 = vperm.slane %v2642_v18, 2  ;;  %v167_v1 = vsel %vm163_vm6, %v2568_v36, %v156_v9  ;;  %v330_v28 = vld [vmem:[%s3987_s2] sm:$0xf] }
  0xb6   :  { %334 = vperm.xlu2 %2089, %v331_v32   ;;  %2110 = vset.pattern.permute.xlu0 %v2259_v46  ;;  %v166_v29 = vsel %vm163_vm6, %v156_v9, %v158_v58  ;;  %v4006_v32 = vperm.slane %v2637_v3, 3  ;;  %v179_v58 = vmul.f32 %v4010_v14, %v167_v1  ;;  %v4003_v1 = vperm.slane %v2642_v18, 1 }
  0xb7   :  { %v318_v34 = vpack.c.bf16 %v222_v2, %v194_v0  ;;  %v319_v35 = vpack.c.bf16 %v223_v33, %v195_v4  ;;  %v4008_v0 = vperm.slane %v2575_v39, 0  ;;  %v4007_v4 = vperm.slane %v2575_v39, 1 }
  0xb8   :  { %v4005_v2 = vperm.slane %v2642_v18, 3 }
  0xb9   :  { %359 = vmatpush.bf16.msra.mxu0 %v318_v34  ;;  %372 = vmatpush.bf16.msra.mxu1 %v319_v35 }
  0xba   :  { %v102_v52 = vpop.permute.xlu1 %101 }
  0xbb   :  { %v109_v57 = vsel %vm107_vm8, %v102_v52, %v104_v19  ;;  %v77_v61 = vpop.permute.xlu0 %76 }
  0xbc   :  { %v125_v6 = vmul.f32 %v117_v43, %v109_v57  ;;  %v81_v36 = vsel %vm80_vm7, %v2591_v50, %v77_v61 }
  0xbe   :  { %v312_v13 = vpack.c.bf16 %v125_v6, %v97_v62 }
  0xc0   :  { %387 = vmatpush.bf16.msra.mxu2 %v312_v13 }
  0xc2   :  { %v128_v33 = vpop.permute.xlu1 %127 }
  0xc3   :  { %v138_v46 = vsel %vm135_vm5, %v128_v33, %v2570_v38  ;;  %v139_v34 = vsel %vm135_vm5, %v2517_v53, %v128_v33  ;;  %v106_v35 = vpop.permute.xlu0 %105  ;;  %2011 = vmatmul.msk.bf16.vlgmr.msra.gmra.mxu2 %vm337_vm9, %v330_v28  ;;  %v180_v38 = vmul.f32 %v4009_v15, %v166_v29  ;;  %v98_v53 = vmul.f32 %v4006_v32, %v81_v36 }
  0xc4   :  { %v108_v51 = vsel %vm107_vm8, %v104_v19, %v106_v35  ;;  %v151_v50 = vmul.f32 %v4008_v0, %v139_v34  ;;  %v152_v57 = vmul.f32 %v4007_v4, %v138_v46  ;;  %v4004_v19 = vperm.slane %v2642_v18, 0 }
  0xc5   :  { %v126_v62 = vmul.f32 %v4005_v2, %v108_v51  ;;  %v4002_v33 = vperm.slane %v2637_v3, 0  ;;  %v4001_v29 = vperm.slane %v2637_v3, 1 }
  0xc6   :  { %v314_v6 = vpack.c.bf16 %v179_v58, %v151_v50  ;;  %v315_v9 = vpack.c.bf16 %v180_v38, %v152_v57 }
  0xc7   :  { %v313_v13 = vpack.c.bf16 %v126_v62, %v98_v53 }
  0xc8   :  { %360 = vmatpush.bf16.msra.mxu0 %v314_v6  ;;  %373 = vmatpush.bf16.msra.mxu1 %v315_v9 }
  0xc9   :  { %400 = vmatpush.bf16.msra.mxu3 %v313_v13 }
  0xca   :  { %v100_v46 = vpop.permute.xlu1 %99 }
  0xcb   :  { %v110_v36 = vsel %vm107_vm8, %v100_v46, %v102_v52  ;;  %v111_v34 = vsel %vm107_vm8, %v106_v35, %v100_v46  ;;  %v71_v58 = vpop.permute.xlu0 %70 }
  0xcc   :  { %v83_v51 = vsel %vm80_vm7, %v71_v58, %v2613_v25  ;;  %v84_v50 = vsel %vm80_vm7, %v77_v61, %v71_v58  ;;  %2012 = vmatmul.msk.bf16.vlgmr.msra.gmra.mxu3 %vm337_vm9, %v330_v28  ;;  %v123_v57 = vmul.f32 %v4004_v19, %v111_v34  ;;  %v124_v38 = vmul.f32 %v4003_v1, %v110_v36 }
  0xcd   :  { %v95_v52 = vmul.f32 %v4002_v33, %v84_v50  ;;  %v96_v35 = vmul.f32 %v4001_v29, %v83_v51 }
  0xcf   :  { %v310_v53 = vpack.c.bf16 %v123_v57, %v95_v52  ;;  %v311_v62 = vpack.c.bf16 %v124_v38, %v96_v35 }
  0xd1   :  { %361 = vmatpush.bf16.msra.mxu0 %v310_v53  ;;  %374 = vmatpush.bf16.msra.mxu1 %v311_v62  ;;  %v563_v62 = vld [vmem:[%s3990_s5] sm:$0xff] }
  0xd4   :  { %2009 = vmatmul.msk.bf16.vlgmr.msra.gmra.mxu0 %vm337_vm9, %v330_v28  ;;  %2010 = vmatmul.msk.bf16.vlgmr.msra.gmra.mxu1 %vm337_vm9, %v330_v28 }
 0x110   :  { %v335_v6 = vpop.permute.xlu2 %334 }
 0x146   :  { %v389_v25 = vpop.f32.mrf.mxu2 }
 0x147   :  { %v2759_v35 = vadd.f32 %v389_v25, %v335_v6 }
 0x149   :  { %v2762_v53 = vmax.f32 %v2759_v35, 0.0 }
 0x14e   :  { %v391_v61 = vpop.f32.mrf.mxu2 }
 0x14f   :  { %v402_v9 = vpop.f32.mrf.mxu3 }
 0x150   :  { %v2736_v50 = vadd.f32 %v402_v9, %v335_v6 }
 0x151   :  { %v363_v13 = vpop.f32.mrf.mxu0  ;;  %v376_v46 = vpop.f32.mrf.mxu1 }
 0x152   :  { %v2720_v36 = vadd.f32 %v363_v13, %v335_v6  ;;  %v2722_v34 = vadd.f32 %v376_v46, %v335_v6  ;;  %v2739_v52 = vmax.f32 %v2736_v50, 0.0 }
 0x154   :  { %v2725_v58 = vmax.f32 %v2720_v36, 0.0  ;;  %v2728_v51 = vmax.f32 %v2722_v34, 0.0 }
 0x156   :  { %512 = vrot.lane.b32.xlu2 %v2728_v51, %s2253_s17  ;;  %478 = vrot.lane.b32.xlu1 %v2725_v58, %s2254_s20 }
 0x157   :  { %526 = vrot.lane.b32.xlu0 %v2725_v58, %s2251_s30  ;;  %v404_v28 = vpop.f32.mrf.mxu3 }
 0x159   :  { %v365_v57 = vpop.f32.mrf.mxu0  ;;  %v378_v38 = vpop.f32.mrf.mxu1 }
 0x15e   :  { %532 = vrot.lane.b32.xlu2 %v2739_v52, %s2251_s30  ;;  %496 = vrot.lane.b32.xlu1 %v2728_v51, %s2252_s16 }
 0x15f   :  { %494 = vrot.lane.b32.xlu0 %v2725_v58, %s2252_s16 }
 0x166   :  { %500 = vrot.lane.b32.xlu2 %v2739_v52, %s2252_s16  ;;  %412 = vrot.lane.b32.xlu1 %v2728_v51, %s2257_s22 }
 0x167   :  { %510 = vrot.lane.b32.xlu0 %v2725_v58, %s2253_s17 }
 0x16e   :  { %516 = vrot.lane.b32.xlu2 %v2739_v52, %s2253_s17  ;;  %428 = vrot.lane.b32.xlu1 %v2728_v51, %s2258_s25 }
 0x16f   :  { %528 = vrot.lane.b32.xlu0 %v2728_v51, %s2251_s30 }
 0x176   :  { %482 = vrot.lane.b32.xlu2 %v2762_v53, %s2254_s20  ;;  %530 = vrot.lane.b32.xlu1 %v2762_v53, %s2251_s30 }
 0x177   :  { %444 = vrot.lane.b32.xlu0 %v2728_v51, %s2255_s0 }
 0x17e   :  { %448 = vrot.lane.b32.xlu2 %v2739_v52, %s2255_s0  ;;  %498 = vrot.lane.b32.xlu1 %v2762_v53, %s2252_s16 }
 0x17f   :  { %460 = vrot.lane.b32.xlu0 %v2728_v51, %s2256_s21 }
 0x186   :  { %464 = vrot.lane.b32.xlu2 %v2739_v52, %s2256_s21  ;;  %514 = vrot.lane.b32.xlu1 %v2762_v53, %s2253_s17 }
 0x187   :  { %480 = vrot.lane.b32.xlu0 %v2728_v51, %s2254_s20 }
 0x18e   :  { %414 = vrot.lane.b32.xlu2 %v2762_v53, %s2257_s22  ;;  %446 = vrot.lane.b32.xlu1 %v2762_v53, %s2255_s0 }
 0x18f   :  { %484 = vrot.lane.b32.xlu0 %v2739_v52, %s2254_s20 }
 0x196   :  { %430 = vrot.lane.b32.xlu2 %v2762_v53, %s2258_s25  ;;  %462 = vrot.lane.b32.xlu1 %v2762_v53, %s2256_s21 }
 0x197   :  { %416 = vrot.lane.b32.xlu0 %v2739_v52, %s2257_s22 }
 0x19e   :  { %458 = vrot.lane.b32.xlu2 %v2725_v58, %s2256_s21  ;;  %442 = vrot.lane.b32.xlu1 %v2725_v58, %s2255_s0 }
 0x19f   :  { %432 = vrot.lane.b32.xlu0 %v2739_v52, %s2258_s25 }
 0x1a6   :  { %566 = vperm.xlu2 %2089, %v563_v62   ;;  %426 = vrot.lane.b32.xlu1 %v2725_v58, %s2258_s25 }
 0x1a7   :  { %410 = vrot.lane.b32.xlu0 %v2725_v58, %s2257_s22 }
 0x1b0   :  { %v513_v25 = vpop.permute.xlu2 %512 }
 0x1b8   :  { %v533_v61 = vpop.permute.xlu2 %532 }
 0x1c0   :  { %v501_v6 = vpop.permute.xlu2 %500 }
 0x1c8   :  { %v2807_v9 = vpop.permute.xlu1 %478  ;;  %v517_v38 = vpop.permute.xlu2 %516 }
 0x1c9   :  { %v527_v13 = vpop.permute.xlu0 %526 }
 0x1ca   :  { %v537_v46 = vsel %vm290_vm0, %v533_v61, %v527_v13 }
 0x1cb   :  { %v541_v28 = vmul.f32 %v537_v46, %v301_v10 }
 0x1cd   :  { %v561_v57 = vpack.c.bf16 %v541_v28, %v541_v28 }
 0x1cf   :  { %v582_v62 = vsel %vm341_vm1, %v561_v57, 0 }
 0x1d0   :  { %626 = vmatpush.bf16.msrb.mxu3 %v582_v62  ;;  %v497_v29 = vpop.permute.xlu1 %496  ;;  %v2818_v2 = vpop.permute.xlu2 %482 }
 0x1d1   :  { %v495_v33 = vpop.permute.xlu0 %494 }
 0x1d2   :  { %v505_v1 = vsel %vm234_vm2, %v501_v6, %v495_v33 }
 0x1d3   :  { %v509_v10 = vmul.f32 %v505_v1, %v245_v30  ;;  %v504_v30 = vsel %vm234_vm2, %v495_v33, %v497_v29 }
 0x1d8   :  { %v2816_v19 = vpop.permute.xlu1 %412  ;;  %v2830_v15 = vpop.permute.xlu2 %448 }
 0x1d9   :  { %v511_v32 = vpop.permute.xlu0 %510 }
 0x1da   :  { %v521_v4 = vsel %vm262_vm3, %v517_v38, %v511_v32  ;;  %v520_v14 = vsel %vm262_vm3, %v511_v32, %v513_v25 }
 0x1db   :  { %v525_v46 = vmul.f32 %v521_v4, %v273_v31  ;;  %v522_v4 = vmul.f32 %v520_v14, %v270_v59 }
 0x1dd   :  { %v557_v28 = vpack.c.bf16 %v525_v46, %v509_v10 }
 0x1df   :  { %627 = vmatpush.bf16.msrb.mxu3 %v557_v28 }
 0x1e0   :  { %v2826_v57 = vpop.permute.xlu1 %428  ;;  %v2853_v46 = vpop.permute.xlu2 %464 }
 0x1e1   :  { %v529_v62 = vpop.permute.xlu0 %528 }
 0x1e2   :  { %v536_v0 = vsel %vm290_vm0, %v527_v13, %v529_v62  ;;  %v506_v13 = vmul.f32 %v504_v30, %v242_v63 }
 0x1e3   :  { %v538_v37 = vmul.f32 %v536_v0, %v298_v44 }
 0x1e4   :  { %v554_v14 = vpack.c.bf16 %v522_v4, %v506_v13 }
 0x1e5   :  { %v558_v31 = vpack.c.bf16 %v538_v37, %v538_v37 }
 0x1e7   :  { %v573_v1 = vsel %vm341_vm1, %v558_v31, 0 }
 0x1e8   :  { %587 = vmatpush.bf16.msrb.mxu0 %v573_v1  ;;  %v531_v10 = vpop.permute.xlu1 %530  ;;  %v415_v31 = vpop.permute.xlu2 %414 }
 0x1e9   :  { %v534_v32 = vsel %vm290_vm0, %v531_v10, %v533_v61  ;;  %v535_v44 = vsel %vm290_vm0, %v529_v62, %v531_v10  ;;  %v2847_v0 = vpop.permute.xlu0 %444 }
 0x1ea   :  { %v539_v37 = vmul.f32 %v535_v44, %v299_v45  ;;  %v540_v59 = vmul.f32 %v534_v32, %v300_v17  ;;  %v475_v44 = vmul.f32 %v2728_v51, %v187_v20  ;;  %v476_v51 = vmul.f32 %v2762_v53, %v188_v54 }
 0x1ec   :  { %588 = vmatpush.bf16.msrb.mxu0 %v554_v14  ;;  %v559_v33 = vpack.c.bf16 %v539_v37, %v539_v37  ;;  %v560_v63 = vpack.c.bf16 %v540_v59, %v540_v59 }
 0x1ee   :  { %v576_v28 = vsel %vm341_vm1, %v559_v33, 0  ;;  %v579_v61 = vsel %vm341_vm1, %v560_v63, 0  ;;  %v477_v33 = vmul.f32 %v2739_v52, %v189_v56 }
 0x1ef   :  { %600 = vmatpush.bf16.msrb.mxu1 %v576_v28  ;;  %613 = vmatpush.bf16.msrb.mxu2 %v579_v61 }
 0x1f0   :  { %v499_v62 = vpop.permute.xlu1 %498  ;;  %v431_v14 = vpop.permute.xlu2 %430 }
 0x1f1   :  { %v461_v30 = vpop.permute.xlu0 %460  ;;  %v502_v45 = vsel %vm234_vm2, %v499_v62, %v501_v6  ;;  %v503_v8 = vsel %vm234_vm2, %v497_v29, %v499_v62  ;;  %v435_v54 = vsel %vm107_vm8, %v2826_v57, %v431_v14  ;;  %v419_v62 = vsel %vm80_vm7, %v2816_v19, %v415_v31 }
 0x1f2   :  { %v507_v10 = vmul.f32 %v503_v8, %v243_v5  ;;  %v508_v32 = vmul.f32 %v502_v45, %v244_v26  ;;  %v474_v5 = vmul.f32 %v2725_v58, %v186_v16  ;;  %v440_v8 = vmul.f32 %v435_v54, %v117_v43  ;;  %v719_v43 = vld [vmem:[#allocation2 + $0x178] sm:$0xff] }
 0x1f8   :  { %v515_v17 = vpop.permute.xlu1 %514  ;;  %v459_v45 = vpop.permute.xlu2 %458 }
 0x1f9   :  { %v518_v4 = vsel %vm262_vm3, %v515_v17, %v517_v38  ;;  %v519_v1 = vsel %vm262_vm3, %v513_v25, %v515_v17  ;;  %v481_v13 = vpop.permute.xlu0 %480 }
 0x1fa   :  { %v523_v6 = vmul.f32 %v519_v1, %v271_v60  ;;  %v524_v29 = vmul.f32 %v518_v4, %v272_v27  ;;  %v487_v38 = vsel %vm206_vm4, %v481_v13, %v2818_v2  ;;  %v488_v25 = vsel %vm206_vm4, %v2807_v9, %v481_v13 }
 0x1fb   :  { %v490_v23 = vmul.f32 %v488_v25, %v214_v21  ;;  %v491_v26 = vmul.f32 %v487_v38, %v215_v22 }
 0x1fc   :  { %v555_v24 = vpack.c.bf16 %v523_v6, %v507_v10  ;;  %v556_v27 = vpack.c.bf16 %v524_v29, %v508_v32  ;;  %v4032_v32 = vperm.slane %v2580_v40, 0 }
 0x1fd   :  { %v550_v60 = vpack.c.bf16 %v490_v23, %v474_v5  ;;  %v551_v59 = vpack.c.bf16 %v491_v26, %v475_v44  ;;  %v4035_v23 = vperm.slane %v2575_v39, 1  ;;  %v718_v44 = vld [vmem:[#allocation2 + $0x170] sm:$0xff] }
 0x1fe   :  { %601 = vmatpush.bf16.msrb.mxu1 %v555_v24  ;;  %614 = vmatpush.bf16.msrb.mxu2 %v556_v27 }
 0x1ff   :  { %589 = vmatpush.bf16.msrb.mxu0 %v550_v60 }
 0x200   :  { %v447_v37 = vpop.permute.xlu1 %446 }
 0x201   :  { %v485_v16 = vpop.permute.xlu0 %484 }
 0x202   :  { %v486_v21 = vsel %vm206_vm4, %v2818_v2, %v485_v16  ;;  %v489_v22 = vsel %vm206_vm4, %v485_v16, %v2807_v9  ;;  %602 = vmatpush.bf16.msrb.mxu1 %v551_v59  ;;  %v450_v9 = vsel %vm135_vm5, %v447_v37, %v2830_v15  ;;  %v717_v16 = vld [vmem:[#allocation2 + $0x168] sm:$0xff] }
 0x203   :  { %v492_v58 = vmul.f32 %v486_v21, %v216_v11  ;;  %v493_v20 = vmul.f32 %v489_v22, %v217_v12  ;;  %v451_v11 = vsel %vm135_vm5, %v2847_v0, %v447_v37  ;;  %v457_v53 = vmul.f32 %v450_v9, %v146_v41  ;;  %v716_v21 = vld [vmem:[#allocation2 + $0x160] sm:$0xff] }
 0x204   :  { %v456_v52 = vmul.f32 %v451_v11, %v145_v47  ;;  %v4031_v47 = vperm.slane %v2637_v3, 2  ;;  %v469_v41 = vsel %vm163_vm6, %v2853_v46, %v459_v45 }
 0x205   :  { %v552_v2 = vpack.c.bf16 %v492_v58, %v476_v51  ;;  %v553_v63 = vpack.c.bf16 %v493_v20, %v477_v33  ;;  %v470_v6 = vmul.f32 %v469_v41, %v4032_v32  ;;  %v4038_v51 = vperm.slane %v2642_v18, 0  ;;  %v707_v41 = vld [vmem:[#allocation2 + $0x118] sm:$0xff]  ;;  %v704_v32 = vld [vmem:[#allocation2 + $0x100] sm:$0xff] }
 0x206   :  { %v424_v1 = vmul.f32 %v419_v62, %v4031_v47  ;;  %v711_v62 = vld [vmem:[#allocation2 + $0x138] sm:$0xff]  ;;  %v708_v47 = vld [vmem:[#allocation2 + $0x120] sm:$0xff] }
 0x207   :  { %615 = vmatpush.bf16.msrb.mxu2 %v552_v2  ;;  %628 = vmatpush.bf16.msrb.mxu3 %v553_v63  ;;  %v4039_v2 = vperm.slane %v2642_v18, 1 }
 0x208   :  { %v463_v55 = vpop.permute.xlu1 %462  ;;  %v544_v10 = vpack.c.bf16 %v440_v8, %v424_v1  ;;  %v700_v8 = vld [vmem:[#allocation2 + $0xe0] sm:$0xff]  ;;  %v698_v1 = vld [vmem:[#allocation2 + $0xd0] sm:$0xff] }
 0x209   :  { %v466_v48 = vsel %vm163_vm6, %v463_v55, %v2853_v46  ;;  %v467_v56 = vsel %vm163_vm6, %v461_v30, %v463_v55  ;;  %v417_v12 = vpop.permute.xlu0 %416  ;;  %v4040_v55 = vperm.slane %v2637_v3, 0 }
 0x20a   :  { %v472_v28 = vmul.f32 %v467_v56, %v173_v49  ;;  %v473_v61 = vmul.f32 %v466_v48, %v174_v42  ;;  %v468_v42 = vsel %vm163_vm6, %v459_v45, %v461_v30  ;;  %v418_v49 = vsel %vm80_vm7, %v415_v31, %v417_v12  ;;  %v710_v45 = vld [vmem:[#allocation2 + $0x130] sm:$0xff] }
 0x20b   :  { %v4033_v30 = vperm.slane %v2580_v40, 1  ;;  %v4034_v31 = vperm.slane %v2575_v39, 0  ;;  %v4037_v40 = vperm.slane %v2642_v18, 3  ;;  %v4041_v48 = vperm.slane %v2637_v3, 1 }
 0x20c   :  { %v548_v17 = vpack.c.bf16 %v472_v28, %v456_v52  ;;  %v549_v4 = vpack.c.bf16 %v473_v61, %v457_v53  ;;  %v714_v52 = vld [vmem:[#allocation2 + $0x150] sm:$0xff]  ;;  %v703_v28 = vld [vmem:[#allocation2 + $0xf8] sm:$0xff]  ;;  %v713_v61 = vld [vmem:[#allocation2 + $0x148] sm:$0xff] }
 0x20d   :  { %v471_v25 = vmul.f32 %v468_v42, %v4033_v30  ;;  %v697_v42 = vld [vmem:[#allocation2 + $0xc8] sm:$0xff]  ;;  %v690_v30 = vld [vmem:[#allocation2 + $0x90] sm:$0xff] }
 0x20e   :  { %616 = vmatpush.bf16.msrb.mxu2 %v548_v17  ;;  %629 = vmatpush.bf16.msrb.mxu3 %v549_v4  ;;  %v709_v17 = vld [vmem:[#allocation2 + $0x128] sm:$0xff]  ;;  %v699_v4 = vld [vmem:[#allocation2 + $0xd8] sm:$0xff] }
 0x210   :  { %v443_v13 = vpop.permute.xlu1 %442 }
 0x211   :  { %v452_v29 = vsel %vm135_vm5, %v443_v13, %v2847_v0  ;;  %v453_v46 = vsel %vm135_vm5, %v2830_v15, %v443_v13  ;;  %v433_v38 = vpop.permute.xlu0 %432  ;;  %v562_v0 = vld [vmem:[%s3989_s4] sm:$0xf]  ;;  %v4036_v15 = vperm.slane %v2637_v3, 3  ;;  %v701_v3 = vld [vmem:[#allocation2 + $0xe8] sm:$0xff] }
 0x212   :  { %v454_v5 = vmul.f32 %v453_v46, %v4034_v31  ;;  %v455_v26 = vmul.f32 %v452_v29, %v4035_v23  ;;  %v434_v24 = vsel %vm107_vm8, %v431_v14, %v433_v38  ;;  %617 = vmatpush.bf16.msrb.mxu2 %v544_v10  ;;  %v696_v13 = vld [vmem:[#allocation2 + $0xc0] sm:$0xff]  ;;  %v705_v10 = vld [vmem:[#allocation2 + $0x108] sm:$0xff]  ;;  %v567_v23 = vpop.permute.xlu2 %566 }
 0x213   :  { %v425_v27 = vmul.f32 %v418_v49, %v4036_v15  ;;  %v441_v60 = vmul.f32 %v434_v24, %v4037_v40  ;;  %v706_v49 = vld [vmem:[#allocation2 + $0x110] sm:$0xff]  ;;  %v693_v29 = vld [vmem:[#allocation2 + $0xa8] sm:$0xff]  ;;  %v692_v46 = vld [vmem:[#allocation2 + $0xa0] sm:$0xff] }
 0x214   :  { %v546_v37 = vpack.c.bf16 %v470_v6, %v454_v5  ;;  %v547_v59 = vpack.c.bf16 %v471_v25, %v455_v26  ;;  %v694_v6 = vld [vmem:[#allocation2 + $0xb0] sm:$0xff]  ;;  %v689_v25 = vld [vmem:[#allocation2 + $0x88] sm:$0xff]  ;;  %v688_v31 = vld [vmem:[#allocation2 + $0x80] sm:$0xff] }
 0x215   :  { %2015 = vmatmul.msk.bf16.vlgmr.msrb.gmra.mxu2 %vm337_vm9, %v562_v0  ;;  %v545_v39 = vpack.c.bf16 %v441_v60, %v425_v27 }
 0x216   :  { %776 = vmatpush.msra.mxu2 %v719_v43  ;;  %590 = vmatpush.bf16.msrb.mxu0 %v546_v37  ;;  %v695_v43 = vld [vmem:[#allocation2 + $0xb8] sm:$0xff] }
 0x217   :  { %603 = vmatpush.bf16.msrb.mxu1 %v547_v59  ;;  %630 = vmatpush.bf16.msrb.mxu3 %v545_v39 }
 0x218   :  { %777 = vmatpush.msra.mxu2 %v718_v44  ;;  %v427_v14 = vpop.permute.xlu1 %426 }
 0x219   :  { %v436_v22 = vsel %vm107_vm8, %v427_v14, %v2826_v57  ;;  %v437_v58 = vsel %vm107_vm8, %v433_v38, %v427_v14  ;;  %v411_v20 = vpop.permute.xlu0 %410  ;;  %v715_v57 = vld [vmem:[#allocation2 + $0x158] sm:$0xff] }
 0x21a   :  { %778 = vmatpush.msra.mxu2 %v717_v16  ;;  %v438_v33 = vmul.f32 %v437_v58, %v4038_v51  ;;  %v439_v63 = vmul.f32 %v436_v22, %v4039_v2  ;;  %v420_v9 = vsel %vm80_vm7, %v411_v20, %v2816_v19  ;;  %v421_v11 = vsel %vm80_vm7, %v417_v12, %v411_v20  ;;  %v712_v19 = vld [vmem:[#allocation2 + $0x140] sm:$0xff]  ;;  %v702_v12 = vld [vmem:[#allocation2 + $0xf0] sm:$0xff]  ;;  %v691_v38 = vld [vmem:[#allocation2 + $0x98] sm:$0xff] }
 0x21b   :  { %2016 = vmatmul.msk.bf16.vlgmr.msrb.gmra.mxu3 %vm337_vm9, %v562_v0  ;;  %v422_v54 = vmul.f32 %v421_v11, %v4040_v55  ;;  %v423_v56 = vmul.f32 %v420_v9, %v4041_v48  ;;  %v687_v51 = vld [vmem:[#allocation2 + $0x78] sm:$0xff] }
 0x21c   :  { %779 = vmatpush.msra.mxu2 %v716_v21 }
 0x21d   :  { %v542_v18 = vpack.c.bf16 %v438_v33, %v422_v54  ;;  %v543_v53 = vpack.c.bf16 %v439_v63, %v423_v56  ;;  %v735_v33 = vld [vmem:[#allocation2 + $0x1f8] sm:$0xff] }
 0x21e   :  { %780 = vmatpush.msra.mxu2 %v715_v57  ;;  %796 = vmatpush.msra.mxu3 %v735_v33 }
 0x21f   :  { %591 = vmatpush.bf16.msrb.mxu0 %v542_v18  ;;  %604 = vmatpush.bf16.msrb.mxu1 %v543_v53 }
 0x220   :  { %781 = vmatpush.msra.mxu2 %v714_v52 }
 0x222   :  { %782 = vmatpush.msra.mxu2 %v713_v61  ;;  %2013 = vmatmul.msk.bf16.vlgmr.msrb.gmra.mxu0 %vm337_vm9, %v562_v0 }
 0x223   :  { %756 = vmatpush.msra.mxu1 %v703_v28  ;;  %736 = vmatpush.msra.mxu0 %v687_v51 }
 0x224   :  { %2014 = vmatmul.msk.bf16.vlgmr.msrb.gmra.mxu1 %vm337_vm9, %v562_v0  ;;  %783 = vmatpush.msra.mxu2 %v712_v19 }
 0x225   :  { %757 = vmatpush.msra.mxu1 %v702_v12 }
 0x226   :  { %784 = vmatpush.msra.mxu2 %v711_v62  ;;  %v686_v62 = vld [vmem:[#allocation2 + $0x70] sm:$0xff] }
 0x227   :  { %758 = vmatpush.msra.mxu1 %v701_v3  ;;  %v734_v3 = vld [vmem:[#allocation2 + $0x1f0] sm:$0xff]  ;;  %737 = vmatpush.msra.mxu0 %v686_v62  ;;  %v3063_v62 = vld [vmem:[%s3986_s1 + $0x8] sm:$0xff] }
 0x228   :  { %785 = vmatpush.msra.mxu2 %v710_v45  ;;  %797 = vmatpush.msra.mxu3 %v734_v3  ;;  %v685_v45 = vld [vmem:[#allocation2 + $0x68] sm:$0xff]  ;;  %v3078_v3 = vld [vmem:[%s3986_s1 + $0x18] sm:$0xff] }
 0x229   :  { %759 = vmatpush.msra.mxu1 %v700_v8  ;;  %v733_v8 = vld [vmem:[#allocation2 + $0x1e8] sm:$0xff]  ;;  %738 = vmatpush.msra.mxu0 %v685_v45  ;;  %v3095_v45 = vld [vmem:[%s3986_s1 + $0x10] sm:$0xff] }
 0x22a   :  { %786 = vmatpush.msra.mxu2 %v709_v17  ;;  %798 = vmatpush.msra.mxu3 %v733_v8  ;;  %v684_v17 = vld [vmem:[#allocation2 + $0x60] sm:$0xff]  ;;  %v867_v8 = vld [vmem:[%s3992_s7 + $0x8] sm:$0xff] }
 0x22b   :  { %760 = vmatpush.msra.mxu1 %v699_v4  ;;  %v732_v4 = vld [vmem:[#allocation2 + $0x1e0] sm:$0xff]  ;;  %739 = vmatpush.msra.mxu0 %v684_v17 }
 0x22c   :  { %787 = vmatpush.msra.mxu2 %v708_v47  ;;  %799 = vmatpush.msra.mxu3 %v732_v4  ;;  %v683_v47 = vld [vmem:[#allocation2 + $0x58] sm:$0xff]  ;;  %v2131_v4 = vld [vmem:[%s3996_s11 + $0x8] ss:$0 sm:$0xff] }
 0x22d   :  { %761 = vmatpush.msra.mxu1 %v698_v1  ;;  %v731_v1 = vld [vmem:[#allocation2 + $0x1d8] sm:$0xff]  ;;  %740 = vmatpush.msra.mxu0 %v683_v47 }
 0x22e   :  { %788 = vmatpush.msra.mxu2 %v707_v41  ;;  %v682_v41 = vld [vmem:[#allocation2 + $0x50] sm:$0xff]  ;;  %800 = vmatpush.msra.mxu3 %v731_v1  ;;  %v2130_v1 = vld [vmem:[%s3996_s11 + $0x7] ss:$0 sm:$0xff] }
 0x22f   :  { %762 = vmatpush.msra.mxu1 %v697_v42  ;;  %v730_v42 = vld [vmem:[#allocation2 + $0x1d0] sm:$0xff]  ;;  %741 = vmatpush.msra.mxu0 %v682_v41 }
 0x230   :  { %789 = vmatpush.msra.mxu2 %v706_v49  ;;  %v681_v49 = vld [vmem:[#allocation2 + $0x48] sm:$0xff]  ;;  %801 = vmatpush.msra.mxu3 %v730_v42 }
 0x231   :  { %763 = vmatpush.msra.mxu1 %v696_v13  ;;  %v729_v13 = vld [vmem:[#allocation2 + $0x1c8] sm:$0xff]  ;;  %742 = vmatpush.msra.mxu0 %v681_v49  ;;  %v2127_v49 = vld [vmem:[%s3996_s11 + $0x6] ss:$0 sm:$0xff] }
 0x232   :  { %790 = vmatpush.msra.mxu2 %v705_v10  ;;  %v680_v10 = vld [vmem:[#allocation2 + $0x40] sm:$0xff]  ;;  %802 = vmatpush.msra.mxu3 %v729_v13 }
 0x233   :  { %764 = vmatpush.msra.mxu1 %v695_v43  ;;  %v728_v43 = vld [vmem:[#allocation2 + $0x1c0] sm:$0xff]  ;;  %743 = vmatpush.msra.mxu0 %v680_v10 }
 0x234   :  { %791 = vmatpush.msra.mxu2 %v704_v32  ;;  %803 = vmatpush.msra.mxu3 %v728_v43  ;;  %v679_v32 = vld [vmem:[#allocation2 + $0x38] sm:$0xff] }
 0x235   :  { %765 = vmatpush.msra.mxu1 %v694_v6  ;;  %v727_v6 = vld [vmem:[#allocation2 + $0x1b8] sm:$0xff]  ;;  %744 = vmatpush.msra.mxu0 %v679_v32 }
 0x236   :  { %940 = vmatpush.xpose.msrb.mxu2 %v2736_v50  ;;  %804 = vmatpush.msra.mxu3 %v727_v6  ;;  %v2133_v6 = vld [vmem:[%s3996_s11 + $0x4] ss:$0 sm:$0xff] }
 0x237   :  { %766 = vmatpush.msra.mxu1 %v693_v29  ;;  %v678_v29 = vld [vmem:[#allocation2 + $0x30] sm:$0xff] }
 0x238   :  { %745 = vmatpush.msra.mxu0 %v678_v29  ;;  %v2134_v29 = vld [vmem:[%s3996_s11 + $0x5] ss:$0 sm:$0xff] }
 0x239   :  { %767 = vmatpush.msra.mxu1 %v692_v46  ;;  %v726_v46 = vld [vmem:[#allocation2 + $0x1b0] sm:$0xff] }
 0x23a   :  { %941 = vmatpush.xpose.msrb.mxu2 %v2722_v34  ;;  %805 = vmatpush.msra.mxu3 %v726_v46 }
 0x23b   :  { %768 = vmatpush.msra.mxu1 %v691_v38  ;;  %v677_v38 = vld [vmem:[#allocation2 + $0x28] sm:$0xff] }
 0x23c   :  { %746 = vmatpush.msra.mxu0 %v677_v38  ;;  %v2145_v38 = vld [vmem:[%s3988_s3] sm:$0xff]  ;;  %s2267_s3 = smov [#allocation5]  }
 0x23d   :  { %769 = vmatpush.msra.mxu1 %v690_v30  ;;  %v725_v30 = vld [vmem:[#allocation2 + $0x1a8] sm:$0xff] }
 0x23e   :  { %806 = vmatpush.msra.mxu3 %v725_v30 }
 0x23f   :  { %770 = vmatpush.msra.mxu1 %v689_v25  ;;  %v676_v25 = vld [vmem:[#allocation2 + $0x20] sm:$0xff] }
 0x240   :  { %747 = vmatpush.msra.mxu0 %v676_v25  ;;  %v2132_v25 = vld [vmem:[%s3996_s11 + $0x3] ss:$0 sm:$0xff] }
 0x241   :  { %771 = vmatpush.msra.mxu1 %v688_v31  ;;  %v724_v31 = vld [vmem:[#allocation2 + $0x1a0] sm:$0xff] }
 0x242   :  { %807 = vmatpush.msra.mxu3 %v724_v31 }
 0x243   :  { %917 = vmatpush.xpose.msrb.mxu1 %v2759_v35 }
 0x247   :  { %918 = vmatpush.xpose.msrb.mxu1 %v2720_v36 }
 0x298   :  { %v619_v5 = vpop.f32.mrf.mxu2 }
 0x299   :  { %v620_v24 = vadd.f32 %v619_v5, %v567_v23  ;;  %v675_v5 = vld [vmem:[#allocation2 + $0x18] sm:$0xff] }
 0x29a   :  { %748 = vmatpush.msra.mxu0 %v675_v5 }
 0x29b   :  { %v638_v37 = vmax.f32 %v620_v24, 0.0  ;;  %v722_v24 = vld [vmem:[#allocation2 + $0x190] sm:$0xff] }
 0x29e   :  { %v632_v26 = vpop.f32.mrf.mxu3 }
 0x29f   :  { %v633_v0 = vadd.f32 %v632_v26, %v567_v23  ;;  %v593_v15 = vpop.f32.mrf.mxu0  ;;  %v674_v26 = vld [vmem:[#allocation2 + $0x10] sm:$0xff] }
 0x2a0   :  { %v594_v27 = vadd.f32 %v593_v15, %v567_v23  ;;  %v621_v60 = vpop.f32.mrf.mxu2  ;;  %749 = vmatpush.msra.mxu0 %v674_v26  ;;  %v721_v15 = vld [vmem:[#allocation2 + $0x188] sm:$0xff] }
 0x2a1   :  { %v606_v40 = vpop.f32.mrf.mxu1  ;;  %v639_v39 = vmax.f32 %v633_v0, 0.0  ;;  %v673_v0 = vld [vmem:[#allocation2 + $0x8] sm:$0xff] }
 0x2a2   :  { %v607_v44 = vadd.f32 %v606_v40, %v567_v23  ;;  %v636_v59 = vmax.f32 %v594_v27, 0.0  ;;  %v723_v23 = vld [vmem:[#allocation2 + $0x198] sm:$0xff]  ;;  %750 = vmatpush.msra.mxu0 %v673_v0  ;;  %v672_v27 = vld [vmem:[#allocation2] sm:$0xff] }
 0x2a3   :  { %808 = vmatpush.msra.mxu3 %v723_v23  ;;  %v720_v40 = vld [vmem:[#allocation2 + $0x180] sm:$0xff] }
 0x2a4   :  { %v637_v16 = vmax.f32 %v607_v44, 0.0  ;;  %v2090_v14 = vpack.i.bf16 %v638_v37, %v636_v59  ;;  %751 = vmatpush.msra.mxu0 %v672_v27  ;;  %v2129_v27 = vld [vmem:[%s3996_s11 + $0x1] ss:$0 sm:$0xff] }
 0x2a5   :  { %809 = vmatpush.msra.mxu3 %v722_v24  ;;  %v2128_v24 = vld [vmem:[%s3996_s11 + $0x2] ss:$0 sm:$0xff] }
 0x2a6   :  { %v2095_v21 = vpack.i.bf16 %v637_v16, %v639_v39  ;;  %v634_v22 = vpop.f32.mrf.mxu3  ;;  %2091 = vrot.lane.b32.xlu0 %v2090_v14, %s2254_s20 }
 0x2a7   :  { %v595_v58 = vpop.f32.mrf.mxu0  ;;  %810 = vmatpush.msra.mxu3 %v721_v15 }
 0x2a8   :  { %2096 = vrot.lane.b32.xlu1 %v2095_v21, %s2254_s20 }
 0x2a9   :  { %v608_v20 = vpop.f32.mrf.mxu1  ;;  %811 = vmatpush.msra.mxu3 %v720_v40  ;;  %v2135_v40 = vld [vmem:[%s3996_s11] ss:$0 sm:$0xff] }
 0x318   :  { %v2092_v2 = vpop.permute.xlu0 %2091 }
 0x319   :  { %v2094_v9 = vunpack.i.h.bf16 %v2092_v2  ;;  %v2093_v11 = vunpack.i.l.bf16 %v2092_v2 }
 0x31a   :  { %v2097_v63 = vpop.permute.xlu1 %2096 }
 0x31b   :  { %v2099_v57 = vunpack.i.h.bf16 %v2097_v63  ;;  %v2098_v55 = vunpack.i.l.bf16 %v2097_v63 }
 0x31d   :  { %v648_v54 = vsel %vm206_vm4, %v2094_v9, %v2098_v55  ;;  %v649_v48 = vsel %vm206_vm4, %v2099_v57, %v2094_v9  ;;  %v650_v56 = vsel %vm206_vm4, %v2093_v11, %v2099_v57  ;;  %v651_v52 = vsel %vm206_vm4, %v2098_v55, %v2093_v11 }
 0x31e   :  { %v3000_v18 = vmax.f32 %v638_v37, %v648_v54  ;;  %v3002_v53 = vmax.f32 %v639_v39, %v651_v52  ;;  %v3004_v28 = vmax.f32 %v636_v59, %v650_v56  ;;  %v3006_v61 = vmax.f32 %v637_v16, %v649_v48 }
 0x320   :  { %v2100_v19 = vpack.i.bf16 %v3002_v53, %v3000_v18  ;;  %v2105_v12 = vpack.i.bf16 %v3006_v61, %v3004_v28 }
 0x322   :  { %2101 = vrot.lane.b32.xlu2 %v2100_v19, %s2253_s17  ;;  %2106 = vrot.lane.b32.xlu0 %v2105_v12, %s2253_s17  ;;  %v866_v19 = vld [vmem:[%s3992_s7] sm:$0xff] }
 0x323   :  { %v3056_v12 = vld [vmem:[%s3986_s1] sm:$0xff]  ;;  %s1979_s1 = sshll.u32 %s4000_s15, 4  ;;  %s1980_s1 = int_to_ptr.hbm [resolvable:$true] %s1979_s1 }
 0x37c   :  { %v2102_v60 = vpop.permute.xlu2 %2101 }
 0x37d   :  { %v2104_v44 = vunpack.i.h.bf16 %v2102_v60  ;;  %v2103_v37 = vunpack.i.l.bf16 %v2102_v60 }
 0x37f   :  { %v664_v59 = vsel %vm262_vm3, %v2103_v37, %v2104_v44 }
 0x380   :  { %v670_v39 = vmax.f32 %v3000_v18, %v664_v59 }
 0x382   :  { %792 = vmatmul.f32.vlgmr.msra.gmra.mxu2 %v670_v39 }
 0x38a   :  { %942 = vmatmul.f32.vlgmr.msrb.gmra.mxu2 %v2722_v34 }
 0x392   :  { %945 = vmatmul.f32.gmra.mxu2 %v2736_v50 }
 0x394   :  { %v2107_v16 = vpop.permute.xlu0 %2106 }
 0x395   :  { %v2109_v14 = vunpack.i.h.bf16 %v2107_v16  ;;  %v2108_v21 = vunpack.i.l.bf16 %v2107_v16 }
 0x397   :  { %v665_v22 = vsel %vm262_vm3, %v2109_v14, %v2103_v37  ;;  %v666_v58 = vsel %vm262_vm3, %v2108_v21, %v2109_v14  ;;  %v667_v20 = vsel %vm262_vm3, %v2104_v44, %v2108_v21  ;;  %v2060_v21 = vld [vmem:[%s3991_s6] sm:$0xff] }
 0x398   :  { %v669_v51 = vmax.f32 %v3006_v61, %v665_v22  ;;  %v668_v33 = vmax.f32 %v3004_v28, %v666_v58  ;;  %v671_v34 = vmax.f32 %v3002_v53, %v667_v20 }
 0x39a   :  { %752 = vmatmul.f32.vlgmr.msra.gmra.mxu0 %v668_v33  ;;  %772 = vmatmul.f32.vlgmr.msra.gmra.mxu1 %v669_v51 }
 0x39b   :  { %812 = vmatmul.f32.vlgmr.msra.gmra.mxu3 %v671_v34 }
 0x3a2   :  { %919 = vmatmul.f32.vlgmr.msrb.gmra.mxu1 %v2720_v36 }
 0x3aa   :  { %922 = vmatmul.f32.gmra.mxu1 %v2759_v35 }
 0x405   :  { %v793_v50 = vpop.f32.mrf.mxu2 }
 0x40d   :  { %v943_v11 = vpop.f32.mrf.mxu2 }
 0x415   :  { %v946_v52 = vpop.f32.mrf.mxu2 }
 0x417   :  { %v753_v2 = vpop.f32.mrf.mxu0  ;;  %v773_v63 = vpop.f32.mrf.mxu1 }
 0x418   :  { %v774_v9 = vadd.f32 %v773_v63, %v753_v2 }
 0x41a   :  { %v794_v57 = vadd.f32 %v793_v50, %v774_v9 }
 0x41e   :  { %v813_v55 = vpop.f32.mrf.mxu3 }
 0x41f   :  { %v3030_v54 = vadd.f32 %v813_v55, %v794_v57  ;;  %v920_v48 = vpop.f32.mrf.mxu1 }
 0x420   :  { %v944_v56 = vadd.f32 %v943_v11, %v920_v48  ;;  %v3189_v48 = vld [vmem:[%s3995_s10 + $0x20] ss:$8 sm:$0xf] }
 0x421   :  { %849 = vrot.lane.b32.xlu0 %v3030_v54, %s2260_s18  ;;  %844 = vrot.lane.b32.xlu2 %v3030_v54, %s4018_s19  ;;  %v838_v23 = vmul.f32 %v2133_v6, %v3030_v54  ;;  %s2265_s19 = smov 64  }
 0x422   :  { %v949_v36 = vmin.f32 %v944_v56, 500000.0  ;;  %854 = vrot.lane.b32.xlu1 %v3030_v54, %s4016_s26  ;;  %v1228_v56 = vperm.slane %v3189_v48, 1 }
 0x424   :  { %v951_v35 = vmul.f32 0.00024414063, %v949_v36 }
 0x426   :  { %954 = vst.msk [vmem:[#allocation5] sm:$0xff] %vm953_vm10, %v951_v35 }
 0x427   :  { %v923_v18 = vpop.f32.mrf.mxu1 }
 0x428   :  { %v947_v53 = vadd.f32 %v946_v52, %v923_v18  ;;  %v3198_v52 = vld [vmem:[%s3995_s10 + $0x6] ss:$8 sm:$0xf] }
 0x429   :  { %831 = vrot.lane.b32.xlu0 %v3030_v54, %s2256_s21  ;;  %826 = vrot.lane.b32.xlu2 %v3030_v54, %s4014_s27 }
 0x42a   :  { %v950_v28 = vmin.f32 %v947_v53, 500000.0  ;;  %839 = vrot.lane.b32.xlu1 %v3030_v54, %s2254_s20  ;;  %v3205_v53 = vld [vmem:[%s3995_s10 + $0x7] ss:$8 sm:$0xf] }
 0x42c   :  { %v952_v61 = vmul.f32 0.00024414063, %v950_v28 }
 0x42e   :  { %955 = vst.msk [vmem:[#allocation5 + $0x8] sm:$0xff] %vm953_vm10, %v952_v61  ;;  %v1229_v61 = vperm.slane %v3189_v48, 2 }
 0x431   :  { %821 = vrot.lane.b32.xlu2 %v3030_v54, %s2250_s24  ;;  %875 = vperm.xlu0 %2110, %v867_v8  }
 0x432   :  { %816 = vrot.lane.b32.xlu1 %v3030_v54, %s4020_s28  ;;  %s1951_s28 = sshll.u32 %s2267_s3, 4  ;;  %s1952_s28 = int_to_ptr.vmem [resolvable:$true] %s1951_s28 }
 0x439   :  { %1213 = vrot.lane.b32.xlu2 %v3056_v12, %s2251_s30  ;;  %1217 = vrot.lane.b32.xlu0 %v3095_v45, %s2251_s30 }
 0x43a   :  { %870 = vperm.xlu1 %2111, %v866_v19  }
 0x441   :  { %1163 = vrot.lane.b32.xlu2 %v3063_v62, %s2252_s16  ;;  %1187 = vrot.lane.b32.xlu0 %v3056_v12, %s2253_s17 }
 0x442   :  { %1215 = vrot.lane.b32.xlu1 %v3063_v62, %s2251_s30 }
 0x449   :  { %1165 = vrot.lane.b32.xlu2 %v3095_v45, %s2252_s16  ;;  %1135 = vrot.lane.b32.xlu0 %v3056_v12, %s2254_s20 }
 0x44a   :  { %1161 = vrot.lane.b32.xlu1 %v3056_v12, %s2252_s16 }
 0x451   :  { %1069 = vrot.lane.b32.xlu2 %v3056_v12, %s2255_s0  ;;  %1191 = vrot.lane.b32.xlu0 %v3095_v45, %s2253_s17 }
 0x452   :  { %1189 = vrot.lane.b32.xlu1 %v3063_v62, %s2253_s17 }
 0x459   :  { %1101 = vrot.lane.b32.xlu2 %v3078_v3, %s2256_s21  ;;  %1075 = vrot.lane.b32.xlu0 %v3078_v3, %s2255_s0 }
 0x45a   :  { %1137 = vrot.lane.b32.xlu1 %v3063_v62, %s2254_s20 }
 0x461   :  { %1193 = vrot.lane.b32.xlu2 %v3078_v3, %s2253_s17  ;;  %1139 = vrot.lane.b32.xlu0 %v3095_v45, %s2254_s20 }
 0x462   :  { %1219 = vrot.lane.b32.xlu1 %v3078_v3, %s2251_s30 }
 0x469   :  { %1017 = vrot.lane.b32.xlu0 %v3056_v12, %s2257_s22 }
 0x46a   :  { %1095 = vrot.lane.b32.xlu1 %v3056_v12, %s2256_s21 }
 0x471   :  { %1049 = vrot.lane.b32.xlu0 %v3078_v3, %s2258_s25 }
 0x472   :  { %1167 = vrot.lane.b32.xlu1 %v3078_v3, %s2252_s16 }
 0x479   :  { %1141 = vrot.lane.b32.xlu0 %v3078_v3, %s2254_s20 }
 0x47a   :  { %1023 = vrot.lane.b32.xlu1 %v3078_v3, %s2257_s22 }
 0x47b   :  { %v845_v17 = vpop.permute.xlu2 %844 }
 0x47c   :  { %v848_v46 = vmul.f32 %v2127_v49, %v845_v17 }
 0x481   :  { %1073 = vrot.lane.b32.xlu0 %v3095_v45, %s2255_s0 }
 0x482   :  { %1071 = vrot.lane.b32.xlu1 %v3063_v62, %s2255_s0 }
 0x483   :  { %v827_v10 = vpop.permute.xlu2 %826 }
 0x484   :  { %v830_v60 = vmul.f32 %v2128_v24, %v827_v10  ;;  %v3254_v24 = vld [vmem:[%s3995_s10 + $0x4] ss:$8 sm:$0xf] }
 0x489   :  { %1047 = vrot.lane.b32.xlu0 %v3095_v45, %s2258_s25 }
 0x48a   :  { %1019 = vrot.lane.b32.xlu1 %v3063_v62, %s2257_s22 }
 0x48b   :  { %v822_v44 = vpop.permute.xlu2 %821 }
 0x48c   :  { %v825_v39 = vmul.f32 %v2129_v27, %v822_v44  ;;  %v1124_v27 = vperm.slane %v3254_v24, 1 }
 0x492   :  { %1099 = vrot.lane.b32.xlu1 %v3095_v45, %s2256_s21 }
 0x493   :  { %v850_v47 = vpop.permute.xlu0 %849  ;;  %v3180_v11 = vpop.permute.xlu2 %1213 }
 0x494   :  { %v855_v41 = vpop.permute.xlu1 %854  ;;  %v853_v43 = vmul.f32 %v2130_v1, %v850_v47  ;;  %v1202_v47 = vperm.slane %v3205_v53, 1  ;;  %v1176_v1 = vperm.slane %v3198_v52, 1 }
 0x495   :  { %v858_v42 = vmul.f32 %v2131_v4, %v855_v41 }
 0x496   :  { %v862_v30 = vpack.c.bf16 %v853_v43, %v848_v46  ;;  %v3237_v46 = vld [vmem:[%s3995_s10 + $0x5] ss:$8 sm:$0xf] }
 0x497   :  { %v863_v13 = vpack.c.bf16 %v858_v42, %v858_v42 }
 0x499   :  { %v887_v32 = vsel %vm341_vm1, %v863_v13, 0 }
 0x49a   :  { %892 = vmatpush.bf16.msrb.mxu0 %v887_v32  ;;  %1263 = vperm.xlu1 %2111, %v2145_v38  }
 0x49b   :  { %v832_v5 = vpop.permute.xlu0 %831  ;;  %v1164_v54 = vpop.permute.xlu2 %1163 }
 0x49c   :  { %v840_v31 = vpop.permute.xlu1 %839  ;;  %v835_v15 = vmul.f32 %v2132_v25, %v832_v5 }
 0x49d   :  { %v843_v26 = vmul.f32 %v2134_v29, %v840_v31 }
 0x49e   :  { %893 = vmatpush.bf16.msrb.mxu0 %v862_v30  ;;  %v860_v37 = vpack.c.bf16 %v835_v15, %v830_v60  ;;  %v1175_v60 = vperm.slane %v3198_v52, 0 }
 0x49f   :  { %v861_v0 = vpack.c.bf16 %v843_v26, %v838_v23  ;;  %v1150_v26 = vperm.slane %v3237_v46, 1 }
 0x4a2   :  { %894 = vmatpush.bf16.msrb.mxu0 %v861_v0 }
 0x4a3   :  { %v876_v51 = vpop.permute.xlu0 %875  ;;  %v1166_v17 = vpop.permute.xlu2 %1165 }
 0x4a4   :  { %v817_v59 = vpop.permute.xlu1 %816  ;;  %v1170_v42 = vsel %vm234_vm2, %v1164_v54, %v1166_v17 }
 0x4a5   :  { %v820_v16 = vmul.f32 %v2135_v40, %v817_v59  ;;  %v1184_v32 = vmul.f32 %v1176_v1, %v1170_v42  ;;  %v1201_v40 = vperm.slane %v3205_v53, 0 }
 0x4a6   :  { %895 = vmatpush.bf16.msrb.mxu0 %v860_v37 }
 0x4a7   :  { %v859_v14 = vpack.c.bf16 %v825_v39, %v820_v16  ;;  %v1132_v39 = vmul.f32 %v1124_v27, %v3063_v62 }
 0x4aa   :  { %896 = vmatpush.bf16.msrb.mxu0 %v859_v14 }
 0x4ab   :  { %v1218_v34 = vpop.permute.xlu0 %1217  ;;  %v3241_v30 = vpop.permute.xlu2 %1069 }
 0x4ac   :  { %v871_v22 = vpop.permute.xlu1 %870 }
 0x4ad   :  { %2021 = vmatmul.msk.bf16.vlgmr.msrb.gmra.mxu0 %vm337_vm9, %v2060_v21 }
 0x4b3   :  { %v3174_v2 = vpop.permute.xlu0 %1187  ;;  %v1102_v14 = vpop.permute.xlu2 %1101 }
 0x4b4   :  { %v3168_v58 = vpop.permute.xlu1 %1215 }
 0x4b5   :  { %v1222_v35 = vsel %vm290_vm0, %v3168_v58, %v1218_v34 }
 0x4b6   :  { %v1236_v19 = vmul.f32 %v1228_v56, %v1222_v35 }
 0x4b8   :  { %v1256_v13 = vpack.c.bf16 %v1236_v19, %v1236_v19 }
 0x4ba   :  { %v1273_v25 = vsel %vm341_vm1, %v1256_v13, 0  ;;  %v3318_v13 = vld [vmem:[%s3995_s10 + $0x3] ss:$8 sm:$0xf] }
 0x4bb   :  { %v3178_v9 = vpop.permute.xlu0 %1135  ;;  %1297 = vmatpush.bf16.msra.mxu2 %v1273_v25 }
 0x4bc   :  { %v3170_v20 = vpop.permute.xlu1 %1161 }
 0x4bd   :  { %v1171_v37 = vsel %vm234_vm2, %v3170_v20, %v1164_v54 }
 0x4c3   :  { %v3184_v55 = vpop.permute.xlu0 %1191 }
 0x4c4   :  { %v1190_v33 = vpop.permute.xlu1 %1189 }
 0x4c5   :  { %v1196_v41 = vsel %vm262_vm3, %v1190_v33, %v3184_v55  ;;  %v1197_v44 = vsel %vm262_vm3, %v3174_v2, %v1190_v33 }
 0x4c6   :  { %v1210_v43 = vmul.f32 %v1202_v47, %v1196_v41  ;;  %v3281_v21 = vmul.f32 %v1201_v40, %v1197_v44  ;;  %v3302_v41 = vpop.permute.xlu2 %1193  ;;  %v4023_v44 = vperm.slane %v3318_v13, 3 }
 0x4c8   :  { %v1252_v5 = vpack.c.bf16 %v1210_v43, %v1184_v32 }
 0x4ca   :  { %1298 = vmatpush.bf16.msra.mxu2 %v1252_v5 }
 0x4cb   :  { %v3213_v8 = vpop.permute.xlu0 %1075 }
 0x4cc   :  { %v3172_v50 = vpop.permute.xlu1 %1137  ;;  %v1080_v23 = vsel %vm135_vm5, %v3213_v8, %v3241_v30 }
 0x4d3   :  { %v3239_v38 = vpop.permute.xlu0 %1139 }
 0x4d4   :  { %v3176_v63 = vpop.permute.xlu1 %1219  ;;  %v1144_v0 = vsel %vm206_vm4, %v3172_v50, %v3239_v38 }
 0x4d5   :  { %v1221_v4 = vsel %vm290_vm0, %v1218_v34, %v3176_v63  ;;  %v1158_v59 = vmul.f32 %v1150_v26, %v1144_v0  ;;  %v4026_v34 = vperm.slane %v3198_v52, 2 }
 0x4d6   :  { %v1237_v49 = vmul.f32 %v1229_v61, %v1221_v4 }
 0x4d7   :  { %v1248_v33 = vpack.c.bf16 %v1158_v59, %v1132_v39 }
 0x4d8   :  { %v1257_v29 = vpack.c.bf16 %v1237_v49, %v1237_v49  ;;  %v3313_v49 = vld [vmem:[%s3995_s10 + $0x2] ss:$8 sm:$0xf] }
 0x4d9   :  { %1299 = vmatpush.bf16.msra.mxu2 %v1248_v33  ;;  %v4029_v32 = vperm.slane %v3313_v49, 0 }
 0x4da   :  { %v1276_v15 = vsel %vm341_vm1, %v1257_v29, 0 }
 0x4db   :  { %1310 = vmatpush.bf16.msra.mxu0 %v1276_v15  ;;  %v3277_v16 = vpop.permute.xlu0 %1017  ;;  %v3333_v5 = vmul.f32 %v4029_v32, %v1080_v23 }
 0x4dc   :  { %v3182_v57 = vpop.permute.xlu1 %1095 }
 0x4dd   :  { %v1106_v29 = vsel %vm163_vm6, %v1102_v14, %v3182_v57 }
 0x4e3   :  { %v3300_v4 = vpop.permute.xlu0 %1049 }
 0x4e4   :  { %v3207_v28 = vpop.permute.xlu1 %1167 }
 0x4e5   :  { %v1169_v54 = vsel %vm234_vm2, %v1166_v17, %v3207_v28  ;;  %v1195_v17 = vsel %vm262_vm3, %v3184_v55, %v3302_v41  ;;  %v4027_v55 = vperm.slane %v3318_v13, 0 }
 0x4e6   :  { %v1185_v19 = vmul.f32 %v4026_v34, %v1169_v54  ;;  %v1111_v34 = vperm.slane %v3318_v13, 2 }
 0x4e7   :  { %v3337_v0 = vmul.f32 %v4027_v55, %v1106_v29  ;;  %v3417_v55 = vld [vmem:[%s3995_s10] ss:$8 sm:$0xf] }
 0x4eb   :  { %v3329_v25 = vpop.permute.xlu0 %1141 }
 0x4ec   :  { %v3244_v31 = vpop.permute.xlu1 %1023 }
 0x4f3   :  { %v1074_v23 = vpop.permute.xlu0 %1073 }
 0x4f4   :  { %v1077_v39 = vsel %vm135_vm5, %v1074_v23, %v3213_v8 }
 0x52a   :  { %v898_v36 = vpop.f32.mrf.mxu0 }
 0x52b   :  { %v3200_v18 = vadd.f32 %v898_v36, %v871_v22  ;;  %v3285_v22 = vmul.f32 %v1175_v60, %v1171_v37  ;;  %v4030_v36 = vperm.slane %v3205_v53, 2  ;;  %v4022_v37 = vperm.slane %v3313_v49, 3 }
 0x52d   :  { %958 = vrot.lane.b32.xlu2 %v3200_v18, %s2265_s19  ;;  %v1251_v35 = vpack.c.bf16 %v3281_v21, %v3285_v22  ;;  %v1211_v42 = vmul.f32 %v4030_v36, %v1195_v17  ;;  %v3356_v54 = vmul.f32 %v4022_v37, %v1077_v39  ;;  %v4025_v17 = vperm.slane %v3237_v46, 2 }
 0x52e   :  { %v1227_v37 = vperm.slane %v3189_v48, 0 }
 0x532   :  { %v900_v10 = vpop.f32.mrf.mxu0 }
 0x533   :  { %v3231_v6 = vadd.f32 %v900_v10, %v876_v51  ;;  %v3287_v51 = vpop.permute.xlu1 %1071  ;;  %v1253_v10 = vpack.c.bf16 %v1211_v42, %v1185_v19  ;;  %v4024_v42 = vperm.slane %v3254_v24, 2 }
 0x535   :  { %960 = vrot.lane.b32.xlu2 %v3231_v6, %s2265_s19  ;;  %1311 = vmatpush.bf16.msra.mxu0 %v1253_v10  ;;  %v1133_v10 = vmul.f32 %v4024_v42, %v3095_v45  ;;  %v1084_v42 = vperm.slane %v3313_v49, 1 }
 0x53b   :  { %v3320_v43 = vpop.permute.xlu1 %1019 }
 0x53d   :  { %1043 = vrot.lane.b32.xlu2 %v3056_v12, %s2258_s25 }
 0x543   :  { %v1100_v15 = vpop.permute.xlu1 %1099 }
 0x544   :  { %v1103_v59 = vsel %vm163_vm6, %v1100_v15, %v1102_v14  ;;  %v1143_v14 = vsel %vm206_vm4, %v3239_v38, %v3329_v25  ;;  %v1223_v38 = vsel %vm290_vm0, %v3180_v11, %v3168_v58  ;;  %v1123_v58 = vperm.slane %v3254_v24, 0 }
 0x545   :  { %1097 = vrot.lane.b32.xlu2 %v3063_v62, %s2256_s21  ;;  %v3352_v33 = vmul.f32 %v4023_v44, %v1103_v59  ;;  %v1159_v8 = vmul.f32 %v4025_v17, %v1143_v14  ;;  %v1110_v17 = vperm.slane %v3318_v13, 1 }
 0x547   :  { %v1246_v19 = vpack.c.bf16 %v3352_v33, %v3356_v54  ;;  %v1249_v29 = vpack.c.bf16 %v1159_v8, %v1133_v10  ;;  %v1149_v10 = vperm.slane %v3237_v46, 0 }
 0x549   :  { %1312 = vmatpush.bf16.msra.mxu0 %v1249_v29  ;;  %v4028_v29 = vperm.slane %v3313_v49, 2 }
 0x54d   :  { %1045 = vrot.lane.b32.xlu2 %v3063_v62, %s2258_s25  ;;  %v1243_v62 = vpack.c.bf16 %v3337_v0, %v3333_v5 }
 0x555   :  { %1021 = vrot.lane.b32.xlu2 %v3095_v45, %s2257_s22  ;;  %v1235_v45 = vmul.f32 %v1227_v37, %v1223_v38  ;;  %v1145_v38 = vsel %vm206_vm4, %v3178_v9, %v3172_v50  ;;  %v1079_v50 = vsel %vm135_vm5, %v3241_v30, %v3287_v51  ;;  %v1131_v30 = vmul.f32 %v1123_v58, %v3056_v12 }
 0x557   :  { %v1255_v8 = vpack.c.bf16 %v1235_v45, %v1235_v45  ;;  %v1078_v45 = vsel %vm135_vm5, %v3287_v51, %v1074_v23  ;;  %v1157_v23 = vmul.f32 %v1149_v10, %v1145_v38  ;;  %v3431_v51 = vld [vmem:[%s3995_s10 + $0x1] ss:$8 sm:$0xf] }
 0x558   :  { %v1059_v5 = vperm.slane %v3431_v51, 2 }
 0x559   :  { %v1270_v44 = vsel %vm341_vm1, %v1255_v8, 0 }
 0x587   :  { %v959_v59 = vpop.permute.xlu2 %958 }
 0x58f   :  { %v3371_v39 = vpop.permute.xlu2 %960 }
 0x590   :  { %2022 = vmatpush.xpose.msk.msra.mxu1 %vm962_vm11, %v3371_v39  ;;  %2064 = vmatpush.xpose.msk.msrb.mxu3 %vm962_vm11, %v3371_v39 }
 0x594   :  { %2023 = vmatpush.xpose.msk.msra.mxu1 %vm962_vm11, %v959_v59  ;;  %2065 = vmatpush.xpose.msk.msrb.mxu3 %vm962_vm11, %v959_v59 }
 0x597   :  { %v1044_v14 = vpop.permute.xlu2 %1043 }
 0x598   :  { %2024 = vmatpush.xpose.msk.msra.mxu1 %vm962_vm11, %v3231_v6  ;;  %2066 = vmatpush.xpose.msk.msrb.mxu3 %vm962_vm11, %v3231_v6  ;;  %v1054_v21 = vsel %vm107_vm8, %v3300_v4, %v1044_v14 }
 0x59c   :  { %2025 = vmatpush.xpose.msk.msra.mxu1 %vm962_vm11, %v3200_v18  ;;  %2067 = vmatpush.xpose.msk.msrb.mxu3 %vm962_vm11, %v3200_v18 }
 0x59f   :  { %2026 = vmatmul.msk.f32.vlgmr.msra.gmra.mxu1 %vm962_vm11, %v3200_v18  ;;  %2027 = vmatmul.msk.f32.vlgmr.msrb.gmra.mxu3 %vm962_vm11, %v3231_v6  ;;  %v1098_v8 = vpop.permute.xlu2 %1097  ;;  %v1092_v6 = vmul.f32 %v1084_v42, %v1079_v50  ;;  %v1247_v50 = vpack.c.bf16 %v1157_v23, %v1131_v30 }
 0x5a0   :  { %1284 = vmatpush.bf16.msrb.mxu1 %v1270_v44  ;;  %v1093_v44 = vmul.f32 %v4028_v29, %v1078_v45  ;;  %v1104_v38 = vsel %vm163_vm6, %v1098_v8, %v1100_v15  ;;  %v1105_v18 = vsel %vm163_vm6, %v3182_v57, %v1098_v8  ;;  %v1230_v45 = vperm.slane %v3189_v48, 3 }
 0x5a1   :  { %v1118_v12 = vmul.f32 %v1110_v17, %v1105_v18  ;;  %v1119_v29 = vmul.f32 %v1111_v34, %v1104_v38  ;;  %v1224_v57 = vsel %vm290_vm0, %v3176_v63, %v3180_v11  ;;  %v1031_v15 = vperm.slane %v3417_v55, 0 }
 0x5a2   :  { %v1057_v8 = vperm.slane %v3431_v51, 0  ;;  %v1028_v38 = vsel %vm80_vm7, %v3244_v31, %v3277_v16  ;;  %v1238_v22 = vmul.f32 %v1230_v45, %v1224_v57  ;;  %v1032_v63 = vperm.slane %v3417_v55, 1 }
 0x5a3   :  { %v1244_v32 = vpack.c.bf16 %v1118_v12, %v1092_v6  ;;  %v1245_v36 = vpack.c.bf16 %v1119_v29, %v1093_v44  ;;  %v1058_v11 = vperm.slane %v3431_v51, 1  ;;  %v1178_v29 = vperm.slane %v3198_v52, 3 }
 0x5a4   :  { %1285 = vmatpush.bf16.msrb.mxu1 %v1251_v35  ;;  %v1027_v35 = vsel %vm80_vm7, %v3277_v16, %v3320_v43  ;;  %v1039_v23 = vmul.f32 %v1031_v15, %v1028_v38  ;;  %v1204_v44 = vperm.slane %v3205_v53, 3  ;;  %v1065_v30 = vmul.f32 %v1057_v8, %v1054_v21  ;;  %v1259_v21 = vld [vmem:[%s3987_s2] sm:$0xf] }
 0x5a5   :  { %1300 = vmatpush.bf16.msra.mxu2 %v1244_v32  ;;  %1313 = vmatpush.bf16.msra.mxu0 %v1245_v36  ;;  %v1172_v18 = vsel %vm234_vm2, %v3207_v28, %v3170_v20  ;;  %v1198_v16 = vsel %vm262_vm3, %v3302_v41, %v3174_v2  ;;  %v1258_v6 = vpack.c.bf16 %v1238_v22, %v1238_v22  ;;  %v1048_v28 = vpop.permute.xlu0 %1047  ;;  %v1152_v57 = vperm.slane %v3237_v46, 3 }
 0x5a6   :  { %v1040_v12 = vmul.f32 %v1032_v63, %v1027_v35  ;;  %v1186_v20 = vmul.f32 %v1178_v29, %v1172_v18  ;;  %v1212_v2 = vmul.f32 %v1204_v44, %v1198_v16  ;;  %v1239_v41 = vpack.c.bf16 %v1065_v30, %v1039_v23 }
 0x5a7   :  { %2028 = vmatmul.msk.f32.gmra.mxu3 %vm962_vm11, %v959_v59  ;;  %v1046_v32 = vpop.permute.xlu2 %1045  ;;  %v1146_v38 = vsel %vm206_vm4, %v3329_v25, %v3178_v9  ;;  %v1279_v0 = vsel %vm341_vm1, %v1258_v6, 0  ;;  %v1034_v16 = vperm.slane %v3417_v55, 3  ;;  %v1060_v6 = vperm.slane %v3431_v51, 3 }
 0x5a8   :  { %1286 = vmatpush.bf16.msrb.mxu1 %v1247_v50  ;;  %v1053_v36 = vsel %vm107_vm8, %v1044_v14, %v1046_v32  ;;  %v1126_v50 = vperm.slane %v3254_v24, 3  ;;  %v1052_v22 = vsel %vm107_vm8, %v1046_v32, %v1048_v28  ;;  %v1254_v25 = vpack.c.bf16 %v1212_v2, %v1186_v20 }
 0x5a9   :  { %v1066_v59 = vmul.f32 %v1058_v11, %v1053_v36  ;;  %v1160_v35 = vmul.f32 %v1152_v57, %v1146_v38 }
 0x5aa   :  { %v1134_v30 = vmul.f32 %v1126_v50, %v3078_v3  ;;  %v1051_v3 = vsel %vm107_vm8, %v1048_v28, %v3300_v4 }
 0x5ab   :  { %v1240_v14 = vpack.c.bf16 %v1066_v59, %v1040_v12  ;;  %v1068_v59 = vmul.f32 %v1060_v6, %v1051_v3 }
 0x5ac   :  { %1287 = vmatpush.bf16.msrb.mxu1 %v1243_v62  ;;  %v1033_v62 = vperm.slane %v3417_v55, 2  ;;  %v1250_v36 = vpack.c.bf16 %v1160_v35, %v1134_v30 }
 0x5ad   :  { %1301 = vmatpush.bf16.msra.mxu2 %v1240_v14 }
 0x5af   :  { %2029 = vmatmul.msk.f32.gmra.mxu3 %vm962_vm11, %v3371_v39  ;;  %v1022_v9 = vpop.permute.xlu2 %1021  ;;  %v1067_v39 = vmul.f32 %v1059_v5, %v1052_v22 }
 0x5b0   :  { %1288 = vmatpush.bf16.msrb.mxu1 %v1239_v41  ;;  %v1026_v23 = vsel %vm80_vm7, %v3320_v43, %v1022_v9  ;;  %2039 = vmatmul.msk.bf16.vlgmr.msra.gmra.mxu2 %vm337_vm9, %v1259_v21  ;;  %v1025_v43 = vsel %vm80_vm7, %v1022_v9, %v3244_v31 }
 0x5b1   :  { %v1041_v32 = vmul.f32 %v1033_v62, %v1026_v23  ;;  %v1042_v12 = vmul.f32 %v1034_v16, %v1025_v43 }
 0x5b3   :  { %2038 = vmatmul.msk.bf16.vlgmr.msrb.gmra.mxu1 %vm337_vm9, %v1259_v21  ;;  %v1241_v18 = vpack.c.bf16 %v1067_v39, %v1041_v32  ;;  %v1242_v31 = vpack.c.bf16 %v1068_v59, %v1042_v12 }
 0x5b4   :  { %1323 = vmatpush.bf16.msra.mxu1 %v1279_v0 }
 0x5b5   :  { %1314 = vmatpush.bf16.msra.mxu0 %v1241_v18 }
 0x5b8   :  { %1324 = vmatpush.bf16.msra.mxu1 %v1254_v25  ;;  %2040 = vmatmul.msk.bf16.vlgmr.msra.gmra.mxu0 %vm337_vm9, %v1259_v21 }
 0x5bc   :  { %1325 = vmatpush.bf16.msra.mxu1 %v1250_v36 }
 0x5c0   :  { %1326 = vmatpush.bf16.msra.mxu1 %v1246_v19  ;;  %v1264_v19 = vpop.permute.xlu1 %1263 }
 0x5c4   :  { %1327 = vmatpush.bf16.msra.mxu1 %v1242_v31 }
 0x5c7   :  { %2041 = vmatmul.msk.bf16.vlgmr.msra.gmra.mxu1 %vm337_vm9, %v1259_v21 }
 0x61c   :  { %v988_v20 = vpop.f32.mrf.mxu1 }
 0x61d   :  { %v1000_v2 = vmin.f32 %v988_v20, 500000.0 }
 0x61f   :  { %v1004_v4 = vmul.f32 0.00048828125, %v1000_v2 }
 0x621   :  { %1009 = vst.msk [vmem:[#allocation6] sm:$0xff] %vm1008_vm12, %v1004_v4  ;;  %v1490_v4 = vld [vmem:[%s3990_s5] sm:$0xff]  ;;  %s1966_s5 = sshll.u32 %s3999_s14, 4  ;;  %s2268_s14 = smov [#allocation8]   ;;  %s1967_s5 = int_to_ptr.hbm [resolvable:$true] %s1966_s5 }
 0x622   :  { %v991_v28 = vpop.f32.mrf.mxu3  ;;  %s1977_s27 = sshll.u32 %s2268_s14, 4  ;;  %s1978_s27 = int_to_ptr.vmem [resolvable:$true] %s1977_s27 }
 0x623   :  { %v1001_v41 = vmin.f32 %v991_v28, 500000.0 }
 0x625   :  { %v1005_v14 = vmul.f32 0.00048828125, %v1001_v41 }
 0x627   :  { %1010 = vst.msk [vmem:[#allocation6 + $0x8] sm:$0xff] %vm1008_vm12, %v1005_v14 }
 0x62a   :  { %v994_v38 = vpop.f32.mrf.mxu3 }
 0x62b   :  { %v1002_v0 = vmin.f32 %v994_v38, 500000.0 }
 0x62d   :  { %v1006_v22 = vmul.f32 0.00048828125, %v1002_v0 }
 0x62f   :  { %1011 = vst.msk [vmem:[#allocation6 + $0x10] sm:$0xff] %vm1008_vm12, %v1006_v22 }
 0x630   :  { %v1290_v33 = vpop.f32.mrf.mxu1 }
 0x631   :  { %v1291_v43 = vadd.f32 %v1290_v33, %v1264_v19 }
 0x632   :  { %v997_v54 = vpop.f32.mrf.mxu3 }
 0x633   :  { %v1003_v21 = vmin.f32 %v997_v54, 500000.0  ;;  %v1303_v9 = vpop.f32.mrf.mxu2  ;;  %v3554_v59 = vmax.f32 %v1291_v43, 0.0 }
 0x634   :  { %v1304_v25 = vadd.f32 %v1303_v9, %v1264_v19 }
 0x635   :  { %v1007_v35 = vmul.f32 0.00048828125, %v1003_v21  ;;  %v1316_v23 = vpop.f32.mrf.mxu0 }
 0x636   :  { %v1334_v39 = vmax.f32 %v1304_v25, 0.0  ;;  %v1317_v32 = vadd.f32 %v1316_v23, %v1264_v19 }
 0x637   :  { %1012 = vst.msk [vmem:[#allocation6 + $0x18] sm:$0xff] %vm1008_vm12, %v1007_v35 }
 0x638   :  { %v1292_v30 = vpop.f32.mrf.mxu1  ;;  %v3548_v18 = vmax.f32 %v1317_v32, 0.0  ;;  %1407 = vrot.lane.b32.xlu1 %v1334_v39, %s2254_s20  ;;  %1455 = vrot.lane.b32.xlu0 %v1334_v39, %s2251_s30  ;;  %v1402_v9 = vmul.f32 %v1334_v39, %v1124_v27 }
 0x63a   :  { %1409 = vrot.lane.b32.xlu2 %v3548_v18, %s2254_s20 }
 0x63b   :  { %v1305_v36 = vpop.f32.mrf.mxu2 }
 0x63d   :  { %v1318_v3 = vpop.f32.mrf.mxu0 }
 0x640   :  { %1339 = vrot.lane.b32.xlu1 %v1334_v39, %s2257_s22  ;;  %1423 = vrot.lane.b32.xlu0 %v1334_v39, %s2252_s16 }
 0x642   :  { %1453 = vrot.lane.b32.xlu2 %v3554_v59, %s2251_s30 }
 0x644   :  { %v1329_v12 = vpop.f32.mrf.mxu1 }
 0x645   :  { %v1330_v20 = vadd.f32 %v1329_v12, %v1264_v19 }
 0x647   :  { %v3580_v2 = vmax.f32 %v1330_v20, 0.0 }
 0x648   :  { %1355 = vrot.lane.b32.xlu1 %v1334_v39, %s2258_s25  ;;  %1439 = vrot.lane.b32.xlu0 %v1334_v39, %s2253_s17 }
 0x64a   :  { %1421 = vrot.lane.b32.xlu2 %v3554_v59, %s2252_s16 }
 0x64c   :  { %v1331_v31 = vpop.f32.mrf.mxu1 }
 0x650   :  { %1371 = vrot.lane.b32.xlu0 %v1334_v39, %s2255_s0  ;;  %1457 = vrot.lane.b32.xlu1 %v3548_v18, %s2251_s30 }
 0x652   :  { %1437 = vrot.lane.b32.xlu2 %v3554_v59, %s2253_s17 }
 0x658   :  { %1387 = vrot.lane.b32.xlu0 %v1334_v39, %s2256_s21  ;;  %1425 = vrot.lane.b32.xlu1 %v3548_v18, %s2252_s16 }
 0x65a   :  { %1369 = vrot.lane.b32.xlu2 %v3554_v59, %s2255_s0 }
 0x660   :  { %1405 = vrot.lane.b32.xlu0 %v3554_v59, %s2254_s20  ;;  %1441 = vrot.lane.b32.xlu1 %v3548_v18, %s2253_s17 }
 0x662   :  { %1385 = vrot.lane.b32.xlu2 %v3554_v59, %s2256_s21 }
 0x668   :  { %1337 = vrot.lane.b32.xlu0 %v3554_v59, %s2257_s22  ;;  %1443 = vrot.lane.b32.xlu1 %v3580_v2, %s2253_s17 }
 0x66a   :  { %1459 = vrot.lane.b32.xlu2 %v3580_v2, %s2251_s30 }
 0x670   :  { %1353 = vrot.lane.b32.xlu0 %v3554_v59, %s2258_s25  ;;  %1375 = vrot.lane.b32.xlu1 %v3580_v2, %s2255_s0 }
 0x672   :  { %1411 = vrot.lane.b32.xlu2 %v3580_v2, %s2254_s20 }
 0x678   :  { %1391 = vrot.lane.b32.xlu1 %v3580_v2, %s2256_s21  ;;  %1427 = vrot.lane.b32.xlu0 %v3580_v2, %s2252_s16  ;;  %s4055_s16 = smov 128  }
 0x67a   :  { %1343 = vrot.lane.b32.xlu2 %v3580_v2, %s2257_s22 }
 0x680   :  { %1389 = vrot.lane.b32.xlu1 %v3548_v18, %s2256_s21  ;;  %1373 = vrot.lane.b32.xlu0 %v3548_v18, %s2255_s0  ;;  %s4053_s0 = smov 7  }
 0x682   :  { %1359 = vrot.lane.b32.xlu2 %v3580_v2, %s2258_s25 }
 0x688   :  { %1493 = vperm.xlu1 %2111, %v1490_v4   ;;  %1357 = vrot.lane.b32.xlu0 %v3548_v18, %s2258_s25 }
 0x68a   :  { %1341 = vrot.lane.b32.xlu2 %v3548_v18, %s2257_s22 }
 0x694   :  { %v3613_v28 = vpop.permute.xlu2 %1409 }
 0x69c   :  { %v1454_v41 = vpop.permute.xlu2 %1453 }
 0x6a4   :  { %v3615_v14 = vpop.permute.xlu2 %1421 }
 0x6aa   :  { %v1408_v38 = vpop.permute.xlu1 %1407  ;;  %v1456_v0 = vpop.permute.xlu0 %1455 }
 0x6ab   :  { %v1414_v22 = vsel %vm206_vm4, %v1408_v38, %v3613_v28  ;;  %v1463_v33 = vsel %vm290_vm0, %v1454_v41, %v1456_v0 }
 0x6ac   :  { %v1418_v54 = vmul.f32 %v1414_v22, %v1150_v26  ;;  %v1465_v19 = vmul.f32 %v1463_v33, %v1227_v37  ;;  %v3626_v21 = vpop.permute.xlu2 %1437 }
 0x6ae   :  { %v1485_v25 = vpack.c.bf16 %v1465_v19, %v1465_v19  ;;  %v1478_v35 = vpack.c.bf16 %v1418_v54, %v1402_v9 }
 0x6b0   :  { %v1500_v23 = vsel %vm341_vm1, %v1485_v25, 0 }
 0x6b1   :  { %1514 = vmatpush.bf16.msrb.mxu2 %v1500_v23 }
 0x6b2   :  { %v3631_v30 = vpop.permute.xlu1 %1339  ;;  %v1424_v32 = vpop.permute.xlu0 %1423 }
 0x6b3   :  { %v1431_v26 = vsel %vm234_vm2, %v3615_v14, %v1424_v32 }
 0x6b4   :  { %v3633_v36 = vpop.permute.xlu2 %1369  ;;  %v1433_v39 = vmul.f32 %v1431_v26, %v1175_v60 }
 0x6ba   :  { %v3638_v37 = vpop.permute.xlu1 %1355  ;;  %v1440_v43 = vpop.permute.xlu0 %1439 }
 0x6bb   :  { %v1447_v27 = vsel %vm262_vm3, %v3626_v21, %v1440_v43 }
 0x6bc   :  { %v1449_v3 = vmul.f32 %v1447_v27, %v1201_v40  ;;  %v3647_v12 = vpop.permute.xlu2 %1385 }
 0x6be   :  { %v1481_v31 = vpack.c.bf16 %v1449_v3, %v1433_v39 }
 0x6c0   :  { %1515 = vmatpush.bf16.msrb.mxu2 %v1481_v31 }
 0x6c2   :  { %v3649_v20 = vpop.permute.xlu0 %1371  ;;  %v1458_v4 = vpop.permute.xlu1 %1457 }
 0x6c3   :  { %v1462_v22 = vsel %vm290_vm0, %v1456_v0, %v1458_v4 }
 0x6c4   :  { %v1466_v33 = vmul.f32 %v1462_v22, %v1228_v56  ;;  %v1460_v54 = vpop.permute.xlu2 %1459 }
 0x6c5   :  { %v1461_v60 = vsel %vm290_vm0, %v1458_v4, %v1460_v54  ;;  %v1464_v40 = vsel %vm290_vm0, %v1460_v54, %v1454_v41 }
 0x6c6   :  { %v1486_v19 = vpack.c.bf16 %v1466_v33, %v1466_v33  ;;  %v1467_v9 = vmul.f32 %v1461_v60, %v1229_v61  ;;  %v1468_v25 = vmul.f32 %v1464_v40, %v1230_v45 }
 0x6c8   :  { %v1487_v23 = vpack.c.bf16 %v1467_v9, %v1467_v9  ;;  %v1488_v26 = vpack.c.bf16 %v1468_v25, %v1468_v25  ;;  %v1503_v0 = vsel %vm341_vm1, %v1486_v19, 0 }
 0x6c9   :  { %1527 = vmatpush.bf16.msra.mxu3 %v1503_v0 }
 0x6ca   :  { %v3664_v56 = vpop.permute.xlu0 %1387  ;;  %v1426_v27 = vpop.permute.xlu1 %1425  ;;  %v1506_v39 = vsel %vm341_vm1, %v1487_v23, 0  ;;  %v1509_v3 = vsel %vm341_vm1, %v1488_v26, 0 }
 0x6cb   :  { %1540 = vmatpush.bf16.msrb.mxu0 %v1506_v39  ;;  %1553 = vmatpush.bf16.msrb.mxu1 %v1509_v3  ;;  %v1430_v61 = vsel %vm234_vm2, %v1424_v32, %v1426_v27  ;;  %v1401_v32 = vmul.f32 %v3554_v59, %v1123_v58  ;;  %v3715_v3 = vld [vmem:[%s3989_s4] sm:$0xf]  ;;  %s4051_s4 = smov 121  }
 0x6cc   :  { %v1434_v4 = vmul.f32 %v1430_v61, %v1176_v1  ;;  %v1412_v54 = vpop.permute.xlu2 %1411  ;;  %v1379_v1 = vsel %vm135_vm5, %v3633_v36, %v3649_v20 }
 0x6cd   :  { %v1382_v59 = vmul.f32 %v1379_v1, %v1084_v42 }
 0x6d2   :  { %v1406_v41 = vpop.permute.xlu0 %1405  ;;  %v1442_v48 = vpop.permute.xlu1 %1441 }
 0x6d3   :  { %v1415_v45 = vsel %vm206_vm4, %v1406_v41, %v1408_v38  ;;  %v1446_v31 = vsel %vm262_vm3, %v1440_v43, %v1442_v48  ;;  %v1395_v38 = vsel %vm163_vm6, %v3647_v12, %v3664_v56 }
 0x6d4   :  { %v1417_v22 = vmul.f32 %v1415_v45, %v1149_v10  ;;  %v1450_v33 = vmul.f32 %v1446_v31, %v1202_v47  ;;  %v1398_v47 = vmul.f32 %v1395_v38, %v1110_v17  ;;  %v3695_v19 = vpop.permute.xlu2 %1343 }
 0x6d6   :  { %v1477_v60 = vpack.c.bf16 %v1417_v22, %v1401_v32  ;;  %v1482_v40 = vpack.c.bf16 %v1450_v33, %v1434_v4  ;;  %v1474_v43 = vpack.c.bf16 %v1398_v47, %v1382_v59  ;;  %v4044_v32 = vperm.slane %v3318_v13, 0 }
 0x6d8   :  { %1516 = vmatpush.bf16.msrb.mxu2 %v1477_v60  ;;  %1528 = vmatpush.bf16.msra.mxu3 %v1482_v40  ;;  %v4045_v60 = vperm.slane %v3198_v52, 2 }
 0x6da   :  { %v1338_v10 = vpop.permute.xlu0 %1337  ;;  %v1444_v58 = vpop.permute.xlu1 %1443 }
 0x6db   :  { %v1347_v9 = vsel %vm80_vm7, %v1338_v10, %v3631_v30  ;;  %v1445_v0 = vsel %vm262_vm3, %v1442_v48, %v1444_v58  ;;  %v1448_v39 = vsel %vm262_vm3, %v1444_v58, %v3626_v21  ;;  %v1416_v48 = vsel %vm206_vm4, %v1412_v54, %v1406_v41 }
 0x6dc   :  { %1529 = vmatpush.bf16.msra.mxu3 %v1478_v35  ;;  %v1350_v26 = vmul.f32 %v1347_v9, %v1032_v63  ;;  %v1360_v61 = vpop.permute.xlu2 %1359  ;;  %v4042_v21 = vperm.slane %v3205_v53, 2  ;;  %v1452_v31 = vmul.f32 %v1448_v39, %v1204_v44  ;;  %v4043_v53 = vperm.slane %v3313_v49, 0 }
 0x6dd   :  { %v1348_v1 = vsel %vm80_vm7, %v3695_v19, %v1338_v10  ;;  %v4050_v39 = vperm.slane %v3313_v49, 3 }
 0x6de   :  { %v1451_v45 = vmul.f32 %v1445_v0, %v4042_v21  ;;  %v1349_v52 = vmul.f32 %v1348_v1, %v1031_v15 }
 0x6e0   :  { %1530 = vmatpush.bf16.msra.mxu3 %v1474_v43 }
 0x6e2   :  { %v1354_v25 = vpop.permute.xlu0 %1353  ;;  %v1376_v23 = vpop.permute.xlu1 %1375 }
 0x6e3   :  { %v1363_v17 = vsel %vm107_vm8, %v1354_v25, %v3638_v37  ;;  %v1380_v63 = vsel %vm135_vm5, %v1376_v23, %v3633_v36  ;;  %v1364_v33 = vsel %vm107_vm8, %v1360_v61, %v1354_v25 }
 0x6e4   :  { %v1366_v42 = vmul.f32 %v1363_v17, %v1058_v11  ;;  %v1413_v11 = vsel %vm206_vm4, %v3613_v28, %v1412_v54  ;;  %v1381_v44 = vmul.f32 %v1380_v63, %v4043_v53  ;;  %v1365_v47 = vmul.f32 %v1364_v33, %v1057_v8 }
 0x6e6   :  { %v1470_v35 = vpack.c.bf16 %v1366_v42, %v1350_v26  ;;  %v1469_v8 = vpack.c.bf16 %v1365_v47, %v1349_v52 }
 0x6e8   :  { %1531 = vmatpush.bf16.msra.mxu3 %v1470_v35  ;;  %v4049_v35 = vperm.slane %v3313_v49, 2 }
 0x6ea   :  { %v1392_v4 = vpop.permute.xlu1 %1391  ;;  %v1428_v22 = vpop.permute.xlu0 %1427 }
 0x6eb   :  { %v1396_v36 = vsel %vm163_vm6, %v1392_v4, %v3647_v12  ;;  %v1429_v28 = vsel %vm234_vm2, %v1426_v27, %v1428_v22  ;;  %v1432_v41 = vsel %vm234_vm2, %v1428_v22, %v3615_v14  ;;  %2043 = vmatmul.msk.bf16.vlgmr.msra.gmra.mxu3 %vm337_vm9, %v3715_v3  ;;  %v4046_v27 = vperm.slane %v3237_v46, 2 }
 0x6ec   :  { %v1397_v54 = vmul.f32 %v1396_v36, %v4044_v32  ;;  %v1435_v40 = vmul.f32 %v1429_v28, %v4045_v60  ;;  %v1436_v12 = vmul.f32 %v1432_v41, %v1178_v29  ;;  %v1420_v14 = vmul.f32 %v1416_v48, %v1152_v57 }
 0x6ed   :  { %v1419_v38 = vmul.f32 %v1413_v11, %v4046_v27  ;;  %v4047_v29 = vperm.slane %v3254_v24, 2  ;;  %v1404_v57 = vmul.f32 %v3580_v2, %v1126_v50  ;;  %v4048_v2 = vperm.slane %v3318_v13, 3 }
 0x6ee   :  { %v1473_v58 = vpack.c.bf16 %v1397_v54, %v1381_v44  ;;  %v1483_v59 = vpack.c.bf16 %v1451_v45, %v1435_v40  ;;  %v1484_v43 = vpack.c.bf16 %v1452_v31, %v1436_v12  ;;  %v1646_v40 = vld [vmem:[#allocation2 + $0x178] sm:$0xff]  ;;  %v1645_v12 = vld [vmem:[#allocation2 + $0x170] sm:$0xff] }
 0x6ef   :  { %v1403_v46 = vmul.f32 %v3548_v18, %v4047_v29  ;;  %v1480_v17 = vpack.c.bf16 %v1420_v14, %v1404_v57 }
 0x6f0   :  { %1517 = vmatpush.bf16.msrb.mxu2 %v1473_v58  ;;  %1541 = vmatpush.bf16.msrb.mxu0 %v1483_v59 }
 0x6f1   :  { %1554 = vmatpush.bf16.msrb.mxu1 %v1484_v43  ;;  %v1479_v25 = vpack.c.bf16 %v1419_v38, %v1403_v46 }
 0x6f2   :  { %v1390_v10 = vpop.permute.xlu1 %1389  ;;  %v1374_v9 = vpop.permute.xlu0 %1373 }
 0x6f3   :  { %v1393_v26 = vsel %vm163_vm6, %v1390_v10, %v1392_v4  ;;  %v1394_v15 = vsel %vm163_vm6, %v3664_v56, %v1390_v10  ;;  %v1377_v18 = vsel %vm135_vm5, %v1374_v9, %v1376_v23  ;;  %v1378_v24 = vsel %vm135_vm5, %v3649_v20, %v1374_v9  ;;  %v1342_v56 = vpop.permute.xlu2 %1341 }
 0x6f4   :  { %v1399_v50 = vmul.f32 %v1394_v15, %v1111_v34  ;;  %v1400_v42 = vmul.f32 %v1393_v26, %v4048_v2  ;;  %v1383_v0 = vmul.f32 %v1378_v24, %v4049_v35  ;;  %v1384_v63 = vmul.f32 %v1377_v18, %v4050_v39  ;;  %1518 = vmatpush.bf16.msrb.mxu2 %v1469_v8  ;;  %v1644_v26 = vld [vmem:[#allocation2 + $0x168] sm:$0xff]  ;;  %v1662_v15 = vld [vmem:[#allocation2 + $0x1f8] sm:$0xff]  ;;  %v1613_v18 = vld [vmem:[#allocation2 + $0x70] sm:$0xff] }
 0x6f5   :  { %1542 = vmatpush.bf16.msrb.mxu0 %v1479_v25  ;;  %1555 = vmatpush.bf16.msrb.mxu1 %v1480_v17  ;;  %v1345_v34 = vsel %vm80_vm7, %v1342_v56, %v3695_v19  ;;  %v1346_v13 = vsel %vm80_vm7, %v3631_v30, %v1342_v56  ;;  %v1614_v25 = vld [vmem:[#allocation2 + $0x78] sm:$0xff]  ;;  %v1629_v24 = vld [vmem:[#allocation2 + $0xf0] sm:$0xff]  ;;  %v1628_v35 = vld [vmem:[#allocation2 + $0xe8] sm:$0xff] }
 0x6f6   :  { %v1475_v23 = vpack.c.bf16 %v1399_v50, %v1383_v0  ;;  %v1476_v11 = vpack.c.bf16 %v1400_v42, %v1384_v63  ;;  %v1351_v21 = vmul.f32 %v1346_v13, %v1033_v62  ;;  %v1352_v19 = vmul.f32 %v1345_v34, %v1034_v16  ;;  %v1630_v17 = vld [vmem:[#allocation2 + $0xf8] sm:$0xff]  ;;  %v1643_v50 = vld [vmem:[#allocation2 + $0x160] sm:$0xff]  ;;  %v1661_v2 = vld [vmem:[#allocation2 + $0x1f0] sm:$0xff] }
 0x6f7   :  { %2042 = vmatmul.msk.bf16.vlgmr.msrb.gmra.mxu2 %vm337_vm9, %v3715_v3  ;;  %1683 = vmatpush.msrb.mxu3 %v1630_v17  ;;  %v1612_v42 = vld [vmem:[#allocation2 + $0x68] sm:$0xff]  ;;  %v1642_v0 = vld [vmem:[#allocation2 + $0x158] sm:$0xff]  ;;  %v1611_v63 = vld [vmem:[#allocation2 + $0x60] sm:$0xff] }
 0x6f8   :  { %1663 = vmatpush.msra.mxu2 %v1614_v25  ;;  %v1660_v39 = vld [vmem:[#allocation2 + $0x1e8] sm:$0xff]  ;;  %v1627_v56 = vld [vmem:[#allocation2 + $0xe0] sm:$0xff]  ;;  %v1610_v34 = vld [vmem:[#allocation2 + $0x58] sm:$0xff] }
 0x6f9   :  { %1543 = vmatpush.bf16.msrb.mxu0 %v1475_v23  ;;  %1556 = vmatpush.bf16.msrb.mxu1 %v1476_v11  ;;  %v1641_v23 = vld [vmem:[#allocation2 + $0x150] sm:$0xff]  ;;  %v1659_v11 = vld [vmem:[#allocation2 + $0x1e0] sm:$0xff]  ;;  %v1626_v13 = vld [vmem:[#allocation2 + $0xd8] sm:$0xff] }
 0x6fa   :  { %v1358_v49 = vpop.permute.xlu0 %1357  ;;  %v1494_v55 = vpop.permute.xlu1 %1493  ;;  %1664 = vmatpush.msra.mxu2 %v1613_v18  ;;  %1684 = vmatpush.msrb.mxu3 %v1629_v24  ;;  %v1599_v25 = vld [vmem:[#allocation2] sm:$0xff] }
 0x6fb   :  { %v1361_v20 = vsel %vm107_vm8, %v1358_v49, %v1360_v61  ;;  %v1362_v48 = vsel %vm107_vm8, %v3638_v37, %v1358_v49  ;;  %v1640_v49 = vld [vmem:[#allocation2 + $0x148] sm:$0xff]  ;;  %v1615_v17 = vld [vmem:[#allocation2 + $0x80] sm:$0xff] }
 0x6fc   :  { %v1367_v45 = vmul.f32 %v1362_v48, %v1059_v5  ;;  %v1368_v30 = vmul.f32 %v1361_v20, %v1060_v6  ;;  %1665 = vmatpush.msra.mxu2 %v1612_v42  ;;  %1685 = vmatpush.msrb.mxu3 %v1628_v35  ;;  %v1658_v20 = vld [vmem:[#allocation2 + $0x1d8] sm:$0xff]  ;;  %v1609_v48 = vld [vmem:[#allocation2 + $0x50] sm:$0xff] }
 0x6fe   :  { %v1471_v31 = vpack.c.bf16 %v1367_v45, %v1351_v21  ;;  %v1472_v4 = vpack.c.bf16 %v1368_v30, %v1352_v19  ;;  %1666 = vmatpush.msra.mxu2 %v1611_v63  ;;  %1686 = vmatpush.msrb.mxu3 %v1627_v56  ;;  %v1625_v21 = vld [vmem:[#allocation2 + $0xd0] sm:$0xff]  ;;  %v1639_v19 = vld [vmem:[#allocation2 + $0x140] sm:$0xff]  ;;  %v1608_v30 = vld [vmem:[#allocation2 + $0x48] sm:$0xff] }
 0x6ff   :  { %v1657_v45 = vld [vmem:[#allocation2 + $0x1d0] sm:$0xff] }
 0x700   :  { %1544 = vmatpush.bf16.msrb.mxu0 %v1471_v31  ;;  %1557 = vmatpush.bf16.msrb.mxu1 %v1472_v4  ;;  %v1624_v31 = vld [vmem:[#allocation2 + $0xc8] sm:$0xff]  ;;  %v1638_v4 = vld [vmem:[#allocation2 + $0x138] sm:$0xff] }
 0x701   :  { %1667 = vmatpush.msra.mxu2 %v1610_v34  ;;  %1687 = vmatpush.msrb.mxu3 %v1626_v13 }
 0x703   :  { %2044 = vmatmul.msk.bf16.vlgmr.msrb.gmra.mxu0 %vm337_vm9, %v3715_v3  ;;  %2045 = vmatmul.msk.bf16.vlgmr.msrb.gmra.mxu1 %vm337_vm9, %v3715_v3 }
 0x704   :  { %1703 = vmatpush.msra.mxu0 %v1646_v40  ;;  %1723 = vmatpush.msra.mxu1 %v1662_v15  ;;  %v1633_v40 = vld [vmem:[#allocation2 + $0x110] sm:$0xff] }
 0x705   :  { %1668 = vmatpush.msra.mxu2 %v1609_v48  ;;  %1688 = vmatpush.msrb.mxu3 %v1625_v21 }
 0x706   :  { %1704 = vmatpush.msra.mxu0 %v1645_v12  ;;  %1724 = vmatpush.msra.mxu1 %v1661_v2  ;;  %v1651_v12 = vld [vmem:[#allocation2 + $0x1a0] sm:$0xff] }
 0x707   :  { %1669 = vmatpush.msra.mxu2 %v1608_v30  ;;  %1689 = vmatpush.msrb.mxu3 %v1624_v31 }
 0x708   :  { %1705 = vmatpush.msra.mxu0 %v1644_v26  ;;  %1725 = vmatpush.msra.mxu1 %v1660_v39  ;;  %v1647_v26 = vld [vmem:[#allocation2 + $0x180] sm:$0xff] }
 0x70a   :  { %1706 = vmatpush.msra.mxu0 %v1643_v50  ;;  %1726 = vmatpush.msra.mxu1 %v1659_v11 }
 0x70c   :  { %1707 = vmatpush.msra.mxu0 %v1642_v0  ;;  %1727 = vmatpush.msra.mxu1 %v1658_v20 }
 0x70e   :  { %1708 = vmatpush.msra.mxu0 %v1641_v23  ;;  %1728 = vmatpush.msra.mxu1 %v1657_v45  ;;  %v3868_v45 = vld [vmem:[%s3996_s11 + $0x7] ss:$0 sm:$0xff] }
 0x710   :  { %1709 = vmatpush.msra.mxu0 %v1640_v49 }
 0x712   :  { %1710 = vmatpush.msra.mxu0 %v1639_v19 }
 0x714   :  { %1711 = vmatpush.msra.mxu0 %v1638_v4  ;;  %v3874_v4 = vld [vmem:[%s3996_s11 + $0x6] ss:$0 sm:$0xff] }
 0x76e   :  { %v1533_v62 = vpop.f32.mrf.mxu3 }
 0x76f   :  { %v1534_v16 = vadd.f32 %v1533_v62, %v1494_v55  ;;  %v1656_v62 = vld [vmem:[#allocation2 + $0x1c8] sm:$0xff] }
 0x770   :  { %1729 = vmatpush.msra.mxu1 %v1656_v62 }
 0x771   :  { %v1564_v5 = vmax.f32 %v1534_v16, 0.0  ;;  %v1637_v16 = vld [vmem:[#allocation2 + $0x130] sm:$0xff] }
 0x772   :  { %1712 = vmatpush.msra.mxu0 %v1637_v16 }
 0x776   :  { %v1535_v37 = vpop.f32.mrf.mxu3 }
 0x777   :  { %v1607_v37 = vld [vmem:[#allocation2 + $0x40] sm:$0xff] }
 0x778   :  { %1670 = vmatpush.msra.mxu2 %v1607_v37 }
 0x77a   :  { %v1520_v61 = vpop.f32.mrf.mxu2 }
 0x77b   :  { %v1521_v22 = vadd.f32 %v1520_v61, %v1494_v55  ;;  %v1655_v61 = vld [vmem:[#allocation2 + $0x1c0] sm:$0xff] }
 0x77c   :  { %1730 = vmatpush.msra.mxu1 %v1655_v61  ;;  %v2142_v61 = vld [vmem:[%s3996_s11 + $0x4] ss:$0 sm:$0xff] }
 0x77d   :  { %v1563_v33 = vmax.f32 %v1521_v22, 0.0  ;;  %v1606_v22 = vld [vmem:[#allocation2 + $0x38] sm:$0xff] }
 0x77e   :  { %1671 = vmatpush.msra.mxu2 %v1606_v22  ;;  %v3884_v22 = vld [vmem:[%s3996_s11 + $0x5] ss:$0 sm:$0xff] }
 0x77f   :  { %v2112_v51 = vpack.i.bf16 %v1564_v5, %v1563_v33 }
 0x780   :  { %v1546_v6 = vpop.f32.mrf.mxu0  ;;  %v1559_v36 = vpop.f32.mrf.mxu1 }
 0x781   :  { %v1547_v28 = vadd.f32 %v1546_v6, %v1494_v55  ;;  %v1560_v41 = vadd.f32 %v1559_v36, %v1494_v55  ;;  %2113 = vrot.lane.b32.xlu2 %v2112_v51, %s2254_s20  ;;  %v1623_v55 = vld [vmem:[#allocation2 + $0xc0] sm:$0xff]  ;;  %v1654_v51 = vld [vmem:[#allocation2 + $0x1b8] sm:$0xff]  ;;  %v1605_v6 = vld [vmem:[#allocation2 + $0x30] sm:$0xff] }
 0x782   :  { %v1522_v53 = vpop.f32.mrf.mxu2  ;;  %1690 = vmatpush.msrb.mxu3 %v1623_v55  ;;  %v1621_v36 = vld [vmem:[#allocation2 + $0xb0] sm:$0xff]  ;;  %1731 = vmatpush.msra.mxu1 %v1654_v51  ;;  %v3890_v51 = vld [vmem:[%s3996_s11 + $0x3] ss:$0 sm:$0xff] }
 0x783   :  { %v1565_v44 = vmax.f32 %v1547_v28, 0.0  ;;  %v1566_v32 = vmax.f32 %v1560_v41, 0.0  ;;  %v1635_v28 = vld [vmem:[#allocation2 + $0x120] sm:$0xff]  ;;  %v1653_v41 = vld [vmem:[#allocation2 + $0x1b0] sm:$0xff]  ;;  %v1604_v53 = vld [vmem:[#allocation2 + $0x28] sm:$0xff]  ;;  %1672 = vmatpush.msra.mxu2 %v1605_v6 }
 0x784   :  { %1732 = vmatpush.msra.mxu1 %v1653_v41 }
 0x785   :  { %v2117_v54 = vpack.i.bf16 %v1566_v32, %v1565_v44  ;;  %1673 = vmatpush.msra.mxu2 %v1604_v53  ;;  %v3896_v53 = vld [vmem:[%s3996_s11 + $0x2] ss:$0 sm:$0xff] }
 0x787   :  { %2118 = vrot.lane.b32.xlu0 %v2117_v54, %s2254_s20  ;;  %v1652_v54 = vld [vmem:[#allocation2 + $0x1a8] sm:$0xff] }
 0x788   :  { %v1548_v3 = vpop.f32.mrf.mxu0  ;;  %v1561_v60 = vpop.f32.mrf.mxu1  ;;  %1733 = vmatpush.msra.mxu1 %v1652_v54  ;;  %v3902_v54 = vld [vmem:[%s3996_s11 + $0x1] ss:$0 sm:$0xff] }
 0x789   :  { %v1603_v3 = vld [vmem:[#allocation2 + $0x20] sm:$0xff] }
 0x78a   :  { %v1619_v60 = vld [vmem:[#allocation2 + $0xa0] sm:$0xff]  ;;  %1674 = vmatpush.msra.mxu2 %v1603_v3  ;;  %1734 = vmatpush.msra.mxu1 %v1651_v12 }
 0x78b   :  { %v3907_v3 = vld [vmem:[%s3996_s11] ss:$0 sm:$0xff] }
 0x7db   :  { %v2114_v27 = vpop.permute.xlu2 %2113 }
 0x7dc   :  { %v2116_v38 = vunpack.i.h.bf16 %v2114_v27  ;;  %v2115_v14 = vunpack.i.l.bf16 %v2114_v27  ;;  %v1602_v27 = vld [vmem:[#allocation2 + $0x18] sm:$0xff] }
 0x7dd   :  { %1675 = vmatpush.msra.mxu2 %v1602_v27 }
 0x7de   :  { %v1577_v47 = vsel %vm206_vm4, %v2115_v14, %v2116_v38 }
 0x7df   :  { %v3819_v46 = vmax.f32 %v1563_v33, %v1577_v47  ;;  %v1636_v33 = vld [vmem:[#allocation2 + $0x128] sm:$0xff]  ;;  %v1601_v47 = vld [vmem:[#allocation2 + $0x10] sm:$0xff] }
 0x7e0   :  { %1713 = vmatpush.msra.mxu0 %v1636_v33  ;;  %1676 = vmatpush.msra.mxu2 %v1601_v47  ;;  %v2061_v47 = vld [vmem:[%s3991_s6] sm:$0xff] }
 0x7e2   :  { %1714 = vmatpush.msra.mxu0 %v1635_v28 }
 0x7f9   :  { %v2119_v1 = vpop.permute.xlu0 %2118 }
 0x7fa   :  { %v2121_v58 = vunpack.i.h.bf16 %v2119_v1  ;;  %v2120_v59 = vunpack.i.l.bf16 %v2119_v1  ;;  %v1650_v1 = vld [vmem:[#allocation2 + $0x198] sm:$0xff] }
 0x7fb   :  { %1735 = vmatpush.msra.mxu1 %v1650_v1 }
 0x7fc   :  { %v1578_v43 = vsel %vm206_vm4, %v2121_v58, %v2115_v14  ;;  %v1575_v52 = vsel %vm206_vm4, %v2120_v59, %v2121_v58  ;;  %v1576_v29 = vsel %vm206_vm4, %v2116_v38, %v2120_v59  ;;  %v1618_v38 = vld [vmem:[#allocation2 + $0x98] sm:$0xff]  ;;  %v1632_v14 = vld [vmem:[#allocation2 + $0x108] sm:$0xff]  ;;  %v1617_v58 = vld [vmem:[#allocation2 + $0x90] sm:$0xff] }
 0x7fd   :  { %v3821_v57 = vmax.f32 %v1566_v32, %v1578_v43  ;;  %v3823_v10 = vmax.f32 %v1564_v5, %v1576_v29  ;;  %v3825_v9 = vmax.f32 %v1565_v44, %v1575_v52  ;;  %v1622_v5 = vld [vmem:[#allocation2 + $0xb8] sm:$0xff]  ;;  %v1620_v44 = vld [vmem:[#allocation2 + $0xa8] sm:$0xff]  ;;  %v1631_v59 = vld [vmem:[#allocation2 + $0x100] sm:$0xff] }
 0x7fe   :  { %1691 = vmatpush.msrb.mxu3 %v1622_v5  ;;  %v1634_v32 = vld [vmem:[#allocation2 + $0x118] sm:$0xff]  ;;  %v1649_v43 = vld [vmem:[#allocation2 + $0x190] sm:$0xff]  ;;  %v1600_v52 = vld [vmem:[#allocation2 + $0x8] sm:$0xff] }
 0x7ff   :  { %1589 = vrot.lane.b32.xlu0 %v3821_v57, %s2253_s17  ;;  %1587 = vrot.lane.b32.xlu2 %v3825_v9, %s2253_s17  ;;  %v2122_v8 = vpack.i.bf16 %v3823_v10, %v3819_v46  ;;  %v1616_v29 = vld [vmem:[#allocation2 + $0x88] sm:$0xff] }
 0x800   :  { %1692 = vmatpush.msrb.mxu3 %v1621_v36  ;;  %1715 = vmatpush.msra.mxu0 %v1634_v32 }
 0x801   :  { %2123 = vrot.lane.b32.xlu1 %v2122_v8, %s2253_s17  ;;  %1736 = vmatpush.msra.mxu1 %v1649_v43  ;;  %v1648_v8 = vld [vmem:[#allocation2 + $0x188] sm:$0xff]  ;;  %s4052_s17 = smov 119  }
 0x802   :  { %1693 = vmatpush.msrb.mxu3 %v1620_v44  ;;  %1716 = vmatpush.msra.mxu0 %v1633_v40 }
 0x803   :  { %1677 = vmatpush.msra.mxu2 %v1600_v52  ;;  %1737 = vmatpush.msra.mxu1 %v1648_v8 }
 0x804   :  { %1694 = vmatpush.msrb.mxu3 %v1619_v60  ;;  %1717 = vmatpush.msra.mxu0 %v1632_v14 }
 0x805   :  { %1678 = vmatpush.msra.mxu2 %v1599_v25  ;;  %1738 = vmatpush.msra.mxu1 %v1647_v26 }
 0x806   :  { %1695 = vmatpush.msrb.mxu3 %v1618_v38  ;;  %1718 = vmatpush.msra.mxu0 %v1631_v59 }
 0x808   :  { %1696 = vmatpush.msrb.mxu3 %v1617_v58 }
 0x80a   :  { %1697 = vmatpush.msrb.mxu3 %v1616_v29 }
 0x80c   :  { %1698 = vmatpush.msrb.mxu3 %v1615_v17 }
 0x859   :  { %v1588_v15 = vpop.permute.xlu2 %1587 }
 0x871   :  { %v1590_v18 = vpop.permute.xlu0 %1589 }
 0x872   :  { %v1591_v24 = vsel %vm262_vm3, %v1588_v15, %v1590_v18 }
 0x873   :  { %v1597_v50 = vmax.f32 %v3825_v9, %v1591_v24  ;;  %v2124_v2 = vpop.permute.xlu1 %2123  ;;  %v1894_v24 = vld [vmem:[%s3994_s9 + $0x8] sm:$0xff] }
 0x874   :  { %v2126_v42 = vunpack.i.h.bf16 %v2124_v2  ;;  %v2125_v35 = vunpack.i.l.bf16 %v2124_v2 }
 0x875   :  { %1719 = vmatmul.f32.vlgmr.msra.gmra.mxu0 %v1597_v50  ;;  %v1893_v50 = vld [vmem:[%s3994_s9] sm:$0xff] }
 0x876   :  { %v1592_v0 = vsel %vm262_vm3, %v2126_v42, %v1588_v15  ;;  %v1593_v39 = vsel %vm262_vm3, %v2125_v35, %v2126_v42  ;;  %v1594_v63 = vsel %vm262_vm3, %v1590_v18, %v2125_v35 }
 0x877   :  { %v1595_v56 = vmax.f32 %v3819_v46, %v1593_v39  ;;  %v1596_v23 = vmax.f32 %v3823_v10, %v1592_v0  ;;  %v1598_v11 = vmax.f32 %v3821_v57, %v1594_v63  ;;  %v1794_v46 = vld [vmem:[%s3992_s7 + $0x8] sm:$0xff]  ;;  %s2266_s7 = smov [#allocation6]  }
 0x878   :  { %v3863_v10 = vld [vmem:[%s3996_s11 + $0x8] ss:$0 sm:$0xff]  ;;  %s1964_s29 = sshll.u32 %s2266_s7, 4  ;;  %s1965_s29 = int_to_ptr.vmem [resolvable:$true] %s1964_s29 }
 0x879   :  { %1679 = vmatmul.f32.vlgmr.msra.gmra.mxu2 %v1595_v56  ;;  %1699 = vmatmul.f32.vlgmr.msrb.gmra.mxu3 %v1596_v23  ;;  %1972 = dma.vmem_to_hbm [thread:$0]  %s1965_s29, 512, %s1967_s5, [#allocation7], %s4055_s16, %s4055_s16, %s2250_s24  }
 0x87a   :  { %1739 = vmatmul.f32.vlgmr.msra.gmra.mxu1 %v1598_v11 }
 0x8f2   :  { %v1720_v49 = vpop.f32.mrf.mxu0 }
 0x8f7   :  { %v1740_v48 = vpop.f32.mrf.mxu1 }
 0x8fc   :  { %v1680_v9 = vpop.f32.mrf.mxu2  ;;  %v1700_v34 = vpop.f32.mrf.mxu3 }
 0x8fd   :  { %v1701_v13 = vadd.f32 %v1700_v34, %v1680_v9 }
 0x8ff   :  { %v1721_v20 = vadd.f32 %v1720_v49, %v1701_v13 }
 0x901   :  { %v1741_v21 = vadd.f32 %v1740_v48, %v1721_v20 }
 0x903   :  { %1776 = vrot.lane.b32.xlu0 %v1741_v21, %s2260_s18  ;;  %1771 = vrot.lane.b32.xlu2 %v1741_v21, %s4051_s4  ;;  %v1765_v28 = vmul.f32 %v2142_v61, %v1741_v21 }
 0x904   :  { %1781 = vrot.lane.b32.xlu1 %v1741_v21, %s4052_s17 }
 0x90b   :  { %1758 = vrot.lane.b32.xlu0 %v1741_v21, %s2256_s21  ;;  %1753 = vrot.lane.b32.xlu2 %v1741_v21, %s4053_s0 }
 0x90c   :  { %1766 = vrot.lane.b32.xlu1 %v1741_v21, %s2254_s20 }
 0x913   :  { %1797 = vperm.xlu0 %2110, %v1793_v7   ;;  %1748 = vrot.lane.b32.xlu2 %v1741_v21, %s2250_s24 }
 0x914   :  { %1743 = vrot.lane.b32.xlu1 %v1741_v21, %s4054_s23 }
 0x91c   :  { %1802 = vperm.xlu1 %2111, %v1794_v46  }
 0x95d   :  { %v1772_v57 = vpop.permute.xlu2 %1771 }
 0x95e   :  { %v1775_v5 = vmul.f32 %v3874_v4, %v1772_v57 }
 0x965   :  { %v1754_v37 = vpop.permute.xlu2 %1753 }
 0x966   :  { %v1757_v60 = vmul.f32 %v3896_v53, %v1754_v37 }
 0x96d   :  { %v1749_v40 = vpop.permute.xlu2 %1748 }
 0x96e   :  { %v1752_v38 = vmul.f32 %v3902_v54, %v1749_v40  ;;  %v2063_v40 = vld [vmem:[%s3993_s8 + $0x4] sm:$0xf0] }
 0x975   :  { %v1777_v19 = vpop.permute.xlu0 %1776 }
 0x976   :  { %v1782_v30 = vpop.permute.xlu1 %1781  ;;  %v1780_v55 = vmul.f32 %v3868_v45, %v1777_v19 }
 0x977   :  { %v1785_v31 = vmul.f32 %v3863_v10, %v1782_v30 }
 0x978   :  { %v1789_v33 = vpack.c.bf16 %v1780_v55, %v1775_v5 }
 0x979   :  { %v1790_v62 = vpack.c.bf16 %v1785_v31, %v1785_v31 }
 0x97b   :  { %v1814_v16 = vsel %vm341_vm1, %v1790_v62, 0 }
 0x97c   :  { %1819 = vmatpush.bf16.msrb.mxu2 %v1814_v16 }
 0x97d   :  { %v1759_v36 = vpop.permute.xlu0 %1758 }
 0x97e   :  { %v1767_v6 = vpop.permute.xlu1 %1766  ;;  %v1762_v32 = vmul.f32 %v3890_v51, %v1759_v36 }
 0x97f   :  { %v1770_v41 = vmul.f32 %v3884_v22, %v1767_v6 }
 0x980   :  { %1820 = vmatpush.bf16.msrb.mxu2 %v1789_v33  ;;  %v1787_v12 = vpack.c.bf16 %v1762_v32, %v1757_v60  ;;  %v2053_v60 = vld [vmem:[%s3993_s8] sm:$0xf] }
 0x981   :  { %v1788_v44 = vpack.c.bf16 %v1770_v41, %v1765_v28  ;;  %v2055_v28 = vld [vmem:[%s3993_s8 + $0x8] sm:$0xf0] }
 0x984   :  { %1821 = vmatpush.bf16.msrb.mxu2 %v1788_v44 }
 0x985   :  { %v1798_v58 = vpop.permute.xlu0 %1797 }
 0x986   :  { %v1744_v27 = vpop.permute.xlu1 %1743 }
 0x987   :  { %v1747_v14 = vmul.f32 %v3907_v3, %v1744_v27  ;;  %v2054_v27 = vor.u32 %v2063_v40, %v2053_v60 }
 0x988   :  { %1822 = vmatpush.bf16.msrb.mxu2 %v1787_v12 }
 0x989   :  { %v1786_v1 = vpack.c.bf16 %v1752_v38, %v1747_v14 }
 0x98c   :  { %1823 = vmatpush.bf16.msrb.mxu2 %v1786_v1 }
 0x98e   :  { %v1803_v29 = vpop.permute.xlu1 %1802 }
 0x98f   :  { %2050 = vmatmul.msk.bf16.vlgmr.msrb.gmra.mxu2 %vm337_vm9, %v2061_v47 }
 0xa12   :  { %v1825_v59 = vpop.f32.mrf.mxu2 }
 0xa13   :  { %v1826_v43 = vadd.f32 %v1825_v59, %v1798_v58 }
 0xa15   :  { %v1830_v52 = vmax.f32 %v1826_v43, 0.0 }
 0xa17   :  { %1864 = vrot.lane.b32.xlu1 %v1830_v52, %s4051_s4  ;;  %1870 = vrot.lane.b32.xlu2 %v1830_v52, %s2260_s18  ;;  %v1856_v26 = vmul.f32 %v2142_v61, %v1830_v52 }
 0xa1a   :  { %v1827_v8 = vpop.f32.mrf.mxu2 }
 0xa1b   :  { %v1828_v25 = vadd.f32 %v1827_v8, %v1803_v29 }
 0xa1d   :  { %v1831_v17 = vmax.f32 %v1828_v25, 0.0 }
 0xa1f   :  { %1872 = vrot.lane.b32.xlu0 %v1831_v17, %s2260_s18  ;;  %1860 = vrot.lane.b32.xlu1 %v1831_v17, %s2254_s20  ;;  %v1857_v15 = vmul.f32 %v2142_v61, %v1831_v17 }
 0xa20   :  { %1866 = vrot.lane.b32.xlu2 %v1831_v17, %s4051_s4 }
 0xa21   :  { %v1886_v18 = vpack.c.bf16 %v1857_v15, %v1856_v26 }
 0xa27   :  { %1858 = vrot.lane.b32.xlu0 %v1830_v52, %s2254_s20  ;;  %1844 = vrot.lane.b32.xlu1 %v1830_v52, %s4053_s0 }
 0xa28   :  { %1850 = vrot.lane.b32.xlu2 %v1830_v52, %s2256_s21 }
 0xa2f   :  { %1852 = vrot.lane.b32.xlu0 %v1831_v17, %s2256_s21  ;;  %1840 = vrot.lane.b32.xlu1 %v1831_v17, %s2250_s24 }
 0xa30   :  { %1846 = vrot.lane.b32.xlu2 %v1831_v17, %s4053_s0 }
 0xa37   :  { %1838 = vrot.lane.b32.xlu0 %v1830_v52, %s2250_s24  ;;  %1876 = vrot.lane.b32.xlu1 %v1830_v52, %s4052_s17 }
 0xa38   :  { %1832 = vrot.lane.b32.xlu2 %v1830_v52, %s4054_s23 }
 0xa3f   :  { %1834 = vrot.lane.b32.xlu0 %v1831_v17, %s4054_s23  ;;  %1902 = vperm.xlu1 %2111, %v1894_v24  }
 0xa40   :  { %1878 = vrot.lane.b32.xlu2 %v1831_v17, %s4052_s17 }
 0xa47   :  { %1897 = vperm.xlu0 %2110, %v1893_v50  }
 0xa71   :  { %v1871_v2 = vpop.permute.xlu2 %1870 }
 0xa72   :  { %v1874_v56 = vmul.f32 %v3868_v45, %v1871_v2 }
 0xa7a   :  { %v1867_v42 = vpop.permute.xlu2 %1866 }
 0xa7b   :  { %v1869_v13 = vmul.f32 %v3874_v4, %v1867_v42 }
 0xa82   :  { %v1851_v35 = vpop.permute.xlu2 %1850 }
 0xa83   :  { %v1854_v30 = vmul.f32 %v3890_v51, %v1851_v35 }
 0xa89   :  { %v1865_v0 = vpop.permute.xlu1 %1864 }
 0xa8a   :  { %v1847_v11 = vpop.permute.xlu2 %1846  ;;  %v1868_v9 = vmul.f32 %v3874_v4, %v1865_v0 }
 0xa8b   :  { %v1849_v37 = vmul.f32 %v3896_v53, %v1847_v11 }
 0xa8c   :  { %v1888_v49 = vpack.c.bf16 %v1869_v13, %v1868_v9 }
 0xa91   :  { %v1873_v39 = vpop.permute.xlu0 %1872  ;;  %v1861_v63 = vpop.permute.xlu1 %1860 }
 0xa92   :  { %v1875_v23 = vmul.f32 %v3868_v45, %v1873_v39  ;;  %v1863_v21 = vmul.f32 %v3884_v22, %v1861_v63  ;;  %v1833_v57 = vpop.permute.xlu2 %1832 }
 0xa94   :  { %v1889_v34 = vpack.c.bf16 %v1875_v23, %v1874_v56 }
 0xa96   :  { %1917 = vmatpush.bf16.msra.mxu3 %v1889_v34 }
 0xa99   :  { %v1859_v20 = vpop.permute.xlu0 %1858  ;;  %v1845_v48 = vpop.permute.xlu1 %1844 }
 0xa9a   :  { %v1862_v7 = vmul.f32 %v3884_v22, %v1859_v20  ;;  %1918 = vmatpush.bf16.msra.mxu3 %v1888_v49  ;;  %v1848_v4 = vmul.f32 %v3896_v53, %v1845_v48  ;;  %v1879_v55 = vpop.permute.xlu2 %1878 }
 0xa9b   :  { %v1881_v5 = vmul.f32 %v3863_v10, %v1879_v55 }
 0xa9c   :  { %v1887_v46 = vpack.c.bf16 %v1863_v21, %v1862_v7  ;;  %v1884_v16 = vpack.c.bf16 %v1849_v37, %v1848_v4 }
 0xa9e   :  { %1919 = vmatpush.bf16.msra.mxu3 %v1887_v46 }
 0xaa1   :  { %v1853_v19 = vpop.permute.xlu0 %1852  ;;  %v1841_v45 = vpop.permute.xlu1 %1840 }
 0xaa2   :  { %v1855_v31 = vmul.f32 %v3890_v51, %v1853_v19  ;;  %1920 = vmatpush.bf16.msra.mxu3 %v1886_v18  ;;  %v1843_v33 = vmul.f32 %v3902_v54, %v1841_v45  ;;  %v2062_v51 = vld [vmem:[%s3993_s8 + $0x4] sm:$0xf]  ;;  %s1953_s8 = sshll.u32 %s3998_s13, 4  ;;  %s1954_s8 = int_to_ptr.hbm [resolvable:$true] %s1953_s8 }
 0xaa3   :  { %v2058_v44 = vor.u32 %v2062_v51, %v2055_v28  ;;  %1959 = dma.vmem_to_hbm [thread:$0]  %s1952_s28, 256, %s1954_s8, [#allocation4], %s4055_s16, %s4055_s16, %s2250_s24  }
 0xaa4   :  { %v1885_v62 = vpack.c.bf16 %v1855_v31, %v1854_v30 }
 0xaa6   :  { %1921 = vmatpush.bf16.msra.mxu3 %v1885_v62 }
 0xaa9   :  { %v1839_v61 = vpop.permute.xlu0 %1838  ;;  %v1877_v22 = vpop.permute.xlu1 %1876 }
 0xaaa   :  { %v1842_v6 = vmul.f32 %v3902_v54, %v1839_v61  ;;  %v1880_v36 = vmul.f32 %v3863_v10, %v1877_v22  ;;  %1922 = vmatpush.bf16.msra.mxu3 %v1884_v16  ;;  %v1836_v54 = vmul.f32 %v3907_v3, %v1833_v57 }
 0xaac   :  { %v1883_v41 = vpack.c.bf16 %v1843_v33, %v1842_v6  ;;  %v1890_v53 = vpack.c.bf16 %v1881_v5, %v1880_v36 }
 0xaae   :  { %1923 = vmatpush.bf16.msra.mxu3 %v1883_v41  ;;  %1938 = vmatpush.bf16.msrb.mxu0 %v1890_v53 }
 0xab1   :  { %v1835_v32 = vpop.permute.xlu0 %1834  ;;  %2059 = vmatmul.msk.bf16.vlgmr.msrb.gmra.mxu0 %vm953_vm10, %v2058_v44  ;;  %v1903_v58 = vpop.permute.xlu1 %1902 }
 0xab2   :  { %v1837_v10 = vmul.f32 %v3907_v3, %v1835_v32 }
 0xab4   :  { %v1882_v12 = vpack.c.bf16 %v1837_v10, %v1836_v54 }
 0xab6   :  { %1924 = vmatpush.bf16.msra.mxu3 %v1882_v12 }
 0xab9   :  { %1925 = vmatmul.bf16.vlgmr.msra.gmra.mxu3 %v2054_v27  ;;  %v1898_v3 = vpop.permute.xlu0 %1897 }
 0xb2e   :  { %v1940_v38 = vpop.f32.mrf.mxu0 }
 0xb36   :  { %v1942_v52 = vpop.f32.mrf.mxu0 }
 0xb3c   :  { %v1926_v14 = vpop.f32.mrf.mxu3 }
 0xb3d   :  { %v1927_v1 = vadd.f32 %v1926_v14, %v1898_v3 }
 0xb3f   :  { %v1941_v47 = vadd.f32 %v1940_v38, %v1927_v1 }
 0xb41   :  { %1945 = vst [vmem:[#allocation8] sm:$0xff] %v1941_v47 }
 0xb44   :  { %v1928_v59 = vpop.f32.mrf.mxu3 }
 0xb45   :  { %v1929_v43 = vadd.f32 %v1928_v59, %v1903_v58 }
 0xb47   :  { %v1943_v29 = vadd.f32 %v1942_v52, %v1929_v43 }
 0xb49   :  { %1946 = vst [vmem:[#allocation8 + $0x8] sm:$0xff] %v1943_v29 }
 0xb4a   :  { %1985 = dma.vmem_to_hbm [thread:$0]  %s1978_s27, 256, %s1980_s1, [#allocation7], %s4055_s16, %s4055_s16, %s2250_s24  }
 0xb4b   :  { %2244 = dma.done.wait [#allocation4], 256  }
 0xb4c   :  { %2245 = vsyncadd [#allocation4], 4294967040 }
 0xb4d   :  { %2246 = dma.done.wait [#allocation7], 768  }
 0xb4e   :  { %2247 = vsyncadd [#allocation7], 4294966528 }
 0xb4f   :  { %1998 = vsyncpa [#allocation3], 1 }
 0xb50   :  { %1999 = vsyncpa [#allocation4], 1 }
 0xb51   :  { %2000 = vsyncpa [#allocation7], 1 }

</bundles_post_ra>
